<compile_context>
chip_gen: v6e
topology: v6e:2x2x1
jax: 0.10.0
libtpu: 0.0.40
codegen_flags: <defaults>
</compile_context>

<pallas_src>
import jax
import jax.numpy as jnp
from jax.experimental import pallas as pl
from jax.experimental.pallas import tpu as pltpu


# ----------------------------------------------------------------------------
# Fused kernel:
#   per Cout tile n:  1x1-conv matmul + folded BN2d + ReLU + global avg pool
#                     + Linear1 partial product (K-chunk n) into f32 scratch
#   at last tile:     folded BN1d + ReLU + Linear2 + bias + sigmoid
# ----------------------------------------------------------------------------
def fused_bottleneck_kernel(x_ref, w_ref, scale_ref, shift_ref,
                            w1_ref, s1_ref, sh1_ref, w2_ref, b2_ref,
                            o_ref, h_acc_ref):
    # x_ref:     [B*HW, Cin] bf16  (constant index -> resident in VMEM)
    # w_ref:     [Cin, TN]   bf16  (conv weight, Cout tile n)
    # scale_ref/shift_ref: [1, TN] f32 (folded conv bias + BN2d)
    # w1_ref:    [TN, H1]    bf16  (Linear1 K-chunk n)
    # s1_ref/sh1_ref: [1, H1] f32  (folded Linear1 bias + BN1d)
    # w2_ref:    [H1, L] f32, b2_ref: [1, L] f32
    # o_ref:     [B, L]  f32
    # h_acc_ref: [B, H1] f32 scratch (pre-BN hidden accumulator)
    n = pl.program_id(0)

    @pl.when(n == 0)
    def _():
        h_acc_ref[...] = jnp.zeros_like(h_acc_ref)

    b = h_acc_ref.shape[0]
    hw = x_ref.shape[0] // b
    tn = w_ref.shape[1]

    # 1x1 conv on this Cout tile (MXU, f32 accumulation) + folded BN2d + ReLU.
    y = jnp.dot(x_ref[...], w_ref[...], preferred_element_type=jnp.float32)
    y = y * scale_ref[...] + shift_ref[...]
    y = jnp.maximum(y, 0.0)

    # AdaptiveAvgPool2d((1,1)): per-batch mean over the HW pixels of this tile.
    pooled_n = jnp.mean(y.reshape(b, hw, tn), axis=1)              # [B, TN] f32

    # Linear1 partial product for K-chunk n (pre-BN), accumulated in f32.
    h_acc_ref[...] += jnp.dot(pooled_n.astype(jnp.bfloat16), w1_ref[...],
                              preferred_element_type=jnp.float32)

    @pl.when(n == pl.num_programs(0) - 1)
    def _():
        h = h_acc_ref[...] * s1_ref[...] + sh1_ref[...]            # bias + BN1d
        h = jnp.maximum(h, 0.0)                                    # ReLU
        # TODO(synk): Dropout(p=0.2) is eval-mode identity here.
        o = jnp.dot(h, w2_ref[...],
                    preferred_element_type=jnp.float32) + b2_ref[...]
        o_ref[...] = jax.nn.sigmoid(o)


def bottleneck_classifier_forward(x_nchw, params, *, tile_n=512):
    B, C, H, W = x_nchw.shape
    conv_w = params["conv_w"]
    w1 = params["w1"]
    w2 = params["w2"]
    Cin, Cout = conv_w.shape
    H1 = w1.shape[1]
    L = w2.shape[1]
    assert C == Cin and Cout % tile_n == 0 and Cin % tile_n == 0, (C, Cin, Cout)

    BHW = B * H * W
    # NCHW -> [B*HW, C] channels-last, cast to bf16 fused into the transpose.
    # TODO(synk): if the upstream producer can emit channels-last bf16
    # activations, this transpose (an extra HBM pass at large H*W) disappears.
    x_flat = jnp.transpose(x_nchw, (0, 2, 3, 1)).reshape(BHW, C).astype(
        jnp.bfloat16)

    grid = (Cout // tile_n,)
    cost = pl.CostEstimate(
        flops=2 * BHW * Cin * Cout + 2 * B * Cout * H1 + 2 * B * H1 * L,
        transcendentals=B * L,
        bytes_accessed=(x_flat.size * 2 + conv_w.size * 2 + w1.size * 2
                        + 2 * Cout * 4 + 2 * H1 * 4
                        + w2.size * 4 + L * 4 + B * L * 4),
    )
    return pl.pallas_call(
        fused_bottleneck_kernel,
        out_shape=jax.ShapeDtypeStruct((B, L), jnp.float32),
        grid_spec=pltpu.PrefetchScalarGridSpec(
            num_scalar_prefetch=0,
            grid=grid,
            in_specs=[
                pl.BlockSpec((BHW, Cin), lambda n: (0, 0)),      # x (resident)
                pl.BlockSpec((Cin, tile_n), lambda n: (0, n)),   # conv_w tile
                pl.BlockSpec((1, tile_n), lambda n: (0, n)),     # conv scale
                pl.BlockSpec((1, tile_n), lambda n: (0, n)),     # conv shift
                pl.BlockSpec((tile_n, H1), lambda n: (n, 0)),    # w1 K-chunk
                pl.BlockSpec((1, H1), lambda n: (0, 0)),         # mlp scale1
                pl.BlockSpec((1, H1), lambda n: (0, 0)),         # mlp shift1
                pl.BlockSpec((H1, L), lambda n: (0, 0)),         # w2
                pl.BlockSpec((1, L), lambda n: (0, 0)),          # b2
            ],
            out_specs=pl.BlockSpec((B, L), lambda n: (0, 0)),
            scratch_shapes=[pltpu.VMEM((B, H1), jnp.float32)],
        ),
        compiler_params=pltpu.CompilerParams(
            dimension_semantics=("arbitrary",),
            vmem_limit_bytes=16 * 1024 * 1024),
        cost_estimate=cost,
    )(x_flat, conv_w, params["conv_scale"], params["conv_shift"],
      w1, params["mlp_scale1"], params["mlp_shift1"], w2, params["b2"])


def make_params(key, num_out_logits):
    """Deterministic synthetic parameters (not a checkpoint load)."""
    C = 2048
    H1 = 512
    eps = 1e-5
    f32 = jnp.float32
    ks = jax.random.split(key, 12)

    # conv1: weight stored as [Cin, Cout] (torch [Cout, Cin, 1, 1] reshaped+T)
    conv_w = jax.random.normal(ks[0], (C, C), f32) * 0.02
    conv_b = jax.random.normal(ks[1], (C,), f32) * 0.1
    bn1_gamma = 1.0 + 0.1 * jax.random.normal(ks[2], (C,), f32)
    bn1_beta = 0.1 * jax.random.normal(ks[3], (C,), f32)
    bn1_mean = 0.1 * jax.random.normal(ks[4], (C,), f32)
    bn1_var = jnp.abs(1.0 + 0.1 * jax.random.normal(ks[5], (C,), f32))
    conv_scale = bn1_gamma / jnp.sqrt(bn1_var + eps)
    conv_shift = (conv_b - bn1_mean) * conv_scale + bn1_beta

    # mlp linear1 [2048 -> 512] + BN1d(512)
    w1 = jax.random.normal(ks[6], (C, H1), f32) * 0.02
    b1 = jax.random.normal(ks[7], (H1,), f32) * 0.1
    bn2_gamma = 1.0 + 0.1 * jax.random.normal(ks[8], (H1,), f32)
    bn2_beta = 0.1 * jax.random.normal(ks[9], (H1,), f32)
    bn2_mean = 0.1 * jax.random.normal(ks[10], (H1,), f32)
    bn2_var = jnp.abs(1.0 + 0.1 * jax.random.normal(ks[11], (H1,), f32))
    mlp_scale1 = bn2_gamma / jnp.sqrt(bn2_var + eps)
    mlp_shift1 = (b1 - bn2_mean) * mlp_scale1 + bn2_beta

    # mlp linear2 [512 -> num_out_logits]
    k2a, k2b = jax.random.split(jax.random.fold_in(key, 99))
    w2 = jax.random.normal(k2a, (H1, num_out_logits), f32) * 0.05
    b2 = jax.random.normal(k2b, (num_out_logits,), f32) * 0.1

    return {
        # Big streamed weights in bf16 (f32 accumulation inside the kernel).
        "conv_w": conv_w.astype(jnp.bfloat16),
        "conv_scale": conv_scale.reshape(1, C),
        "conv_shift": conv_shift.reshape(1, C),
        "w1": w1.astype(jnp.bfloat16),
        "mlp_scale1": mlp_scale1.reshape(1, H1),
        "mlp_shift1": mlp_shift1.reshape(1, H1),
        "w2": w2,
        "b2": b2.reshape(1, num_out_logits),
    }


def reference_forward(x_nchw, params):
    """Pure-JAX reference with identical math (bf16 inputs/weights, f32 acc)."""
    B, C, H, W = x_nchw.shape
    x = jnp.transpose(x_nchw, (0, 2, 3, 1)).reshape(B * H * W, C).astype(
        jnp.bfloat16)
    y = jnp.dot(x, params["conv_w"], preferred_element_type=jnp.float32)
    y = y * params["conv_scale"] + params["conv_shift"]
    y = jnp.maximum(y, 0.0)
    pooled = jnp.mean(y.reshape(B, H * W, C), axis=1)
    h = jnp.dot(pooled.astype(jnp.bfloat16), params["w1"],
                preferred_element_type=jnp.float32)
    h = h * params["mlp_scale1"] + params["mlp_shift1"]
    h = jnp.maximum(h, 0.0)
    o = jnp.dot(h, params["w2"], preferred_element_type=jnp.float32) + params["b2"]
    return jax.nn.sigmoid(o)


if __name__ == "__main__":
    B, C, H, W = 2, 2048, 4, 4   # channels fixed at 2048 by the module
    NUM_OUT_LOGITS = 16

    key = jax.random.PRNGKey(0)
    kx, kp = jax.random.split(key)
    x = jax.random.normal(kx, (B, C, H, W), jnp.float32)
    params = make_params(kp, NUM_OUT_LOGITS)

    out = bottleneck_classifier_forward(x, params)
    out = jax.block_until_ready(out)

    ref = jax.block_until_ready(reference_forward(x, params))
    assert out.shape == (B, NUM_OUT_LOGITS), out.shape
    assert jnp.allclose(out, ref, atol=2e-3, rtol=2e-3), \
        float(jnp.max(jnp.abs(out - ref)))

    print("KERNEL_OK")
</pallas_src>

<mosaic_0001>
module attributes {stable_mosaic.version = 11 : i64} {
  func.func @fused_bottleneck_kernel(%arg0: i32, %arg1: memref<32x2048xbf16, #tpu.memory_space<vmem>>, %arg2: memref<2048x512xbf16, #tpu.memory_space<vmem>>, %arg3: memref<1x512xf32, #tpu.memory_space<vmem>>, %arg4: memref<1x512xf32, #tpu.memory_space<vmem>>, %arg5: memref<512x512xbf16, #tpu.memory_space<vmem>>, %arg6: memref<1x512xf32, #tpu.memory_space<vmem>>, %arg7: memref<1x512xf32, #tpu.memory_space<vmem>>, %arg8: memref<512x16xf32, #tpu.memory_space<vmem>>, %arg9: memref<1x16xf32, #tpu.memory_space<vmem>>, %arg10: memref<2x16xf32, #tpu.memory_space<vmem>>, %arg11: memref<2x512xf32, #tpu.memory_space<vmem>>) attributes {dimension_semantics = [#tpu.dimension_semantics<arbitrary>], iteration_bounds = array<i64: 4>, scalar_prefetch = 0 : i64, scratch_operands = 1 : i64, tpu.core_type = #tpu.core_type<tc>, window_params = [{pipeline_mode = #tpu.pipeline_mode<synchronous>, transform_indices = @transform_0, window_bounds = array<i64: 32, 2048>}, {transform_indices = @transform_1, window_bounds = array<i64: 2048, 512>}, {transform_indices = @transform_2, window_bounds = array<i64: 1, 512>}, {transform_indices = @transform_3, window_bounds = array<i64: 1, 512>}, {transform_indices = @transform_4, window_bounds = array<i64: 512, 512>}, {pipeline_mode = #tpu.pipeline_mode<synchronous>, transform_indices = @transform_5, window_bounds = array<i64: 1, 512>}, {pipeline_mode = #tpu.pipeline_mode<synchronous>, transform_indices = @transform_6, window_bounds = array<i64: 1, 512>}, {pipeline_mode = #tpu.pipeline_mode<synchronous>, transform_indices = @transform_7, window_bounds = array<i64: 512, 16>}, {pipeline_mode = #tpu.pipeline_mode<synchronous>, transform_indices = @transform_8, window_bounds = array<i64: 1, 16>}, {pipeline_mode = #tpu.pipeline_mode<synchronous>, transform_indices = @transform_9, window_bounds = array<i64: 2, 16>}]} {
    %c0_i32 = arith.constant 0 : i32
    %0 = arith.cmpi eq, %arg0, %c0_i32 : i32
    %1 = arith.extui %0 : i1 to i32
    %c0_i32_0 = arith.constant 0 : i32
    %2 = arith.cmpi ne, %1, %c0_i32_0 : i32
    scf.if %2 {
      %cst_19 = arith.constant 0.000000e+00 : f32
      %27 = vector.broadcast %cst_19 : f32 to vector<2x512xf32>
      %c0_20 = arith.constant 0 : index
      %c0_21 = arith.constant 0 : index
      %28 = vector.load %arg11[%c0_20, %c0_21] : memref<2x512xf32, #tpu.memory_space<vmem>>, vector<2x512xf32>
      tpu.vector_store %arg11[%c0_20, %c0_21], %27 {strides = array<i32>} : memref<2x512xf32, #tpu.memory_space<vmem>>, vector<2x512xf32>,
    } else {
    }
    %c0 = arith.constant 0 : index
    %c0_1 = arith.constant 0 : index
    %3 = vector.load %arg1[%c0, %c0_1] : memref<32x2048xbf16, #tpu.memory_space<vmem>>, vector<32x2048xbf16>
    %c0_2 = arith.constant 0 : index
    %c0_3 = arith.constant 0 : index
    %4 = vector.load %arg2[%c0_2, %c0_3] : memref<2048x512xbf16, #tpu.memory_space<vmem>>, vector<2048x512xbf16>
    %cst = arith.constant dense<0.000000e+00> : vector<32x512xf32>
    %5 = tpu.matmul %3, %4, %cst {dimension_numbers = #tpu.dot_dimension_numbers<[1], [0], [0], [1], [0, 0, 1, 1], [], []>} : vector<32x2048xbf16>, vector<2048x512xbf16>, vector<32x512xf32> -> vector<32x512xf32>
    %c0_4 = arith.constant 0 : index
    %c0_5 = arith.constant 0 : index
    %6 = vector.load %arg3[%c0_4, %c0_5] : memref<1x512xf32, #tpu.memory_space<vmem>>, vector<1x512xf32>
    %7 = vector.broadcast %6 : vector<1x512xf32> to vector<32x512xf32>
    %8 = arith.mulf %5, %7 : vector<32x512xf32>
    %c0_6 = arith.constant 0 : index
    %c0_7 = arith.constant 0 : index
    %9 = vector.load %arg4[%c0_6, %c0_7] : memref<1x512xf32, #tpu.memory_space<vmem>>, vector<1x512xf32>
    %10 = vector.broadcast %9 : vector<1x512xf32> to vector<32x512xf32>
    %11 = arith.addf %8, %10 : vector<32x512xf32>
    %cst_8 = arith.constant 0.000000e+00 : f32
    %12 = vector.broadcast %cst_8 : f32 to vector<32x512xf32>
    %13 = arith.maximumf %11, %12 : vector<32x512xf32>
    %14 = vector.shape_cast %13 : vector<32x512xf32> to vector<2x16x512xf32>
    %cst_9 = arith.constant dense<0.000000e+00> : vector<2x512xf32>
    %15 = vector.multi_reduction <add>, %14, %cst_9 [1] : vector<2x16x512xf32> to vector<2x512xf32>
    %cst_10 = arith.constant 1.600000e+01 : f32
    %16 = vector.broadcast %cst_10 : f32 to vector<2x512xf32>
    %17 = arith.divf %15, %16 : vector<2x512xf32>
    %c0_11 = arith.constant 0 : index
    %c0_12 = arith.constant 0 : index
    %18 = vector.load %arg11[%c0_11, %c0_12] : memref<2x512xf32, #tpu.memory_space<vmem>>, vector<2x512xf32>
    %19 = arith.truncf %17 : vector<2x512xf32> to vector<2x512xbf16>
    %c0_13 = arith.constant 0 : index
    %c0_14 = arith.constant 0 : index
    %20 = vector.load %arg5[%c0_13, %c0_14] : memref<512x512xbf16, #tpu.memory_space<vmem>>, vector<512x512xbf16>
    %cst_15 = arith.constant dense<0.000000e+00> : vector<2x512xf32>
    %21 = tpu.matmul %19, %20, %cst_15 {dimension_numbers = #tpu.dot_dimension_numbers<[1], [0], [0], [1], [0, 0, 1, 1], [], []>} : vector<2x512xbf16>, vector<512x512xbf16>, vector<2x512xf32> -> vector<2x512xf32>
    %22 = arith.addf %18, %21 : vector<2x512xf32>
    %c0_16 = arith.constant 0 : index
    %c0_17 = arith.constant 0 : index
    %23 = vector.load %arg11[%c0_16, %c0_17] : memref<2x512xf32, #tpu.memory_space<vmem>>, vector<2x512xf32>
    tpu.vector_store %arg11[%c0_16, %c0_17], %22 {strides = array<i32>} : memref<2x512xf32, #tpu.memory_space<vmem>>, vector<2x512xf32>,
    %c3_i32 = arith.constant 3 : i32
    %24 = arith.cmpi eq, %arg0, %c3_i32 : i32
    %25 = arith.extui %24 : i1 to i32
    %c0_i32_18 = arith.constant 0 : i32
    %26 = arith.cmpi ne, %25, %c0_i32_18 : i32
    scf.if %26 {
      %c0_19 = arith.constant 0 : index
      %c0_20 = arith.constant 0 : index
      %27 = vector.load %arg11[%c0_19, %c0_20] : memref<2x512xf32, #tpu.memory_space<vmem>>, vector<2x512xf32>
      %c0_21 = arith.constant 0 : index
      %c0_22 = arith.constant 0 : index
      %28 = vector.load %arg6[%c0_21, %c0_22] : memref<1x512xf32, #tpu.memory_space<vmem>>, vector<1x512xf32>
      %29 = vector.broadcast %28 : vector<1x512xf32> to vector<2x512xf32>
      %30 = arith.mulf %27, %29 : vector<2x512xf32>
      %c0_23 = arith.constant 0 : index
      %c0_24 = arith.constant 0 : index
      %31 = vector.load %arg7[%c0_23, %c0_24] : memref<1x512xf32, #tpu.memory_space<vmem>>, vector<1x512xf32>
      %32 = vector.broadcast %31 : vector<1x512xf32> to vector<2x512xf32>
      %33 = arith.addf %30, %32 : vector<2x512xf32>
      %cst_25 = arith.constant 0.000000e+00 : f32
      %34 = vector.broadcast %cst_25 : f32 to vector<2x512xf32>
      %35 = arith.maximumf %33, %34 : vector<2x512xf32>
      %c0_26 = arith.constant 0 : index
      %c0_27 = arith.constant 0 : index
      %36 = vector.load %arg8[%c0_26, %c0_27] : memref<512x16xf32, #tpu.memory_space<vmem>>, vector<512x16xf32>
      %cst_28 = arith.constant dense<0.000000e+00> : vector<2x16xf32>
      %37 = tpu.matmul %35, %36, %cst_28 {dimension_numbers = #tpu.dot_dimension_numbers<[1], [0], [0], [1], [0, 0, 1, 1], [], []>} : vector<2x512xf32>, vector<512x16xf32>, vector<2x16xf32> -> vector<2x16xf32>
      %c0_29 = arith.constant 0 : index
      %c0_30 = arith.constant 0 : index
      %38 = vector.load %arg9[%c0_29, %c0_30] : memref<1x16xf32, #tpu.memory_space<vmem>>, vector<1x16xf32>
      %39 = vector.broadcast %38 : vector<1x16xf32> to vector<2x16xf32>
      %40 = arith.addf %37, %39 : vector<2x16xf32>
      %41 = arith.negf %40 : vector<2x16xf32>
      %42 = math.exp %41 : vector<2x16xf32>
      %cst_31 = arith.constant 1.000000e+00 : f32
      %43 = vector.broadcast %cst_31 : f32 to vector<2x16xf32>
      %44 = arith.addf %43, %42 : vector<2x16xf32>
      %45 = arith.divf %43, %44 : vector<2x16xf32>
      %c0_32 = arith.constant 0 : index
      %c0_33 = arith.constant 0 : index
      %46 = vector.load %arg10[%c0_32, %c0_33] : memref<2x16xf32, #tpu.memory_space<vmem>>, vector<2x16xf32>
      tpu.vector_store %arg10[%c0_32, %c0_33], %45 {strides = array<i32>} : memref<2x16xf32, #tpu.memory_space<vmem>>, vector<2x16xf32>,
    } else {
    }
    return
  }
  func.func @transform_0(%arg0: i32) -> (i32, i32) {
    %c0_i32 = arith.constant 0 : i32
    %c0_i32_0 = arith.constant 0 : i32
    %c0_i32_1 = arith.constant 0 : i32
    return %c0_i32, %c0_i32_0 : i32, i32
  }
  func.func @transform_1(%arg0: i32) -> (i32, i32) {
    %c0_i32 = arith.constant 0 : i32
    %c0_i32_0 = arith.constant 0 : i32
    return %c0_i32, %arg0 : i32, i32
  }
  func.func @transform_2(%arg0: i32) -> (i32, i32) {
    %c0_i32 = arith.constant 0 : i32
    %c0_i32_0 = arith.constant 0 : i32
    return %c0_i32, %arg0 : i32, i32
  }
  func.func @transform_3(%arg0: i32) -> (i32, i32) {
    %c0_i32 = arith.constant 0 : i32
    %c0_i32_0 = arith.constant 0 : i32
    return %c0_i32, %arg0 : i32, i32
  }
  func.func @transform_4(%arg0: i32) -> (i32, i32) {
    %c0_i32 = arith.constant 0 : i32
    %c0_i32_0 = arith.constant 0 : i32
    return %arg0, %c0_i32 : i32, i32
  }
  func.func @transform_5(%arg0: i32) -> (i32, i32) {
    %c0_i32 = arith.constant 0 : i32
    %c0_i32_0 = arith.constant 0 : i32
    %c0_i32_1 = arith.constant 0 : i32
    return %c0_i32, %c0_i32_0 : i32, i32
  }
  func.func @transform_6(%arg0: i32) -> (i32, i32) {
    %c0_i32 = arith.constant 0 : i32
    %c0_i32_0 = arith.constant 0 : i32
    %c0_i32_1 = arith.constant 0 : i32
    return %c0_i32, %c0_i32_0 : i32, i32
  }
  func.func @transform_7(%arg0: i32) -> (i32, i32) {
    %c0_i32 = arith.constant 0 : i32
    %c0_i32_0 = arith.constant 0 : i32
    %c0_i32_1 = arith.constant 0 : i32
    return %c0_i32, %c0_i32_0 : i32, i32
  }
  func.func @transform_8(%arg0: i32) -> (i32, i32) {
    %c0_i32 = arith.constant 0 : i32
    %c0_i32_0 = arith.constant 0 : i32
    %c0_i32_1 = arith.constant 0 : i32
    return %c0_i32, %c0_i32_0 : i32, i32
  }
  func.func @transform_9(%arg0: i32) -> (i32, i32) {
    %c0_i32 = arith.constant 0 : i32
    %c0_i32_0 = arith.constant 0 : i32
    %c0_i32_1 = arith.constant 0 : i32
    return %c0_i32, %c0_i32_0 : i32, i32
  }
}

</mosaic_0001>

<bundles_post_ra>
// kernel: tpu_custom_call.1
= control target key start
LH: loop header
LB: loop body
LE: loop exit
PB: predicated region body
PF: predicated region fallthrough
CT: control target
= control target key end

     0   :  { %s10010_s0 = inlined_call_operand.hbm [shape: bf16[32,2048], index: 0, kind: input, shape index: {}]   ;;  %s10011_s1 = inlined_call_operand.hbm [shape: bf16[2048,2048], index: 1, kind: input, shape index: {}]   ;;  %s10012_s2 = inlined_call_operand.hbm [shape: f32[1,2048], index: 2, kind: input, shape index: {}]   ;;  %s10013_s3 = inlined_call_operand.hbm [shape: f32[1,2048], index: 3, kind: input, shape index: {}]   ;;  %s10014_s4 = inlined_call_operand.hbm [shape: bf16[2048,512], index: 4, kind: input, shape index: {}]   ;;  %s10015_s5 = inlined_call_operand.hbm [shape: f32[1,512], index: 5, kind: input, shape index: {}]   ;;  %s10016_s6 = inlined_call_operand.hbm [shape: f32[1,512], index: 6, kind: input, shape index: {}]   ;;  %s10017_s7 = inlined_call_operand.vmem [shape: f32[512,16], index: 7, kind: input, shape index: {}]   ;;  %s10018_s8 = inlined_call_operand.hbm [shape: f32[1,16], index: 8, kind: input, shape index: {}]   ;;  %s10019_s9 = inlined_call_operand.hbm [shape: f32[2,16], index: 9, kind: output, shape index: {}]  }
   0x1   :  { %10037 = sst [smem:[#allocation28_spill]] %s10011_s1 }
   0x2   :  { %10038 = sst [smem:[#allocation29_spill]] %s10015_s5 }
   0x3   :  { %10039 = sst [smem:[#allocation30_spill]] %s10017_s7 }
   0x4   :  { %10040 = sst [smem:[#allocation31_spill]] %s10019_s9 }
   0x5   :  { %14 = vsyncpa [#allocation4], 0 }
   0x6   :  { %15 = vsyncpa [#allocation7], 0 }
   0x7   :  { %17 = vsyncpa [#allocation7 + $0x1], 0 }
   0x8   :  { %18 = vsyncpa [#allocation10], 0 }
   0x9   :  { %20 = vsyncpa [#allocation10 + $0x1], 0 }
   0xa   :  { %21 = vsyncpa [#allocation13], 0 }
   0xb   :  { %22 = vsyncpa [#allocation16], 0 }
   0xc   :  { %23 = vsyncpa [#allocation5], 0  ;;  %s8476_s30 = smov 0   ;;  %s8478_s10 = smov 0  }
   0xd   :  { %s8480_s11 = smov 0   ;;  %s8482_s12 = smov 0  }
   0xe LB: > { %10041 = sst [smem:[#allocation24_spill]] %s8405_s11  ;;  %s8495_s13 = sadd.s32 4294967295, %s8409_s12   ;;  %s8409_s12 = sphi %s8482_s12, %s10076_s12   ;;  %s8405_s11 = sphi %s8480_s11, %s10078_s11   ;;  %s8401_s10 = sphi %s8478_s10, %s10080_s10   ;;  %s8397_s30 = sphi %s8476_s30, %s10079_s30  }
   0xf   : > { %p70_p0 = scmp.ne.s32.totalorder %s8401_s10, %s8397_s30  ;;  %p10021_p1 = scmp.eq.s32.totalorder %s8495_s13, 0 }
  0x10   : > { %p6258_p2 = scmp.ge.s32.totalorder %s8409_s12, 1  ;;  %p264_p3 = scmp.lt.s32.totalorder %s8409_s12, 5 }
  0x11   : > { %p8504_p5 = por %p10021_p1, %p70_p0  ;;  %s8411_s16 = smov [#allocation12]  }
  0x12   : > { %p8508_p6 = pnand %p6258_p2, %p264_p3  ;;  %s290_s17 = sshll.u32 %s8411_s16, 4  ;;  %s291_s17 = int_to_ptr.vmem [resolvable:$true] %s290_s17 }
  0x13   : > { %s10042_s14 = scalar_select %p8504_p5, 1, 0 }
  0x14   : > { %s10044_s15 = scalar_select %p8508_p6, 1, 0 }
  0x15   : > { %10043 = sst [smem:[#allocation25_spill]] %s10042_s14  ;;  %p7069_p7 = pneg %p8508_p6 }
  0x16   : > { %s8515_s18 = sadd.s32 1, %s8409_s12   ;;  %s57_s22 = sadd.s32 1, %s8405_s11 }
  0x17   : > { %10045 = sst [smem:[#allocation26_spill]] %s8515_s18  ;;  %p8519_p8 = pnand %p7069_p7, %p10021_p1 }
  0x18   : > { %s54_s20 = ssub.s32 %s8409_s12, %s8515_s18  ;;  %p64_p10 = scmp.ne.s32.totalorder %s8405_s11, %s8401_s10 }
  0x19   : > { %s10046_s19 = scalar_select %p8519_p8, 1, 0 }
  0x1a   : > { %p8525_p9 = scmp.eq.s32.totalorder %s54_s20, 0  ;;  %p10022_p11 = pneg %p8519_p8 }
  0x1b   : > { %s8126_s23 = scalar_lea.vmem %s291_s17, 64  ;;  %p8134_p2 = scmp.lt.s32.totalorder %s291_s17, %s291_s17 }
  0x1c   : > { %p8127_p12 = scmp.ne.s32.totalorder %s291_s17, %s8126_s23  ;;  %p8135_p3 = scmp.lt.s32.totalorder %s8126_s23, %s8126_s23 }
  0x1e   : > { %p8129_p13 = pnand %p8127_p12, %p10022_p11  ;;  %p8136_p7 = por %p8135_p3, %p8134_p2 }
  0x20   : > { %p8130_p0 = pneg %p8129_p13 }
  0x22   : > { %p8137_p4 = pnand %p8136_p7, %p8130_p0 }
  0x24   : > { %8140 = shalt.err (!%p8137_p4)
}
  0x25   : > { %s10048_s5 = sld [smem:[#allocation29_spill]]  ;;  %p65_p4 = scmp.eq.s32.totalorder %s8409_s12, 0 }
  0x26   : > { %s8545_s26 = scalar_select %p8525_p9, %s8405_s11, %s57_s22  }
  0x27   : > { %p7099_p12 = scmp.lt.s32.totalorder %s8409_s12, 4  ;;  %s10020_s27 = sand.u32 1, %s8409_s12  }
  0x28   : > { %10049 = sst [smem:[#allocation27_spill]] %s8545_s26  ;;  %p66_p13 = por %p65_p4, %p64_p10 }
  0x29   : > { %s8554_s28 = sand.u32 1, %s8405_s11   ;;  %s6966_s29 = sshll.u32 %s8409_s12, 8 }
  0x2a   : > { %s6264_s30 = sshll.u32 %s8554_s28, 12  ;;  %s10050_s1 = sld [smem:[#allocation28_spill]] }
  0x2b   : > { %7075 = dma.hbm_to_vmem [thread:$0]  (!%p8519_p8), %s10048_s5, 64, %s291_s17, [#allocation13]  }
  0x2c   : > { %p8563_p9 = pnand %p7099_p12, %p66_p13  ;;  %s330_s21 = scalar_lea.vmem [#allocation6], %s6264_s30 }
  0x2d   : > { %s337_s22 = sshll.u32 %s330_s21, 4  ;;  %s8572_s25 = scalar_lea.sflag [#allocation7], %s10020_s27  ;;  %s8567_s22 = int_to_ptr.vmem [resolvable:$true] %s337_s22 }
  0x2e   : > { %p8578_p0 = pneg %p8563_p9 }
  0x30   : > { %s8561_s23 = scalar_lea.hbm %s10050_s1, %s6966_s29  ;;  %s8146_s20 = scalar_lea.hbm %s10050_s1, 262144 }
  0x31   : > { %s8141_s5 = scalar_lea.hbm %s8561_s23, 65536  ;;  %p8147_p7 = scmp.lt.s32.totalorder %s8561_s23, %s10050_s1 }
  0x32   : > { %p8142_p10 = scmp.ne.s32.totalorder %s8561_s23, %s8141_s5  ;;  %p8148_p4 = scmp.lt.s32.totalorder %s8146_s20, %s8141_s5 }
  0x33   : > { %s10052_s29 = scalar_select %p8578_p0, 1, 0 }
  0x34   : > { %p8144_p2 = pnand %p8578_p0, %p8142_p10  ;;  %p8149_p12 = por %p8148_p4, %p8147_p7 }
  0x36   : > { %p8145_p3 = pneg %p8144_p2 }
  0x38   : > { %p8150_p13 = pnand %p8149_p12, %p8145_p3 }
  0x3a   : > { %8153 = shalt.err (!%p8150_p13)
}
  0x3b   : > { %s8154_s27 = scalar_lea.vmem %s8567_s22, 65536  ;;  %s8412_s26 = smov [#allocation6]  }
  0x3c   : > { %p8155_p1 = scmp.ne.s32.totalorder %s8567_s22, %s8154_s27  ;;  %s8159_s16 = sshll.u32 %s8412_s26, 4  ;;  %s8160_s16 = int_to_ptr.vmem [resolvable:$false] %s8159_s16 }
  0x3d   : > { %s8161_s30 = scalar_lea.vmem %s8160_s16, 131072  ;;  %p8162_p11 = scmp.lt.s32.totalorder %s8567_s22, %s8160_s16 }
  0x3e   : > { %p8157_p10 = pnand %p8155_p1, %p8578_p0  ;;  %p8163_p5 = scmp.lt.s32.totalorder %s8161_s30, %s8154_s27 }
  0x40   : > { %p8158_p2 = pneg %p8157_p10  ;;  %p8164_p6 = por %p8163_p5, %p8162_p11 }
  0x42   : > { %p8165_p8 = pnand %p8164_p6, %p8158_p2 }
  0x44   : > { %8168 = shalt.err (!%p8165_p8)
}
  0x45   : > { %s8413_s5 = smov 1024   ;;  %s10033_s24 = smov 256  }
  0x46   : > { %s10034_s20 = smov 16   ;;  %s6967_s26 = sshll.u32 %s8409_s12, 6 }
  0x47   : > { %7085 = dma.hbm_to_vmem [thread:$0]  (!%p8563_p9), %s8561_s23, 65536, %s8567_s22, %s8572_s25, %s8413_s5, %s10033_s24, %s10034_s20  }
  0x48   : > { %s8608_s16 = scalar_lea.hbm %s10012_s2, %s6967_s26  ;;  %s8613_s11 = scalar_lea.hbm %s10013_s3, %s6967_s26 }
  0x49   : > { %s10053_s18 = sshll.u32 %s8554_s28, 2  ;;  %s8416_s14 = smov [#allocation3]  }
  0x4a   : > { %s370_s9 = scalar_lea.vmem [#allocation9], %s10053_s18  ;;  %s276_s23 = sshll.u32 %s8416_s14, 4  ;;  %s277_s23 = int_to_ptr.vmem [resolvable:$true] %s276_s23 }
  0x4b   : > { %s378_s7 = sshll.u32 %s370_s9, 4  ;;  %s10054_s22 = sand.u32 1, %s8409_s12   ;;  %s379_s7 = int_to_ptr.vmem [resolvable:$true] %s378_s7 }
  0x4c   : > { %s8619_s24 = scalar_lea.sflag [#allocation10], %s10054_s22  ;;  %s8169_s27 = scalar_lea.hbm %s8613_s11, 64 }
  0x4d   : > { %p8170_p1 = scmp.ne.s32.totalorder %s8613_s11, %s8169_s27  ;;  %s8174_s21 = scalar_lea.hbm %s10013_s3, 256 }
  0x4e   : > { %p8175_p8 = scmp.lt.s32.totalorder %s8613_s11, %s10013_s3  ;;  %p8176_p11 = scmp.lt.s32.totalorder %s8174_s21, %s8169_s27 }
  0x4f   : > { %p8172_p5 = pnand %p8170_p1, %p8578_p0 }
  0x50   : > { %p8177_p3 = por %p8176_p11, %p8175_p8 }
  0x51   : > { %p8173_p6 = pneg %p8172_p5 }
  0x53   : > { %p8178_p7 = pnand %p8177_p3, %p8173_p6 }
  0x55   : > { %8181 = shalt.err (!%p8178_p7)
}
  0x56   : > { %s8182_s9 = scalar_lea.vmem %s379_s7, 64  ;;  %s8417_s14 = smov [#allocation9]  }
  0x57   : > { %p8183_p4 = scmp.ne.s32.totalorder %s379_s7, %s8182_s9  ;;  %s8187_s18 = sshll.u32 %s8417_s14, 4  ;;  %s8188_s18 = int_to_ptr.vmem [resolvable:$false] %s8187_s18 }
  0x58   : > { %s8189_s22 = scalar_lea.vmem %s8188_s18, 128  ;;  %p8190_p10 = scmp.lt.s32.totalorder %s379_s7, %s8188_s18 }
  0x59   : > { %p8185_p12 = pnand %p8183_p4, %p8578_p0  ;;  %p8191_p2 = scmp.lt.s32.totalorder %s8189_s22, %s8182_s9 }
  0x5b   : > { %p8186_p13 = pneg %p8185_p12  ;;  %p8192_p1 = por %p8191_p2, %p8190_p10 }
  0x5d   : > { %p8193_p5 = pnand %p8192_p1, %p8186_p13 }
  0x5f   : > { %8196 = shalt.err (!%p8193_p5)
}
  0x60   : > { %7091 = dma.hbm_to_vmem [thread:$0]  (!%p8563_p9), %s8613_s11, 64, %s379_s7, %s8619_s24  }
  0x61   : > { %s8208_s20 = scalar_lea.vmem %s277_s23, 4096  ;;  %p10055_p8 = scmp.ne.s32.totalorder %s10046_s19, 0 }
  0x62   : > { %p8209_p6 = scmp.ne.s32.totalorder %s277_s23, %s8208_s20  ;;  %p8216_p4 = scmp.lt.s32.totalorder %s277_s23, %s277_s23 }
  0x63   : > { %p10056_p11 = pneg %p10055_p8  ;;  %p8217_p12 = scmp.lt.s32.totalorder %s8208_s20, %s8208_s20 }
  0x65   : > { %p8211_p3 = pnand %p8209_p6, %p10056_p11  ;;  %p8218_p0 = por %p8217_p12, %p8216_p4 }
  0x67   : > { %p8212_p7 = pneg %p8211_p3 }
  0x69   : > { %p8219_p2 = pnand %p8218_p0, %p8212_p7 }
  0x6b   : > { %8222 = shalt.err (!%p8219_p2)
}
  0x6c   : > { %s8418_s27 = smov 64   ;;  %s8419_s7 = smov [#allocation14]  }
  0x6d   : > { %7072 = dma.hbm_to_vmem [thread:$0]  (!%p10055_p8), %s10010_s0, 4096, %s277_s23, [#allocation4], %s8413_s5, %s8413_s5, %s8418_s27  }
  0x6e   : > { %s301_s11 = sshll.u32 %s8419_s7, 4  ;;  %s8420_s21 = smov [#allocation15]   ;;  %s302_s11 = int_to_ptr.vmem [resolvable:$true] %s301_s11 }
  0x6f   : > { %s315_s30 = sshll.u32 %s8420_s21, 4  ;;  %s8234_s9 = scalar_lea.vmem %s302_s11, 64  ;;  %s316_s30 = int_to_ptr.vmem [resolvable:$true] %s315_s30 }
  0x70   : > { %p8235_p13 = scmp.ne.s32.totalorder %s302_s11, %s8234_s9  ;;  %p10057_p0 = pmov %p10056_p11 }
  0x71   : > { %p8242_p5 = scmp.lt.s32.totalorder %s302_s11, %s302_s11  ;;  %p8243_p6 = scmp.lt.s32.totalorder %s8234_s9, %s8234_s9 }
  0x72   : > { %p8237_p10 = pnand %p8235_p13, %p10057_p0 }
  0x73   : > { %p8244_p11 = por %p8243_p6, %p8242_p5 }
  0x74   : > { %p8238_p1 = pneg %p8237_p10 }
  0x76   : > { %p8245_p3 = pnand %p8244_p11, %p8238_p1 }
  0x78   : > { %8248 = shalt.err (!%p8245_p3)
}
  0x79   : > { %7078 = dma.hbm_to_vmem [thread:$0]  (!%p10055_p8), %s10016_s6, 64, %s302_s11, [#allocation13]  }
  0x7a   : > { %s8260_s14 = scalar_lea.vmem %s316_s30, 16  ;;  %p10058_p4 = pmov %p10057_p0 }
  0x7b   : > { %p8261_p7 = scmp.ne.s32.totalorder %s316_s30, %s8260_s14  ;;  %s8267_s18 = scalar_lea.vmem %s316_s30, 32 }
  0x7c   : > { %p8268_p13 = scmp.lt.s32.totalorder %s316_s30, %s316_s30  ;;  %p8269_p0 = scmp.lt.s32.totalorder %s8267_s18, %s8260_s14 }
  0x7d   : > { %p8263_p12 = pnand %p8261_p7, %p10058_p4 }
  0x7e   : > { %p8270_p10 = por %p8269_p0, %p8268_p13 }
  0x7f   : > { %p8264_p2 = pneg %p8263_p12 }
  0x81   : > { %p8271_p5 = pnand %p8270_p10, %p8264_p2 }
  0x83   : > { %8274 = shalt.err (!%p8271_p5)
}
  0x84   : > { %7081 = dma.hbm_to_vmem [thread:$0]  (!%p10055_p8), %s10018_s8, 16, %s316_s30, [#allocation16]  }
  0x85   : > { %s10059_s27 = sshll.u32 %s8554_s28, 2  ;;  %s6273_s7 = sshll.u32 %s8554_s28, 10 }
  0x86   : > { %s351_s1 = scalar_lea.vmem [#allocation8], %s10059_s27  ;;  %s8275_s11 = scalar_lea.hbm %s8608_s16, 64 }
  0x87   : > { %s359_s26 = sshll.u32 %s351_s1, 4  ;;  %p8276_p1 = scmp.ne.s32.totalorder %s8608_s16, %s8275_s11  ;;  %s360_s26 = int_to_ptr.vmem [resolvable:$true] %s359_s26 }
  0x88   : > { %p10060_p6 = scmp.ne.s32.totalorder %s10052_s29, 0  ;;  %s8280_s9 = scalar_lea.hbm %s10012_s2, 256 }
  0x89   : > { %p8281_p7 = scmp.lt.s32.totalorder %s8608_s16, %s10012_s2  ;;  %p8282_p4 = scmp.lt.s32.totalorder %s8280_s9, %s8275_s11 }
  0x8a   : > { %p8278_p11 = pnand %p8276_p1, %p10060_p6 }
  0x8b   : > { %p8283_p8 = por %p8282_p4, %p8281_p7 }
  0x8c   : > { %p8279_p3 = pneg %p8278_p11 }
  0x8e   : > { %p8284_p12 = pnand %p8283_p8, %p8279_p3 }
  0x90   : > { %8287 = shalt.err (!%p8284_p12)
}
  0x91   : > { %s8288_s30 = scalar_lea.vmem %s360_s26, 64  ;;  %s8421_s28 = smov [#allocation8]  }
  0x92   : > { %p8289_p2 = scmp.ne.s32.totalorder %s360_s26, %s8288_s30  ;;  %s8293_s14 = sshll.u32 %s8421_s28, 4  ;;  %s8294_s14 = int_to_ptr.vmem [resolvable:$false] %s8293_s14 }
  0x93   : > { %s8295_s18 = scalar_lea.vmem %s8294_s14, 128  ;;  %p8296_p10 = scmp.lt.s32.totalorder %s360_s26, %s8294_s14 }
  0x94   : > { %p8291_p13 = pnand %p8289_p2, %p10060_p6  ;;  %p8297_p5 = scmp.lt.s32.totalorder %s8295_s18, %s8288_s30 }
  0x96   : > { %p8292_p0 = pneg %p8291_p13  ;;  %p8298_p1 = por %p8297_p5, %p8296_p10 }
  0x98   : > { %p8299_p11 = pnand %p8298_p1, %p8292_p0 }
  0x9a   : > { %8302 = shalt.err (!%p8299_p11)
}
  0x9b   : > { %7088 = dma.hbm_to_vmem [thread:$0]  (!%p8563_p9), %s8608_s16, 64, %s360_s26, %s8572_s25  }
  0x9c   : > { %s6970_s22 = sshll.u32 %s8409_s12, 14  ;;  %s389_s20 = scalar_lea.vmem [#allocation11], %s6273_s7 }
  0x9d   : > { %s397_s27 = sshll.u32 %s389_s20, 4  ;;  %s8688_s19 = scalar_lea.hbm %s10014_s4, %s6970_s22  ;;  %s398_s27 = int_to_ptr.vmem [resolvable:$true] %s397_s27 }
  0x9e   : > { %s8303_s21 = scalar_lea.hbm %s8688_s19, 16384  ;;  %s8308_s12 = scalar_lea.hbm %s10014_s4, 65536 }
  0x9f   : > { %p8304_p3 = scmp.ne.s32.totalorder %s8688_s19, %s8303_s21  ;;  %p8309_p8 = scmp.lt.s32.totalorder %s8688_s19, %s10014_s4 }
  0xa0   : > { %p8310_p12 = scmp.lt.s32.totalorder %s8308_s12, %s8303_s21 }
  0xa1   : > { %p8306_p7 = pnand %p8304_p3, %p10060_p6 }
  0xa2   : > { %p8311_p2 = por %p8310_p12, %p8309_p8 }
  0xa3   : > { %p8307_p4 = pneg %p8306_p7 }
  0xa5   : > { %p8312_p13 = pnand %p8311_p2, %p8307_p4 }
  0xa7   : > { %8315 = shalt.err (!%p8312_p13)
}
  0xa8   : > { %s8316_s26 = scalar_lea.vmem %s398_s27, 16384  ;;  %s8422_s7 = smov [#allocation11]  }
  0xa9   : > { %p8317_p0 = scmp.ne.s32.totalorder %s398_s27, %s8316_s26  ;;  %s8321_s23 = sshll.u32 %s8422_s7, 4  ;;  %s8322_s23 = int_to_ptr.vmem [resolvable:$false] %s8321_s23 }
  0xaa   : > { %s8323_s30 = scalar_lea.vmem %s8322_s23, 32768  ;;  %p8324_p1 = scmp.lt.s32.totalorder %s398_s27, %s8322_s23 }
  0xab   : > { %p8319_p10 = pnand %p8317_p0, %p10060_p6  ;;  %p8325_p11 = scmp.lt.s32.totalorder %s8323_s30, %s8316_s26 }
  0xad   : > { %p8320_p5 = pneg %p8319_p10  ;;  %p8326_p3 = por %p8325_p11, %p8324_p1 }
  0xaf   : > { %p8327_p7 = pnand %p8326_p3, %p8320_p5 }
  0xb1   : > { %8330 = shalt.err (!%p8327_p7)
}
  0xb2   : > { %s10061_s28 = smov 16   ;;  %s10062_s14 = smov 256  }
  0xb3   : > { %7094 = dma.hbm_to_vmem [thread:$0]  (!%p8563_p9), %s8688_s19, 16384, %s398_s27, %s8619_s24, %s10062_s14, %s10062_s14, %s10061_s28  }
  0xb4   : > { %p10063_p6 = scmp.ne.s32.totalorder %s10044_s15, 0 }
  0xb5   : > { %p10064_p4 = scmp.eq.s32.totalorder (!%p10063_p6), %s8495_s13, 0 }
  0xb6   : > { %409 = sbr.rel (%p10063_p6) target bundleno = 1533 (0x5fd), region = 56 }
  0xbb   : > { %8372 = dma.done.wait (%p10064_p4), [#allocation4], 4096   ;;  %p10065_p8 = pmov %p10064_p4 }
  0xbc   : > { %s10066_s29 = sld [smem:[#allocation25_spill]]  ;;  %s415_s18 = sand.u32 1, %s8495_s13  }
  0xbd   : > { %8374 = vsyncadd (%p10065_p8), [#allocation4], 4294963200  ;;  %s417_s17 = sand.u32 1, %s8401_s10   ;;  %s416_s20 = scalar_lea.sflag [#allocation7], %s415_s18 }
  0xbe   : > { %s6279_s22 = sshll.u32 %s417_s17, 12 }
  0xbf   : > { %s8718_s1 = scalar_lea.vmem [#allocation6], %s6279_s22 }
  0xc2   : > { %p10067_p12 = scmp.ne.s32.totalorder %s10066_s29, 0 }
  0xc4   : > { %8376 = dma.done.wait (%p10067_p12), %s416_s20, 65600  }
  0xc5   : > { %8378 = vsyncadd (%p10067_p12), %s416_s20, 4294901696  ;;  %s6280_s15 = sshll.u32 %s417_s17, 2  ;;  %s434_s27 = scalar_lea.sflag [#allocation10], %s415_s18 }
  0xc6   : > { %s8724_s24 = scalar_lea.vmem [#allocation8], %s6280_s15  ;;  %s8726_s11 = scalar_lea.vmem [#allocation9], %s6280_s15 }
  0xc7   : > { %8380 = dma.done.wait (%p10067_p12), %s434_s27, 16448  }
  0xc8   : > { %8382 = vsyncadd (%p10067_p12), %s434_s27, 4294950848  ;;  %s6282_s19 = sshll.u32 %s417_s17, 10  ;;  %p10068_p9 = pmov %p10064_p4 }
  0xc9   : > { %s8732_s21 = scalar_lea.vmem [#allocation11], %s6282_s19 }
  0xca   : > { %8384 = dma.done.wait (%p10068_p9), [#allocation13], 128   ;;  %p10069_p2 = pmov %p10064_p4 }
  0xcc   : > { %8386 = vsyncadd (%p10069_p2), [#allocation13], 4294967168  ;;  %p10070_p13 = pmov %p10069_p2 }
  0xcd   : > { %p10071_p0 = pmov %p10069_p2 }
  0xce   : > { %8388 = dma.done.wait (%p10070_p13), [#allocation16], 16  }
  0xcf   : > { %8390 = vsyncadd (%p10071_p0), [#allocation16], 4294967280  ;;  %p10072_p10 = scmp.ne.s32.totalorder %s8495_s13, 0 }
  0xd1   : > { %510 = sbr.rel (%p10072_p10) target bundleno = 216 (0xd8), region = 92 }
  0xd6   : > { %v8423_v0 = vmov 0.0  }
  0xd7   : > { %511 = vst [vmem:[#allocation2] sm:$0xff] %v8423_v0 }
  0xd8 PF: > { %v7149_v1 = vld [vmem:[%s8718_s1 + $0xe4] ss:$16 sps:$4 sm:$0xff]   ;;  %v7153_v3 = vld [vmem:[%s8718_s1 + $0xe0] ss:$16 sps:$4 sm:$0xff]   ;;  %v513_v51 = vld [vmem:[#allocation3 + $0x8] sm:$0xff]  ;;  %vm4934_vm0 = vcmask 1041409  }
  0xd9   : > { %v7151_v2 = vld [vmem:[%s8718_s1 + $0x2e4] ss:$16 sps:$4 sm:$0xff]   ;;  %3776 = vmatprep.subr.bf16.mxu0 %v7149_v1  ;;  %v7154_v4 = vld [vmem:[%s8718_s1 + $0x2e0] ss:$16 sps:$4 sm:$0xff]   ;;  %v521_v52 = vld [vmem:[#allocation3 + $0x48] sm:$0xff]  ;;  %p6959_p5 = scmp.ne.s32.totalorder %s8495_s13, 3 }
  0xda   : > { %3829 = vmatprep.subr.bf16.mxu1 %v7151_v2  ;;  %v7155_v5 = vld [vmem:[%s8718_s1 + $0xc4] ss:$16 sps:$4 sm:$0xff]   ;;  %3777 = vmatpush1.bf16.msra.mxu0 %v7153_v3  ;;  %v7159_v7 = vld [vmem:[%s8718_s1 + $0xc0] ss:$16 sps:$4 sm:$0xff]   ;;  %v8796_v56 = vcombine.high %v513_v51, %v521_v52  ;;  %s10073_s12 = sld [smem:[#allocation30_spill]] (!%p6959_p5) }
  0xdb   : > { %3830 = vmatpush1.bf16.msra.mxu1 %v7154_v4  ;;  %v7157_v6 = vld [vmem:[%s8718_s1 + $0x2c4] ss:$16 sps:$4 sm:$0xff]   ;;  %3778 = vmatprep.subr.bf16.mxu0 %v7155_v5  ;;  %v7160_v8 = vld [vmem:[%s8718_s1 + $0x2c0] ss:$16 sps:$4 sm:$0xff]  }
  0xdc   : > { %3831 = vmatprep.subr.bf16.mxu1 %v7157_v6  ;;  %v7161_v9 = vld [vmem:[%s8718_s1 + $0xa4] ss:$16 sps:$4 sm:$0xff]   ;;  %v7165_v11 = vld [vmem:[%s8718_s1 + $0xa0] ss:$16 sps:$4 sm:$0xff]   ;;  %3861 = vmatprep.mubr.bf16.mxu1 %v8796_v56 }
  0xdd   : > { %v7163_v10 = vld [vmem:[%s8718_s1 + $0x2a4] ss:$16 sps:$4 sm:$0xff]   ;;  %v7166_v12 = vld [vmem:[%s8718_s1 + $0x2a0] ss:$16 sps:$4 sm:$0xff]  }
  0xde   : > { %3779 = vmatpush1.bf16.msra.mxu0 %v7159_v7  ;;  %v7167_v13 = vld [vmem:[%s8718_s1 + $0x84] ss:$16 sps:$4 sm:$0xff]   ;;  %v7171_v15 = vld [vmem:[%s8718_s1 + $0x80] ss:$16 sps:$4 sm:$0xff]  }
  0xdf   : > { %3832 = vmatpush1.bf16.msra.mxu1 %v7160_v8  ;;  %3780 = vmatprep.subr.bf16.mxu0 %v7161_v9  ;;  %v7169_v14 = vld [vmem:[%s8718_s1 + $0x284] ss:$16 sps:$4 sm:$0xff]   ;;  %v7172_v16 = vld [vmem:[%s8718_s1 + $0x280] ss:$16 sps:$4 sm:$0xff]  }
  0xe0   : > { %3833 = vmatprep.subr.bf16.mxu1 %v7163_v10  ;;  %v7173_v17 = vld [vmem:[%s8718_s1 + $0x64] ss:$16 sps:$4 sm:$0xff]   ;;  %v7177_v19 = vld [vmem:[%s8718_s1 + $0x60] ss:$16 sps:$4 sm:$0xff]   ;;  %v8818_v10 = vcombine.low %v513_v51, %v521_v52  ;;  %v8872_v51 = vld [vmem:[#allocation3 + $0x58] sm:$0xff]  ;;  %s10074_s25 = smov (!%p6959_p5), %s10073_s12 }
  0xe1   : > { %v7175_v18 = vld [vmem:[%s8718_s1 + $0x264] ss:$16 sps:$4 sm:$0xff]   ;;  %v7178_v20 = vld [vmem:[%s8718_s1 + $0x260] ss:$16 sps:$4 sm:$0xff]  }
  0xe2   : > { %3781 = vmatpush1.bf16.msra.mxu0 %v7165_v11  ;;  %v7179_v21 = vld [vmem:[%s8718_s1 + $0x44] ss:$16 sps:$4 sm:$0xff]   ;;  %v7183_v23 = vld [vmem:[%s8718_s1 + $0x40] ss:$16 sps:$4 sm:$0xff]  }
  0xe3   : > { %3834 = vmatpush1.bf16.msra.mxu1 %v7166_v12  ;;  %3782 = vmatprep.subr.bf16.mxu0 %v7167_v13  ;;  %v7181_v22 = vld [vmem:[%s8718_s1 + $0x244] ss:$16 sps:$4 sm:$0xff]   ;;  %v7184_v24 = vld [vmem:[%s8718_s1 + $0x240] ss:$16 sps:$4 sm:$0xff]  }
  0xe4   : > { %3835 = vmatprep.subr.bf16.mxu1 %v7169_v14  ;;  %v7185_v25 = vld [vmem:[%s8718_s1 + $0x24] ss:$16 sps:$4 sm:$0xff]   ;;  %v7189_v27 = vld [vmem:[%s8718_s1 + $0x20] ss:$16 sps:$4 sm:$0xff]  }
  0xe5   : > { %v7187_v26 = vld [vmem:[%s8718_s1 + $0x224] ss:$16 sps:$4 sm:$0xff]   ;;  %v7190_v28 = vld [vmem:[%s8718_s1 + $0x220] ss:$16 sps:$4 sm:$0xff]  }
  0xe6   : > { %3783 = vmatpush1.bf16.msra.mxu0 %v7171_v15  ;;  %v7191_v29 = vld [vmem:[%s8718_s1 + $0x4] ss:$16 sps:$4 sm:$0xff]   ;;  %v7195_v31 = vld [vmem:[%s8718_s1] ss:$16 sps:$4 sm:$0xff]  }
  0xe7   : > { %3836 = vmatpush1.bf16.msra.mxu1 %v7172_v16  ;;  %3784 = vmatprep.subr.bf16.mxu0 %v7173_v17  ;;  %v7193_v30 = vld [vmem:[%s8718_s1 + $0x204] ss:$16 sps:$4 sm:$0xff]   ;;  %v7196_v32 = vld [vmem:[%s8718_s1 + $0x200] ss:$16 sps:$4 sm:$0xff]  }
  0xe8   : > { %3837 = vmatprep.subr.bf16.mxu1 %v7175_v18  ;;  %v7197_v33 = vld [vmem:[%s8718_s1 + $0x1e4] ss:$16 sps:$4 sm:$0xff]   ;;  %v7201_v35 = vld [vmem:[%s8718_s1 + $0x1e0] ss:$16 sps:$4 sm:$0xff]  }
  0xe9   : > { %v7199_v34 = vld [vmem:[%s8718_s1 + $0x3e4] ss:$16 sps:$4 sm:$0xff]   ;;  %v7202_v36 = vld [vmem:[%s8718_s1 + $0x3e0] ss:$16 sps:$4 sm:$0xff]  }
  0xea   : > { %3785 = vmatpush1.bf16.msra.mxu0 %v7177_v19  ;;  %v7203_v37 = vld [vmem:[%s8718_s1 + $0x1c4] ss:$16 sps:$4 sm:$0xff]   ;;  %v7207_v39 = vld [vmem:[%s8718_s1 + $0x1c0] ss:$16 sps:$4 sm:$0xff]  }
  0xeb   : > { %3838 = vmatpush1.bf16.msra.mxu1 %v7178_v20  ;;  %3786 = vmatprep.subr.bf16.mxu0 %v7179_v21  ;;  %v7205_v38 = vld [vmem:[%s8718_s1 + $0x3c4] ss:$16 sps:$4 sm:$0xff]   ;;  %v7208_v40 = vld [vmem:[%s8718_s1 + $0x3c0] ss:$16 sps:$4 sm:$0xff]  }
  0xec   : > { %3839 = vmatprep.subr.bf16.mxu1 %v7181_v22  ;;  %v7209_v41 = vld [vmem:[%s8718_s1 + $0x1a4] ss:$16 sps:$4 sm:$0xff]   ;;  %v7213_v43 = vld [vmem:[%s8718_s1 + $0x1a0] ss:$16 sps:$4 sm:$0xff]  }
  0xed   : > { %v7211_v42 = vld [vmem:[%s8718_s1 + $0x3a4] ss:$16 sps:$4 sm:$0xff]   ;;  %v7214_v44 = vld [vmem:[%s8718_s1 + $0x3a0] ss:$16 sps:$4 sm:$0xff]  }
  0xee   : > { %3787 = vmatpush1.bf16.msra.mxu0 %v7183_v23  ;;  %v7215_v45 = vld [vmem:[%s8718_s1 + $0x184] ss:$16 sps:$4 sm:$0xff]   ;;  %v7219_v47 = vld [vmem:[%s8718_s1 + $0x180] ss:$16 sps:$4 sm:$0xff]  }
  0xef   : > { %3840 = vmatpush1.bf16.msra.mxu1 %v7184_v24  ;;  %3788 = vmatprep.subr.bf16.mxu0 %v7185_v25  ;;  %v7217_v46 = vld [vmem:[%s8718_s1 + $0x384] ss:$16 sps:$4 sm:$0xff]   ;;  %v7220_v48 = vld [vmem:[%s8718_s1 + $0x380] ss:$16 sps:$4 sm:$0xff]  }
  0xf0   : > { %3841 = vmatprep.subr.bf16.mxu1 %v7187_v26  ;;  %v512_v49 = vld [vmem:[#allocation3] sm:$0xff] }
  0xf1   : > { %v520_v50 = vld [vmem:[#allocation3 + $0x40] sm:$0xff] }
  0xf2   : > { %3789 = vmatpush1.bf16.msra.mxu0 %v7189_v27  ;;  %v7221_v53 = vld [vmem:[%s8718_s1 + $0x164] ss:$16 sps:$4 sm:$0xff]   ;;  %v8793_v54 = vcombine.high %v512_v49, %v520_v50  ;;  %v7225_v57 = vld [vmem:[%s8718_s1 + $0x160] ss:$16 sps:$4 sm:$0xff]   ;;  %v8816_v9 = vcombine.low %v512_v49, %v520_v50  ;;  %v8866_v49 = vld [vmem:[#allocation3 + $0x18] sm:$0xff] }
  0xf3   : > { %3842 = vmatpush1.bf16.msra.mxu1 %v7190_v28  ;;  %3790 = vmatprep.subr.bf16.mxu0 %v7191_v29  ;;  %v7223_v55 = vld [vmem:[%s8718_s1 + $0x364] ss:$16 sps:$4 sm:$0xff]   ;;  %v7226_v58 = vld [vmem:[%s8718_s1 + $0x360] ss:$16 sps:$4 sm:$0xff]   ;;  %v8876_v52 = vcombine.high %v8866_v49, %v8872_v51 }
  0xf4   : > { %3843 = vmatprep.subr.bf16.mxu1 %v7193_v30  ;;  %3808 = vmatprep.mubr.bf16.mxu0 %v8793_v54  ;;  %v7227_v59 = vld [vmem:[%s8718_s1 + $0x144] ss:$16 sps:$4 sm:$0xff]   ;;  %v7231_v61 = vld [vmem:[%s8718_s1 + $0x140] ss:$16 sps:$4 sm:$0xff]  }
  0xf5   : > { %v7229_v60 = vld [vmem:[%s8718_s1 + $0x344] ss:$16 sps:$4 sm:$0xff]   ;;  %v7232_v62 = vld [vmem:[%s8718_s1 + $0x340] ss:$16 sps:$4 sm:$0xff]  }
  0xf6   : > { %3791 = vmatpush1.bf16.msra.mxu0 %v7195_v31  ;;  %v7233_v63 = vld [vmem:[%s8718_s1 + $0x124] ss:$16 sps:$4 sm:$0xff]   ;;  %v7237_v1 = vld [vmem:[%s8718_s1 + $0x120] ss:$16 sps:$4 sm:$0xff]   ;;  %v529_v31 = vld [vmem:[#allocation3 + $0x88] sm:$0xff] }
  0xf7   : > { %3844 = vmatpush1.bf16.msra.mxu1 %v7196_v32  ;;  %3792 = vmatprep.subr.bf16.mxu0 %v7197_v33  ;;  %v7235_v0 = vld [vmem:[%s8718_s1 + $0x324] ss:$16 sps:$4 sm:$0xff]   ;;  %v7238_v2 = vld [vmem:[%s8718_s1 + $0x320] ss:$16 sps:$4 sm:$0xff]   ;;  %v537_v32 = vld [vmem:[#allocation3 + $0xc8] sm:$0xff] }
  0xf8   : > { %3845 = vmatprep.subr.bf16.mxu1 %v7199_v34  ;;  %v7239_v3 = vld [vmem:[%s8718_s1 + $0x104] ss:$16 sps:$4 sm:$0xff]   ;;  %v7243_v5 = vld [vmem:[%s8718_s1 + $0x100] ss:$16 sps:$4 sm:$0xff]  }
  0xf9   : > { %v7241_v4 = vld [vmem:[%s8718_s1 + $0x304] ss:$16 sps:$4 sm:$0xff]   ;;  %v7244_v6 = vld [vmem:[%s8718_s1 + $0x300] ss:$16 sps:$4 sm:$0xff]  }
  0xfa   : > { %3793 = vmatpush2.bf16.msra.mxu0 %v7201_v35  ;;  %v7247_v7 = vld [vmem:[%s8718_s1 + $0x4e4] ss:$16 sps:$4 sm:$0xff]   ;;  %v7245_v11 = vld [vmem:[%s8718_s1 + $0x4e0] ss:$16 sps:$4 sm:$0xff]   ;;  %v8843_v35 = vcombine.high %v529_v31, %v537_v32 }
  0xfb   : > { %3846 = vmatpush2.bf16.msra.mxu1 %v7202_v36  ;;  %3794 = vmatprep.subr.bf16.mxu0 %v7203_v37  ;;  %v7250_v8 = vld [vmem:[%s8718_s1 + $0x6e4] ss:$16 sps:$4 sm:$0xff]   ;;  %v7248_v12 = vld [vmem:[%s8718_s1 + $0x6e0] ss:$16 sps:$4 sm:$0xff]  }
  0xfc   : > { %3847 = vmatprep.subr.bf16.mxu1 %v7205_v38  ;;  %v7253_v13 = vld [vmem:[%s8718_s1 + $0x4c4] ss:$16 sps:$4 sm:$0xff]   ;;  %v7251_v15 = vld [vmem:[%s8718_s1 + $0x4c0] ss:$16 sps:$4 sm:$0xff]   ;;  %v8848_v38 = vcombine.low %v529_v31, %v537_v32 }
  0xfd   : > { %v7256_v14 = vld [vmem:[%s8718_s1 + $0x6c4] ss:$16 sps:$4 sm:$0xff]   ;;  %v7254_v16 = vld [vmem:[%s8718_s1 + $0x6c0] ss:$16 sps:$4 sm:$0xff]  }
  0xfe   : > { %3795 = vmatpush2.bf16.msra.mxu0 %v7207_v39  ;;  %v7259_v17 = vld [vmem:[%s8718_s1 + $0x4a4] ss:$16 sps:$4 sm:$0xff]   ;;  %v7257_v19 = vld [vmem:[%s8718_s1 + $0x4a0] ss:$16 sps:$4 sm:$0xff]  }
  0xff   : > { %3848 = vmatpush2.bf16.msra.mxu1 %v7208_v40  ;;  %3796 = vmatprep.subr.bf16.mxu0 %v7209_v41  ;;  %v7262_v18 = vld [vmem:[%s8718_s1 + $0x6a4] ss:$16 sps:$4 sm:$0xff]   ;;  %v7260_v20 = vld [vmem:[%s8718_s1 + $0x6a0] ss:$16 sps:$4 sm:$0xff]  }
 0x100   : > { %3849 = vmatprep.subr.bf16.mxu1 %v7211_v42  ;;  %v7265_v21 = vld [vmem:[%s8718_s1 + $0x484] ss:$16 sps:$4 sm:$0xff]   ;;  %v7263_v23 = vld [vmem:[%s8718_s1 + $0x480] ss:$16 sps:$4 sm:$0xff]  }
 0x101   : > { %v7268_v22 = vld [vmem:[%s8718_s1 + $0x684] ss:$16 sps:$4 sm:$0xff]   ;;  %v7266_v24 = vld [vmem:[%s8718_s1 + $0x680] ss:$16 sps:$4 sm:$0xff]  }
 0x102   : > { %3797 = vmatpush2.bf16.msra.mxu0 %v7213_v43  ;;  %v7271_v25 = vld [vmem:[%s8718_s1 + $0x464] ss:$16 sps:$4 sm:$0xff]   ;;  %v7269_v27 = vld [vmem:[%s8718_s1 + $0x460] ss:$16 sps:$4 sm:$0xff]  }
 0x103   : > { %3850 = vmatpush2.bf16.msra.mxu1 %v7214_v44  ;;  %3798 = vmatprep.subr.bf16.mxu0 %v7215_v45  ;;  %v7274_v26 = vld [vmem:[%s8718_s1 + $0x664] ss:$16 sps:$4 sm:$0xff]   ;;  %v7272_v28 = vld [vmem:[%s8718_s1 + $0x660] ss:$16 sps:$4 sm:$0xff]  }
 0x104   : > { %3851 = vmatprep.subr.bf16.mxu1 %v7217_v46  ;;  %v528_v29 = vld [vmem:[#allocation3 + $0x80] sm:$0xff]  ;;  %v530_v31 = vld [vmem:[#allocation3 + $0x90] sm:$0xff] }
 0x105   : > { %v536_v30 = vld [vmem:[#allocation3 + $0xc0] sm:$0xff]  ;;  %v538_v32 = vld [vmem:[#allocation3 + $0xd0] sm:$0xff] }
 0x106   : > { %3799 = vmatpush2.bf16.msra.mxu0 %v7219_v47  ;;  %v7277_v33 = vld [vmem:[%s8718_s1 + $0x444] ss:$16 sps:$4 sm:$0xff]   ;;  %v8841_v34 = vcombine.high %v528_v29, %v536_v30  ;;  %v8845_v36 = vcombine.low %v528_v29, %v536_v30  ;;  %v7275_v39 = vld [vmem:[%s8718_s1 + $0x440] ss:$16 sps:$4 sm:$0xff]  }
 0x107   : > { %3852 = vmatpush2.bf16.msra.mxu1 %v7220_v48  ;;  %3800 = vmatprep.subr.bf16.mxu0 %v7221_v53  ;;  %v7280_v37 = vld [vmem:[%s8718_s1 + $0x644] ss:$16 sps:$4 sm:$0xff]   ;;  %v7278_v40 = vld [vmem:[%s8718_s1 + $0x640] ss:$16 sps:$4 sm:$0xff]  }
 0x108   : > { %3853 = vmatprep.subr.bf16.mxu1 %v7223_v55  ;;  %v7283_v41 = vld [vmem:[%s8718_s1 + $0x424] ss:$16 sps:$4 sm:$0xff]   ;;  %v7281_v43 = vld [vmem:[%s8718_s1 + $0x420] ss:$16 sps:$4 sm:$0xff]  }
 0x109   : > { %v7286_v42 = vld [vmem:[%s8718_s1 + $0x624] ss:$16 sps:$4 sm:$0xff]   ;;  %v7284_v44 = vld [vmem:[%s8718_s1 + $0x620] ss:$16 sps:$4 sm:$0xff]  }
 0x10a   : > { %3801 = vmatpush2.bf16.msra.mxu0 %v7225_v57  ;;  %v7289_v45 = vld [vmem:[%s8718_s1 + $0x404] ss:$16 sps:$4 sm:$0xff]   ;;  %v7287_v53 = vld [vmem:[%s8718_s1 + $0x400] ss:$16 sps:$4 sm:$0xff]  }
 0x10b   : > { %3854 = vmatpush2.bf16.msra.mxu1 %v7226_v58  ;;  %3802 = vmatprep.subr.bf16.mxu0 %v7227_v59  ;;  %v7292_v46 = vld [vmem:[%s8718_s1 + $0x604] ss:$16 sps:$4 sm:$0xff]   ;;  %v7290_v55 = vld [vmem:[%s8718_s1 + $0x600] ss:$16 sps:$4 sm:$0xff]  }
 0x10c   : > { %3855 = vmatprep.subr.bf16.mxu1 %v7229_v60  ;;  %v8862_v47 = vld [vmem:[#allocation3 + $0x10] sm:$0xff] }
 0x10d   : > { %v8864_v48 = vld [vmem:[#allocation3 + $0x50] sm:$0xff] }
 0x10e   : > { %3803 = vmatpush2.bf16.msra.mxu0 %v7231_v61  ;;  %v8870_v50 = vcombine.high %v8862_v47, %v8864_v48  ;;  %v7295_v57 = vld [vmem:[%s8718_s1 + $0x5e4] ss:$16 sps:$4 sm:$0xff]   ;;  %v7293_v59 = vld [vmem:[%s8718_s1 + $0x5e0] ss:$16 sps:$4 sm:$0xff]  }
 0x10f   : > { %3856 = vmatpush2.bf16.msra.mxu1 %v7232_v62  ;;  %3804 = vmatprep.subr.bf16.mxu0 %v7233_v63  ;;  %v7298_v58 = vld [vmem:[%s8718_s1 + $0x7e4] ss:$16 sps:$4 sm:$0xff]   ;;  %v7296_v60 = vld [vmem:[%s8718_s1 + $0x7e0] ss:$16 sps:$4 sm:$0xff]  }
 0x110   : > { %3857 = vmatprep.subr.bf16.mxu1 %v7235_v0  ;;  %v7301_v61 = vld [vmem:[%s8718_s1 + $0x5c4] ss:$16 sps:$4 sm:$0xff]   ;;  %v7299_v63 = vld [vmem:[%s8718_s1 + $0x5c0] ss:$16 sps:$4 sm:$0xff]  }
 0x111   : > { %v7304_v62 = vld [vmem:[%s8718_s1 + $0x7c4] ss:$16 sps:$4 sm:$0xff]   ;;  %v7302_v0 = vld [vmem:[%s8718_s1 + $0x7c0] ss:$16 sps:$4 sm:$0xff]  }
 0x112   : > { %3805 = vmatpush2.bf16.msra.mxu0 %v7237_v1  ;;  %v7307_v1 = vld [vmem:[%s8718_s1 + $0x5a4] ss:$16 sps:$4 sm:$0xff]   ;;  %v7341_v29 = vld [vmem:[%s8718_s1 + $0x8e0] ss:$16 sps:$4 sm:$0xff]  }
 0x113   : > { %3858 = vmatpush2.bf16.msra.mxu1 %v7238_v2  ;;  %3806 = vmatprep.subr.bf16.mxu0 %v7239_v3  ;;  %v7310_v2 = vld [vmem:[%s8718_s1 + $0x7a4] ss:$16 sps:$4 sm:$0xff]   ;;  %v7305_v3 = vld [vmem:[%s8718_s1 + $0x5a0] ss:$16 sps:$4 sm:$0xff]  }
 0x114   : > { %3859 = vmatprep.subr.bf16.mxu1 %v7241_v4  ;;  %v7308_v4 = vld [vmem:[%s8718_s1 + $0x7a0] ss:$16 sps:$4 sm:$0xff]  }
 0x115   : > { %v7344_v30 = vld [vmem:[%s8718_s1 + $0xae0] ss:$16 sps:$4 sm:$0xff]  }
 0x116   : > { %3807 = vmatpush2.bf16.msra.mxu0 %v7243_v5  ;;  %v7313_v5 = vld [vmem:[%s8718_s1 + $0x584] ss:$16 sps:$4 sm:$0xff]  }
 0x117   : > { %3860 = vmatpush2.bf16.msra.mxu1 %v7244_v6  ;;  %3882 = vmatprep.subr.bf16.mxu0 %v7247_v7  ;;  %v7316_v6 = vld [vmem:[%s8718_s1 + $0x784] ss:$16 sps:$4 sm:$0xff]   ;;  %v7311_v7 = vld [vmem:[%s8718_s1 + $0x580] ss:$16 sps:$4 sm:$0xff]  }
 0x118   : > { %3935 = vmatprep.subr.bf16.mxu1 %v7250_v8  ;;  %v7314_v8 = vld [vmem:[%s8718_s1 + $0x780] ss:$16 sps:$4 sm:$0xff]  }
 0x119   : > { %3809 = vmatmul.mubr.bf16.vlgmr.msra.gmra.mxu0 %v8816_v9 }
 0x11a   : > { %3862 = vmatmul.mubr.bf16.vlgmr.msra.gmra.mxu1 %v8818_v10  ;;  %3883 = vmatpush1.bf16.msra.mxu0 %v7245_v11  ;;  %v7319_v11 = vld [vmem:[%s8718_s1 + $0x564] ss:$16 sps:$4 sm:$0xff]  }
 0x11b   : > { %3936 = vmatpush1.bf16.msra.mxu1 %v7248_v12  ;;  %3884 = vmatprep.subr.bf16.mxu0 %v7253_v13  ;;  %v7322_v12 = vld [vmem:[%s8718_s1 + $0x764] ss:$16 sps:$4 sm:$0xff]   ;;  %v7317_v13 = vld [vmem:[%s8718_s1 + $0x560] ss:$16 sps:$4 sm:$0xff]  }
 0x11c   : > { %3937 = vmatprep.subr.bf16.mxu1 %v7256_v14  ;;  %3818 = vmatprep.mubr.bf16.mxu0 %v8841_v34  ;;  %v7320_v14 = vld [vmem:[%s8718_s1 + $0x760] ss:$16 sps:$4 sm:$0xff]  }
 0x11d   : > { %3871 = vmatprep.mubr.bf16.mxu1 %v8843_v35 }
 0x11e   : > { %3885 = vmatpush1.bf16.msra.mxu0 %v7251_v15  ;;  %v7325_v15 = vld [vmem:[%s8718_s1 + $0x544] ss:$16 sps:$4 sm:$0xff]  }
 0x11f   : > { %3938 = vmatpush1.bf16.msra.mxu1 %v7254_v16  ;;  %3886 = vmatprep.subr.bf16.mxu0 %v7259_v17  ;;  %v7328_v16 = vld [vmem:[%s8718_s1 + $0x744] ss:$16 sps:$4 sm:$0xff]   ;;  %v7323_v17 = vld [vmem:[%s8718_s1 + $0x540] ss:$16 sps:$4 sm:$0xff]  }
 0x120   : > { %3939 = vmatprep.subr.bf16.mxu1 %v7262_v18  ;;  %v7326_v18 = vld [vmem:[%s8718_s1 + $0x740] ss:$16 sps:$4 sm:$0xff]  }
 0x121   : > { %3819 = vmatmul.mubr.bf16.gmra.mxu0 %v8845_v36 }
 0x122   : > { %3887 = vmatpush1.bf16.msra.mxu0 %v7257_v19  ;;  %3872 = vmatmul.mubr.bf16.gmra.mxu1 %v8848_v38  ;;  %v7331_v19 = vld [vmem:[%s8718_s1 + $0x524] ss:$16 sps:$4 sm:$0xff]  }
 0x123   : > { %3940 = vmatpush1.bf16.msra.mxu1 %v7260_v20  ;;  %3888 = vmatprep.subr.bf16.mxu0 %v7265_v21  ;;  %v7334_v20 = vld [vmem:[%s8718_s1 + $0x724] ss:$16 sps:$4 sm:$0xff]   ;;  %v7329_v21 = vld [vmem:[%s8718_s1 + $0x520] ss:$16 sps:$4 sm:$0xff]  }
 0x124   : > { %3941 = vmatprep.subr.bf16.mxu1 %v7268_v22  ;;  %3914 = vmatprep.mubr.bf16.mxu0 %v8870_v50  ;;  %v7332_v22 = vld [vmem:[%s8718_s1 + $0x720] ss:$16 sps:$4 sm:$0xff]  }
 0x125   : > { %3967 = vmatprep.mubr.bf16.mxu1 %v8876_v52 }
 0x126   : > { %3889 = vmatpush1.bf16.msra.mxu0 %v7263_v23  ;;  %v7337_v23 = vld [vmem:[%s8718_s1 + $0x504] ss:$16 sps:$4 sm:$0xff]  }
 0x127   : > { %3942 = vmatpush1.bf16.msra.mxu1 %v7266_v24  ;;  %3890 = vmatprep.subr.bf16.mxu0 %v7271_v25  ;;  %v7340_v24 = vld [vmem:[%s8718_s1 + $0x704] ss:$16 sps:$4 sm:$0xff]   ;;  %v7335_v25 = vld [vmem:[%s8718_s1 + $0x500] ss:$16 sps:$4 sm:$0xff]  }
 0x128   : > { %3943 = vmatprep.subr.bf16.mxu1 %v7274_v26  ;;  %v7338_v26 = vld [vmem:[%s8718_s1 + $0x700] ss:$16 sps:$4 sm:$0xff]  }
 0x12a   : > { %3891 = vmatpush1.bf16.msra.mxu0 %v7269_v27  ;;  %v7343_v27 = vld [vmem:[%s8718_s1 + $0x8e4] ss:$16 sps:$4 sm:$0xff]  }
 0x12b   : > { %3944 = vmatpush1.bf16.msra.mxu1 %v7272_v28  ;;  %3892 = vmatprep.subr.bf16.mxu0 %v7277_v33  ;;  %v7346_v28 = vld [vmem:[%s8718_s1 + $0xae4] ss:$16 sps:$4 sm:$0xff]   ;;  %v8920_v33 = vcombine.low %v8862_v47, %v8864_v48 }
 0x12c   : > { %3945 = vmatprep.subr.bf16.mxu1 %v7280_v37  ;;  %v8924_v37 = vcombine.low %v8866_v49, %v8872_v51  ;;  %v7355_v47 = vld [vmem:[%s8718_s1 + $0x8a4] ss:$16 sps:$4 sm:$0xff]   ;;  %v7353_v49 = vld [vmem:[%s8718_s1 + $0x8a0] ss:$16 sps:$4 sm:$0xff]  }
 0x12d   : > { %v7358_v48 = vld [vmem:[%s8718_s1 + $0xaa4] ss:$16 sps:$4 sm:$0xff]   ;;  %v7356_v51 = vld [vmem:[%s8718_s1 + $0xaa0] ss:$16 sps:$4 sm:$0xff]  }
 0x12e   : > { %3893 = vmatpush1.bf16.msra.mxu0 %v7275_v39  ;;  %v531_v39 = vld [vmem:[#allocation3 + $0x98] sm:$0xff] }
 0x12f   : > { %3946 = vmatpush1.bf16.msra.mxu1 %v7278_v40  ;;  %3894 = vmatprep.subr.bf16.mxu0 %v7283_v41  ;;  %v539_v40 = vld [vmem:[#allocation3 + $0xd8] sm:$0xff]  ;;  %v7349_v41 = vld [vmem:[%s8718_s1 + $0x8c4] ss:$16 sps:$4 sm:$0xff]  }
 0x130   : > { %3947 = vmatprep.subr.bf16.mxu1 %v7286_v42  ;;  %v7352_v42 = vld [vmem:[%s8718_s1 + $0xac4] ss:$16 sps:$4 sm:$0xff]  }
 0x132   : > { %3895 = vmatpush1.bf16.msra.mxu0 %v7281_v43  ;;  %v8928_v43 = vcombine.high %v530_v31, %v538_v32 }
 0x133   : > { %3948 = vmatpush1.bf16.msra.mxu1 %v7284_v44  ;;  %3896 = vmatprep.subr.bf16.mxu0 %v7289_v45  ;;  %v8930_v44 = vcombine.high %v531_v39, %v539_v40  ;;  %v7347_v45 = vld [vmem:[%s8718_s1 + $0x8c0] ss:$16 sps:$4 sm:$0xff]  }
 0x134   : > { %3949 = vmatprep.subr.bf16.mxu1 %v7292_v46  ;;  %v7350_v46 = vld [vmem:[%s8718_s1 + $0xac0] ss:$16 sps:$4 sm:$0xff]  }
 0x136   : > { %3897 = vmatpush1.bf16.msra.mxu0 %v7287_v53  ;;  %v8942_v53 = vld [vmem:[#allocation3 + $0x20] sm:$0xff] }
 0x137   : > { %3950 = vmatpush1.bf16.msra.mxu1 %v7290_v55  ;;  %3898 = vmatprep.subr.bf16.mxu0 %v7295_v57  ;;  %v8944_v55 = vld [vmem:[#allocation3 + $0x60] sm:$0xff]  ;;  %v8946_v57 = vcombine.low %v530_v31, %v538_v32 }
 0x138   : > { %3951 = vmatprep.subr.bf16.mxu1 %v7298_v58  ;;  %v8948_v58 = vcombine.low %v531_v39, %v539_v40  ;;  %v7401_v31 = vld [vmem:[%s8718_s1 + $0x9a0] ss:$16 sps:$4 sm:$0xff]   ;;  %v7409_v39 = vld [vmem:[%s8718_s1 + $0x984] ss:$16 sps:$4 sm:$0xff]  }
 0x139   : > { %v7404_v32 = vld [vmem:[%s8718_s1 + $0xba0] ss:$16 sps:$4 sm:$0xff]   ;;  %v7412_v40 = vld [vmem:[%s8718_s1 + $0xb84] ss:$16 sps:$4 sm:$0xff]  }
 0x13a   : > { %3899 = vmatpush2.bf16.msra.mxu0 %v7293_v59  ;;  %v8950_v59 = vld [vmem:[#allocation3 + $0x28] sm:$0xff] }
 0x13b   : > { %3952 = vmatpush2.bf16.msra.mxu1 %v7296_v60  ;;  %3900 = vmatprep.subr.bf16.mxu0 %v7301_v61  ;;  %v8952_v60 = vld [vmem:[#allocation3 + $0x68] sm:$0xff]  ;;  %v7361_v61 = vld [vmem:[%s8718_s1 + $0x884] ss:$16 sps:$4 sm:$0xff]  }
 0x13c   : > { %3953 = vmatprep.subr.bf16.mxu1 %v7304_v62  ;;  %v7364_v62 = vld [vmem:[%s8718_s1 + $0xa84] ss:$16 sps:$4 sm:$0xff]  }
 0x13e   : > { %3901 = vmatpush2.bf16.msra.mxu0 %v7299_v63  ;;  %v8958_v63 = vcombine.high %v8942_v53, %v8944_v55 }
 0x13f   : > { %3954 = vmatpush2.bf16.msra.mxu1 %v7302_v0  ;;  %3902 = vmatprep.subr.bf16.mxu0 %v7307_v1  ;;  %v8962_v0 = vcombine.high %v8950_v59, %v8952_v60  ;;  %v7359_v1 = vld [vmem:[%s8718_s1 + $0x880] ss:$16 sps:$4 sm:$0xff]  }
 0x140   : > { %3955 = vmatprep.subr.bf16.mxu1 %v7310_v2  ;;  %v7362_v2 = vld [vmem:[%s8718_s1 + $0xa80] ss:$16 sps:$4 sm:$0xff]  }
 0x142   : > { %3903 = vmatpush2.bf16.msra.mxu0 %v7305_v3  ;;  %v7367_v3 = vld [vmem:[%s8718_s1 + $0x864] ss:$16 sps:$4 sm:$0xff]  }
 0x143   : > { %3956 = vmatpush2.bf16.msra.mxu1 %v7308_v4  ;;  %3904 = vmatprep.subr.bf16.mxu0 %v7313_v5  ;;  %v7370_v4 = vld [vmem:[%s8718_s1 + $0xa64] ss:$16 sps:$4 sm:$0xff]   ;;  %v7365_v5 = vld [vmem:[%s8718_s1 + $0x860] ss:$16 sps:$4 sm:$0xff]  }
 0x144   : > { %3957 = vmatprep.subr.bf16.mxu1 %v7316_v6  ;;  %v7368_v6 = vld [vmem:[%s8718_s1 + $0xa60] ss:$16 sps:$4 sm:$0xff]  }
 0x146   : > { %3905 = vmatpush2.bf16.msra.mxu0 %v7311_v7  ;;  %v7373_v7 = vld [vmem:[%s8718_s1 + $0x844] ss:$16 sps:$4 sm:$0xff]  }
 0x147   : > { %3958 = vmatpush2.bf16.msra.mxu1 %v7314_v8  ;;  %3906 = vmatprep.subr.bf16.mxu0 %v7319_v11  ;;  %v7376_v8 = vld [vmem:[%s8718_s1 + $0xa44] ss:$16 sps:$4 sm:$0xff]   ;;  %v7371_v11 = vld [vmem:[%s8718_s1 + $0x840] ss:$16 sps:$4 sm:$0xff]  }
 0x148   : > { %3959 = vmatprep.subr.bf16.mxu1 %v7322_v12  ;;  %v7374_v12 = vld [vmem:[%s8718_s1 + $0xa40] ss:$16 sps:$4 sm:$0xff]  }
 0x14a   : > { %3907 = vmatpush2.bf16.msra.mxu0 %v7317_v13  ;;  %v7379_v13 = vld [vmem:[%s8718_s1 + $0x824] ss:$16 sps:$4 sm:$0xff]  }
 0x14b   : > { %3960 = vmatpush2.bf16.msra.mxu1 %v7320_v14  ;;  %3908 = vmatprep.subr.bf16.mxu0 %v7325_v15  ;;  %v7382_v14 = vld [vmem:[%s8718_s1 + $0xa24] ss:$16 sps:$4 sm:$0xff]   ;;  %v7377_v15 = vld [vmem:[%s8718_s1 + $0x820] ss:$16 sps:$4 sm:$0xff]  }
 0x14c   : > { %3961 = vmatprep.subr.bf16.mxu1 %v7328_v16  ;;  %v7380_v16 = vld [vmem:[%s8718_s1 + $0xa20] ss:$16 sps:$4 sm:$0xff]  }
 0x14e   : > { %3909 = vmatpush2.bf16.msra.mxu0 %v7323_v17  ;;  %v7385_v17 = vld [vmem:[%s8718_s1 + $0x804] ss:$16 sps:$4 sm:$0xff]  }
 0x14f   : > { %3962 = vmatpush2.bf16.msra.mxu1 %v7326_v18  ;;  %3910 = vmatprep.subr.bf16.mxu0 %v7331_v19  ;;  %v7388_v18 = vld [vmem:[%s8718_s1 + $0xa04] ss:$16 sps:$4 sm:$0xff]   ;;  %v7383_v19 = vld [vmem:[%s8718_s1 + $0x800] ss:$16 sps:$4 sm:$0xff]  }
 0x150   : > { %3963 = vmatprep.subr.bf16.mxu1 %v7334_v20  ;;  %v7386_v20 = vld [vmem:[%s8718_s1 + $0xa00] ss:$16 sps:$4 sm:$0xff]  }
 0x152   : > { %3911 = vmatpush2.bf16.msra.mxu0 %v7329_v21  ;;  %v7391_v21 = vld [vmem:[%s8718_s1 + $0x9e4] ss:$16 sps:$4 sm:$0xff]  }
 0x153   : > { %3964 = vmatpush2.bf16.msra.mxu1 %v7332_v22  ;;  %3912 = vmatprep.subr.bf16.mxu0 %v7337_v23  ;;  %v7394_v22 = vld [vmem:[%s8718_s1 + $0xbe4] ss:$16 sps:$4 sm:$0xff]   ;;  %v7389_v23 = vld [vmem:[%s8718_s1 + $0x9e0] ss:$16 sps:$4 sm:$0xff]  }
 0x154   : > { %3965 = vmatprep.subr.bf16.mxu1 %v7340_v24  ;;  %v7392_v24 = vld [vmem:[%s8718_s1 + $0xbe0] ss:$16 sps:$4 sm:$0xff]  }
 0x156   : > { %3913 = vmatpush2.bf16.msra.mxu0 %v7335_v25  ;;  %v7397_v25 = vld [vmem:[%s8718_s1 + $0x9c4] ss:$16 sps:$4 sm:$0xff]  }
 0x157   : > { %3966 = vmatpush2.bf16.msra.mxu1 %v7338_v26  ;;  %3988 = vmatprep.subr.bf16.mxu0 %v7343_v27  ;;  %v7400_v26 = vld [vmem:[%s8718_s1 + $0xbc4] ss:$16 sps:$4 sm:$0xff]   ;;  %v7395_v27 = vld [vmem:[%s8718_s1 + $0x9c0] ss:$16 sps:$4 sm:$0xff]  }
 0x158   : > { %4041 = vmatprep.subr.bf16.mxu1 %v7346_v28  ;;  %v7398_v28 = vld [vmem:[%s8718_s1 + $0xbc0] ss:$16 sps:$4 sm:$0xff]  }
 0x159   : > { %3915 = vmatmul.mubr.bf16.vlgmr.msra.gmra.mxu0 %v8920_v33 }
 0x15a   : > { %3968 = vmatmul.mubr.bf16.vlgmr.msra.gmra.mxu1 %v8924_v37  ;;  %3989 = vmatpush1.bf16.msra.mxu0 %v7341_v29  ;;  %v7403_v29 = vld [vmem:[%s8718_s1 + $0x9a4] ss:$16 sps:$4 sm:$0xff]  }
 0x15b   : > { %4042 = vmatpush1.bf16.msra.mxu1 %v7344_v30  ;;  %3990 = vmatprep.subr.bf16.mxu0 %v7349_v41  ;;  %v7406_v30 = vld [vmem:[%s8718_s1 + $0xba4] ss:$16 sps:$4 sm:$0xff]   ;;  %v7407_v41 = vld [vmem:[%s8718_s1 + $0x980] ss:$16 sps:$4 sm:$0xff]  }
 0x15c   : > { %4043 = vmatprep.subr.bf16.mxu1 %v7352_v42  ;;  %3924 = vmatprep.mubr.bf16.mxu0 %v8928_v43  ;;  %v7410_v42 = vld [vmem:[%s8718_s1 + $0xb80] ss:$16 sps:$4 sm:$0xff]  }
 0x15d   : > { %3977 = vmatprep.mubr.bf16.mxu1 %v8930_v44 }
 0x15e   : > { %3991 = vmatpush1.bf16.msra.mxu0 %v7347_v45  ;;  %v7415_v45 = vld [vmem:[%s8718_s1 + $0x964] ss:$16 sps:$4 sm:$0xff]  }
 0x15f   : > { %4044 = vmatpush1.bf16.msra.mxu1 %v7350_v46  ;;  %3992 = vmatprep.subr.bf16.mxu0 %v7355_v47  ;;  %v7418_v46 = vld [vmem:[%s8718_s1 + $0xb64] ss:$16 sps:$4 sm:$0xff]   ;;  %v7413_v47 = vld [vmem:[%s8718_s1 + $0x960] ss:$16 sps:$4 sm:$0xff]  }
 0x160   : > { %4045 = vmatprep.subr.bf16.mxu1 %v7358_v48  ;;  %v7416_v48 = vld [vmem:[%s8718_s1 + $0xb60] ss:$16 sps:$4 sm:$0xff]  }
 0x161   : > { %3925 = vmatmul.mubr.bf16.gmra.mxu0 %v8946_v57 }
 0x162   : > { %3978 = vmatmul.mubr.bf16.gmra.mxu1 %v8948_v58  ;;  %3993 = vmatpush1.bf16.msra.mxu0 %v7353_v49  ;;  %v7421_v49 = vld [vmem:[%s8718_s1 + $0x944] ss:$16 sps:$4 sm:$0xff]  }
 0x163   : > { %4046 = vmatpush1.bf16.msra.mxu1 %v7356_v51  ;;  %3994 = vmatprep.subr.bf16.mxu0 %v7361_v61  ;;  %v7424_v51 = vld [vmem:[%s8718_s1 + $0xb44] ss:$16 sps:$4 sm:$0xff]   ;;  %v7419_v61 = vld [vmem:[%s8718_s1 + $0x940] ss:$16 sps:$4 sm:$0xff]  }
 0x164   : > { %4047 = vmatprep.subr.bf16.mxu1 %v7364_v62  ;;  %4020 = vmatprep.mubr.bf16.mxu0 %v8958_v63  ;;  %v7422_v62 = vld [vmem:[%s8718_s1 + $0xb40] ss:$16 sps:$4 sm:$0xff]  }
 0x165   : > { %4073 = vmatprep.mubr.bf16.mxu1 %v8962_v0 }
 0x166   : > { %3995 = vmatpush1.bf16.msra.mxu0 %v7359_v1  ;;  %v7427_v1 = vld [vmem:[%s8718_s1 + $0x924] ss:$16 sps:$4 sm:$0xff]  }
 0x167   : > { %4048 = vmatpush1.bf16.msra.mxu1 %v7362_v2  ;;  %3996 = vmatprep.subr.bf16.mxu0 %v7367_v3  ;;  %v7430_v2 = vld [vmem:[%s8718_s1 + $0xb24] ss:$16 sps:$4 sm:$0xff]   ;;  %v7425_v3 = vld [vmem:[%s8718_s1 + $0x920] ss:$16 sps:$4 sm:$0xff]  }
 0x168   : > { %4049 = vmatprep.subr.bf16.mxu1 %v7370_v4  ;;  %v7428_v4 = vld [vmem:[%s8718_s1 + $0xb20] ss:$16 sps:$4 sm:$0xff]  }
 0x16a   : > { %3997 = vmatpush1.bf16.msra.mxu0 %v7365_v5  ;;  %v7433_v5 = vld [vmem:[%s8718_s1 + $0x904] ss:$16 sps:$4 sm:$0xff]  }
 0x16b   : > { %4050 = vmatpush1.bf16.msra.mxu1 %v7368_v6  ;;  %3998 = vmatprep.subr.bf16.mxu0 %v7373_v7  ;;  %v7436_v6 = vld [vmem:[%s8718_s1 + $0xb04] ss:$16 sps:$4 sm:$0xff]   ;;  %v7431_v7 = vld [vmem:[%s8718_s1 + $0x900] ss:$16 sps:$4 sm:$0xff]  }
 0x16c   : > { %4051 = vmatprep.subr.bf16.mxu1 %v7376_v8  ;;  %v7434_v8 = vld [vmem:[%s8718_s1 + $0xb00] ss:$16 sps:$4 sm:$0xff]  }
 0x16e   : > { %3999 = vmatpush1.bf16.msra.mxu0 %v7371_v11  ;;  %v7439_v11 = vld [vmem:[%s8718_s1 + $0xce4] ss:$16 sps:$4 sm:$0xff]  }
 0x16f   : > { %4052 = vmatpush1.bf16.msra.mxu1 %v7374_v12  ;;  %4000 = vmatprep.subr.bf16.mxu0 %v7379_v13  ;;  %v7442_v12 = vld [vmem:[%s8718_s1 + $0xee4] ss:$16 sps:$4 sm:$0xff]   ;;  %v7437_v13 = vld [vmem:[%s8718_s1 + $0xce0] ss:$16 sps:$4 sm:$0xff]  }
 0x170   : > { %4053 = vmatprep.subr.bf16.mxu1 %v7382_v14  ;;  %v7440_v14 = vld [vmem:[%s8718_s1 + $0xee0] ss:$16 sps:$4 sm:$0xff]  }
 0x172   : > { %4001 = vmatpush1.bf16.msra.mxu0 %v7377_v15  ;;  %v532_v15 = vld [vmem:[#allocation3 + $0xa0] sm:$0xff] }
 0x173   : > { %4054 = vmatpush1.bf16.msra.mxu1 %v7380_v16  ;;  %4002 = vmatprep.subr.bf16.mxu0 %v7385_v17  ;;  %v540_v16 = vld [vmem:[#allocation3 + $0xe0] sm:$0xff]  ;;  %v9024_v17 = vcombine.low %v8942_v53, %v8944_v55 }
 0x174   : > { %4055 = vmatprep.subr.bf16.mxu1 %v7388_v18  ;;  %v9028_v18 = vcombine.low %v8950_v59, %v8952_v60  ;;  %v7443_v55 = vld [vmem:[%s8718_s1 + $0xcc0] ss:$16 sps:$4 sm:$0xff]   ;;  %v7451_v60 = vld [vmem:[%s8718_s1 + $0xca4] ss:$16 sps:$4 sm:$0xff]  }
 0x175   : > { %v7446_v59 = vld [vmem:[%s8718_s1 + $0xec0] ss:$16 sps:$4 sm:$0xff]  }
 0x176   : > { %4003 = vmatpush1.bf16.msra.mxu0 %v7383_v19  ;;  %v533_v19 = vld [vmem:[#allocation3 + $0xa8] sm:$0xff] }
 0x177   : > { %4056 = vmatpush1.bf16.msra.mxu1 %v7386_v20  ;;  %4004 = vmatprep.subr.bf16.mxu0 %v7391_v21  ;;  %v541_v20 = vld [vmem:[#allocation3 + $0xe8] sm:$0xff]  ;;  %v7445_v21 = vld [vmem:[%s8718_s1 + $0xcc4] ss:$16 sps:$4 sm:$0xff]  }
 0x178   : > { %4057 = vmatprep.subr.bf16.mxu1 %v7394_v22  ;;  %v7448_v22 = vld [vmem:[%s8718_s1 + $0xec4] ss:$16 sps:$4 sm:$0xff]   ;;  %v9034_v53 = vcombine.high %v533_v19, %v541_v20 }
 0x17a   : > { %4005 = vmatpush2.bf16.msra.mxu0 %v7389_v23  ;;  %v9032_v23 = vcombine.high %v532_v15, %v540_v16 }
 0x17b   : > { %4058 = vmatpush2.bf16.msra.mxu1 %v7392_v24  ;;  %4006 = vmatprep.subr.bf16.mxu0 %v7397_v25  ;;  %v7454_v24 = vld [vmem:[%s8718_s1 + $0xea4] ss:$16 sps:$4 sm:$0xff]   ;;  %v7449_v25 = vld [vmem:[%s8718_s1 + $0xca0] ss:$16 sps:$4 sm:$0xff]  }
 0x17c   : > { %4059 = vmatprep.subr.bf16.mxu1 %v7400_v26  ;;  %v7452_v26 = vld [vmem:[%s8718_s1 + $0xea0] ss:$16 sps:$4 sm:$0xff]  }
 0x17e   : > { %4007 = vmatpush2.bf16.msra.mxu0 %v7395_v27  ;;  %v9046_v27 = vld [vmem:[#allocation3 + $0x30] sm:$0xff] }
 0x17f   : > { %4060 = vmatpush2.bf16.msra.mxu1 %v7398_v28  ;;  %4008 = vmatprep.subr.bf16.mxu0 %v7403_v29  ;;  %v9048_v28 = vld [vmem:[#allocation3 + $0x70] sm:$0xff]  ;;  %v9050_v29 = vcombine.low %v532_v15, %v540_v16 }
 0x180   : > { %4061 = vmatprep.subr.bf16.mxu1 %v7406_v30  ;;  %v9052_v30 = vcombine.low %v533_v19, %v541_v20  ;;  %v7485_v15 = vld [vmem:[%s8718_s1 + $0xde0] ss:$16 sps:$4 sm:$0xff]   ;;  %v7493_v19 = vld [vmem:[%s8718_s1 + $0xdc4] ss:$16 sps:$4 sm:$0xff]  }
 0x181   : > { %v7488_v16 = vld [vmem:[%s8718_s1 + $0xfe0] ss:$16 sps:$4 sm:$0xff]   ;;  %v7496_v20 = vld [vmem:[%s8718_s1 + $0xfc4] ss:$16 sps:$4 sm:$0xff]  }
 0x182   : > { %4009 = vmatpush2.bf16.msra.mxu0 %v7401_v31  ;;  %v9054_v31 = vld [vmem:[#allocation3 + $0x38] sm:$0xff] }
 0x183   : > { %4062 = vmatpush2.bf16.msra.mxu1 %v7404_v32  ;;  %4010 = vmatprep.subr.bf16.mxu0 %v7409_v39  ;;  %v9056_v32 = vld [vmem:[#allocation3 + $0x78] sm:$0xff]  ;;  %v7457_v39 = vld [vmem:[%s8718_s1 + $0xc84] ss:$16 sps:$4 sm:$0xff]  }
 0x184   : > { %4063 = vmatprep.subr.bf16.mxu1 %v7412_v40  ;;  %v7460_v40 = vld [vmem:[%s8718_s1 + $0xe84] ss:$16 sps:$4 sm:$0xff]  }
 0x186   : > { %4011 = vmatpush2.bf16.msra.mxu0 %v7407_v41  ;;  %v9062_v41 = vcombine.high %v9046_v27, %v9048_v28 }
 0x187   : > { %4064 = vmatpush2.bf16.msra.mxu1 %v7410_v42  ;;  %4012 = vmatprep.subr.bf16.mxu0 %v7415_v45  ;;  %v9066_v42 = vcombine.high %v9054_v31, %v9056_v32  ;;  %v7455_v45 = vld [vmem:[%s8718_s1 + $0xc80] ss:$16 sps:$4 sm:$0xff]  }
 0x188   : > { %4065 = vmatprep.subr.bf16.mxu1 %v7418_v46  ;;  %v7458_v46 = vld [vmem:[%s8718_s1 + $0xe80] ss:$16 sps:$4 sm:$0xff]  }
 0x18a   : > { %4013 = vmatpush2.bf16.msra.mxu0 %v7413_v47  ;;  %v7463_v47 = vld [vmem:[%s8718_s1 + $0xc64] ss:$16 sps:$4 sm:$0xff]  }
 0x18b   : > { %4066 = vmatpush2.bf16.msra.mxu1 %v7416_v48  ;;  %4014 = vmatprep.subr.bf16.mxu0 %v7421_v49  ;;  %v7466_v48 = vld [vmem:[%s8718_s1 + $0xe64] ss:$16 sps:$4 sm:$0xff]   ;;  %v7461_v49 = vld [vmem:[%s8718_s1 + $0xc60] ss:$16 sps:$4 sm:$0xff]  }
 0x18c   : > { %4067 = vmatprep.subr.bf16.mxu1 %v7424_v51  ;;  %v7464_v51 = vld [vmem:[%s8718_s1 + $0xe60] ss:$16 sps:$4 sm:$0xff]  }
 0x18e   : > { %4015 = vmatpush2.bf16.msra.mxu0 %v7419_v61  ;;  %v7469_v61 = vld [vmem:[%s8718_s1 + $0xc44] ss:$16 sps:$4 sm:$0xff]  }
 0x18f   : > { %4068 = vmatpush2.bf16.msra.mxu1 %v7422_v62  ;;  %4016 = vmatprep.subr.bf16.mxu0 %v7427_v1  ;;  %v7472_v62 = vld [vmem:[%s8718_s1 + $0xe44] ss:$16 sps:$4 sm:$0xff]   ;;  %v7467_v1 = vld [vmem:[%s8718_s1 + $0xc40] ss:$16 sps:$4 sm:$0xff]  }
 0x190   : > { %4069 = vmatprep.subr.bf16.mxu1 %v7430_v2  ;;  %v7470_v2 = vld [vmem:[%s8718_s1 + $0xe40] ss:$16 sps:$4 sm:$0xff]  }
 0x192   : > { %4017 = vmatpush2.bf16.msra.mxu0 %v7425_v3  ;;  %v7475_v3 = vld [vmem:[%s8718_s1 + $0xc24] ss:$16 sps:$4 sm:$0xff]  }
 0x193   : > { %4070 = vmatpush2.bf16.msra.mxu1 %v7428_v4  ;;  %4018 = vmatprep.subr.bf16.mxu0 %v7433_v5  ;;  %v7478_v4 = vld [vmem:[%s8718_s1 + $0xe24] ss:$16 sps:$4 sm:$0xff]   ;;  %v7473_v5 = vld [vmem:[%s8718_s1 + $0xc20] ss:$16 sps:$4 sm:$0xff]  }
 0x194   : > { %4071 = vmatprep.subr.bf16.mxu1 %v7436_v6  ;;  %v7476_v6 = vld [vmem:[%s8718_s1 + $0xe20] ss:$16 sps:$4 sm:$0xff]  }
 0x196   : > { %4019 = vmatpush2.bf16.msra.mxu0 %v7431_v7  ;;  %v7481_v7 = vld [vmem:[%s8718_s1 + $0xc04] ss:$16 sps:$4 sm:$0xff]  }
 0x197   : > { %4072 = vmatpush2.bf16.msra.mxu1 %v7434_v8  ;;  %4094 = vmatprep.subr.bf16.mxu0 %v7439_v11  ;;  %v7484_v8 = vld [vmem:[%s8718_s1 + $0xe04] ss:$16 sps:$4 sm:$0xff]   ;;  %v7479_v11 = vld [vmem:[%s8718_s1 + $0xc00] ss:$16 sps:$4 sm:$0xff]  }
 0x198   : > { %4147 = vmatprep.subr.bf16.mxu1 %v7442_v12  ;;  %v7482_v12 = vld [vmem:[%s8718_s1 + $0xe00] ss:$16 sps:$4 sm:$0xff]  }
 0x199   : > { %4021 = vmatmul.mubr.bf16.vlgmr.msra.gmra.mxu0 %v9024_v17 }
 0x19a   : > { %4074 = vmatmul.mubr.bf16.vlgmr.msra.gmra.mxu1 %v9028_v18  ;;  %4095 = vmatpush1.bf16.msra.mxu0 %v7437_v13  ;;  %v7487_v13 = vld [vmem:[%s8718_s1 + $0xde4] ss:$16 sps:$4 sm:$0xff]  }
 0x19b   : > { %4148 = vmatpush1.bf16.msra.mxu1 %v7440_v14  ;;  %4096 = vmatprep.subr.bf16.mxu0 %v7445_v21  ;;  %v7490_v14 = vld [vmem:[%s8718_s1 + $0xfe4] ss:$16 sps:$4 sm:$0xff]   ;;  %v7491_v21 = vld [vmem:[%s8718_s1 + $0xdc0] ss:$16 sps:$4 sm:$0xff]  }
 0x19c   : > { %4149 = vmatprep.subr.bf16.mxu1 %v7448_v22  ;;  %4030 = vmatprep.mubr.bf16.mxu0 %v9032_v23  ;;  %v7494_v22 = vld [vmem:[%s8718_s1 + $0xfc0] ss:$16 sps:$4 sm:$0xff]  }
 0x19d   : > { %4083 = vmatprep.mubr.bf16.mxu1 %v9034_v53 }
 0x19e   : > { %4097 = vmatpush1.bf16.msra.mxu0 %v7443_v55  ;;  %v7499_v55 = vld [vmem:[%s8718_s1 + $0xda4] ss:$16 sps:$4 sm:$0xff]  }
 0x19f   : > { %4150 = vmatpush1.bf16.msra.mxu1 %v7446_v59  ;;  %4098 = vmatprep.subr.bf16.mxu0 %v7451_v60  ;;  %v7502_v59 = vld [vmem:[%s8718_s1 + $0xfa4] ss:$16 sps:$4 sm:$0xff]   ;;  %v7497_v60 = vld [vmem:[%s8718_s1 + $0xda0] ss:$16 sps:$4 sm:$0xff]  }
 0x1a0   : > { %4151 = vmatprep.subr.bf16.mxu1 %v7454_v24  ;;  %v7500_v24 = vld [vmem:[%s8718_s1 + $0xfa0] ss:$16 sps:$4 sm:$0xff]  }
 0x1a1   : > { %4031 = vmatmul.mubr.bf16.gmra.mxu0 %v9050_v29 }
 0x1a2   : > { %4084 = vmatmul.mubr.bf16.gmra.mxu1 %v9052_v30  ;;  %4099 = vmatpush1.bf16.msra.mxu0 %v7449_v25  ;;  %v7505_v25 = vld [vmem:[%s8718_s1 + $0xd84] ss:$16 sps:$4 sm:$0xff]  }
 0x1a3   : > { %4152 = vmatpush1.bf16.msra.mxu1 %v7452_v26  ;;  %4100 = vmatprep.subr.bf16.mxu0 %v7457_v39  ;;  %v7508_v26 = vld [vmem:[%s8718_s1 + $0xf84] ss:$16 sps:$4 sm:$0xff]   ;;  %v7503_v39 = vld [vmem:[%s8718_s1 + $0xd80] ss:$16 sps:$4 sm:$0xff]  }
 0x1a4   : > { %4153 = vmatprep.subr.bf16.mxu1 %v7460_v40  ;;  %4126 = vmatprep.mubr.bf16.mxu0 %v9062_v41  ;;  %v7506_v40 = vld [vmem:[%s8718_s1 + $0xf80] ss:$16 sps:$4 sm:$0xff]  }
 0x1a5   : > { %4179 = vmatprep.mubr.bf16.mxu1 %v9066_v42 }
 0x1a6   : > { %4101 = vmatpush1.bf16.msra.mxu0 %v7455_v45  ;;  %v7511_v45 = vld [vmem:[%s8718_s1 + $0xd64] ss:$16 sps:$4 sm:$0xff]  }
 0x1a7   : > { %4154 = vmatpush1.bf16.msra.mxu1 %v7458_v46  ;;  %4102 = vmatprep.subr.bf16.mxu0 %v7463_v47  ;;  %v7514_v46 = vld [vmem:[%s8718_s1 + $0xf64] ss:$16 sps:$4 sm:$0xff]   ;;  %v7509_v47 = vld [vmem:[%s8718_s1 + $0xd60] ss:$16 sps:$4 sm:$0xff]  }
 0x1a8   : > { %4155 = vmatprep.subr.bf16.mxu1 %v7466_v48  ;;  %v7512_v48 = vld [vmem:[%s8718_s1 + $0xf60] ss:$16 sps:$4 sm:$0xff]  }
 0x1aa   : > { %4103 = vmatpush1.bf16.msra.mxu0 %v7461_v49  ;;  %v7517_v49 = vld [vmem:[%s8718_s1 + $0xd44] ss:$16 sps:$4 sm:$0xff]  }
 0x1ab   : > { %4156 = vmatpush1.bf16.msra.mxu1 %v7464_v51  ;;  %4104 = vmatprep.subr.bf16.mxu0 %v7469_v61  ;;  %v7520_v51 = vld [vmem:[%s8718_s1 + $0xf44] ss:$16 sps:$4 sm:$0xff]   ;;  %v7515_v61 = vld [vmem:[%s8718_s1 + $0xd40] ss:$16 sps:$4 sm:$0xff]  }
 0x1ac   : > { %4157 = vmatprep.subr.bf16.mxu1 %v7472_v62  ;;  %v7518_v62 = vld [vmem:[%s8718_s1 + $0xf40] ss:$16 sps:$4 sm:$0xff]  }
 0x1ae   : > { %4105 = vmatpush1.bf16.msra.mxu0 %v7467_v1  ;;  %v7523_v1 = vld [vmem:[%s8718_s1 + $0xd24] ss:$16 sps:$4 sm:$0xff]  }
 0x1af   : > { %4158 = vmatpush1.bf16.msra.mxu1 %v7470_v2  ;;  %4106 = vmatprep.subr.bf16.mxu0 %v7475_v3  ;;  %v7526_v2 = vld [vmem:[%s8718_s1 + $0xf24] ss:$16 sps:$4 sm:$0xff]   ;;  %v7521_v3 = vld [vmem:[%s8718_s1 + $0xd20] ss:$16 sps:$4 sm:$0xff]  }
 0x1b0   : > { %4159 = vmatprep.subr.bf16.mxu1 %v7478_v4  ;;  %v7524_v4 = vld [vmem:[%s8718_s1 + $0xf20] ss:$16 sps:$4 sm:$0xff]  }
 0x1b2   : > { %4107 = vmatpush1.bf16.msra.mxu0 %v7473_v5  ;;  %v7529_v5 = vld [vmem:[%s8718_s1 + $0xd04] ss:$16 sps:$4 sm:$0xff]  }
 0x1b3   : > { %4160 = vmatpush1.bf16.msra.mxu1 %v7476_v6  ;;  %4108 = vmatprep.subr.bf16.mxu0 %v7481_v7  ;;  %v7532_v6 = vld [vmem:[%s8718_s1 + $0xf04] ss:$16 sps:$4 sm:$0xff]   ;;  %v7527_v7 = vld [vmem:[%s8718_s1 + $0xd00] ss:$16 sps:$4 sm:$0xff]  }
 0x1b4   : > { %4161 = vmatprep.subr.bf16.mxu1 %v7484_v8  ;;  %v7530_v8 = vld [vmem:[%s8718_s1 + $0xf00] ss:$16 sps:$4 sm:$0xff]  }
 0x1b6   : > { %4109 = vmatpush1.bf16.msra.mxu0 %v7479_v11  ;;  %v7535_v11 = vld [vmem:[%s8718_s1 + $0xec] ss:$16 sps:$4 sm:$0xff]  }
 0x1b7   : > { %4162 = vmatpush1.bf16.msra.mxu1 %v7482_v12  ;;  %4110 = vmatprep.subr.bf16.mxu0 %v7487_v13  ;;  %v7538_v12 = vld [vmem:[%s8718_s1 + $0x2ec] ss:$16 sps:$4 sm:$0xff]   ;;  %v7533_v13 = vld [vmem:[%s8718_s1 + $0xe8] ss:$16 sps:$4 sm:$0xff]  }
 0x1b8   : > { %4163 = vmatprep.subr.bf16.mxu1 %v7490_v14  ;;  %v7536_v14 = vld [vmem:[%s8718_s1 + $0x2e8] ss:$16 sps:$4 sm:$0xff]  }
 0x1ba   : > { %4111 = vmatpush2.bf16.msra.mxu0 %v7485_v15  ;;  %v534_v15 = vld [vmem:[#allocation3 + $0xb0] sm:$0xff] }
 0x1bb   : > { %4164 = vmatpush2.bf16.msra.mxu1 %v7488_v16  ;;  %4112 = vmatprep.subr.bf16.mxu0 %v7493_v19  ;;  %v542_v16 = vld [vmem:[#allocation3 + $0xf0] sm:$0xff]  ;;  %v9128_v19 = vcombine.low %v9046_v27, %v9048_v28 }
 0x1bc   : > { %4165 = vmatprep.subr.bf16.mxu1 %v7496_v20  ;;  %v9132_v20 = vcombine.low %v9054_v31, %v9056_v32  ;;  %v7539_v31 = vld [vmem:[%s8718_s1 + $0xc8] ss:$16 sps:$4 sm:$0xff]  }
 0x1bd   : > { %v7542_v32 = vld [vmem:[%s8718_s1 + $0x2c8] ss:$16 sps:$4 sm:$0xff]  }
 0x1be   : > { %4113 = vmatpush2.bf16.msra.mxu0 %v7491_v21  ;;  %v535_v21 = vld [vmem:[#allocation3 + $0xb8] sm:$0xff] }
 0x1bf   : > { %4166 = vmatpush2.bf16.msra.mxu1 %v7494_v22  ;;  %4114 = vmatprep.subr.bf16.mxu0 %v7499_v55  ;;  %v543_v22 = vld [vmem:[#allocation3 + $0xf8] sm:$0xff] }
 0x1c0   : > { %4167 = vmatprep.subr.bf16.mxu1 %v7502_v59  ;;  %v7541_v55 = vld [vmem:[%s8718_s1 + $0xcc] ss:$16 sps:$4 sm:$0xff]   ;;  %v9138_v27 = vcombine.high %v535_v21, %v543_v22 }
 0x1c1   : > { %v7544_v59 = vld [vmem:[%s8718_s1 + $0x2cc] ss:$16 sps:$4 sm:$0xff]  }
 0x1c2   : > { %4115 = vmatpush2.bf16.msra.mxu0 %v7497_v60  ;;  %v9136_v60 = vcombine.high %v534_v15, %v542_v16 }
 0x1c3   : > { %4168 = vmatpush2.bf16.msra.mxu1 %v7500_v24  ;;  %4116 = vmatprep.subr.bf16.mxu0 %v7505_v25 }
 0x1c4   : > { %4169 = vmatprep.subr.bf16.mxu1 %v7508_v26  ;;  %v7547_v26 = vld [vmem:[%s8718_s1 + $0xac] ss:$16 sps:$4 sm:$0xff]  }
 0x1c6   : > { %4117 = vmatpush2.bf16.msra.mxu0 %v7503_v39 }
 0x1c7   : > { %4170 = vmatpush2.bf16.msra.mxu1 %v7506_v40  ;;  %4118 = vmatprep.subr.bf16.mxu0 %v7511_v45  ;;  %v7550_v45 = vld [vmem:[%s8718_s1 + $0x2ac] ss:$16 sps:$4 sm:$0xff]  }
 0x1c8   : > { %4171 = vmatprep.subr.bf16.mxu1 %v7514_v46 }
 0x1ca   : > { %4119 = vmatpush2.bf16.msra.mxu0 %v7509_v47 }
 0x1cb   : > { %4172 = vmatpush2.bf16.msra.mxu1 %v7512_v48  ;;  %4120 = vmatprep.subr.bf16.mxu0 %v7517_v49  ;;  %v9154_v48 = vcombine.low %v534_v15, %v542_v16  ;;  %v7545_v49 = vld [vmem:[%s8718_s1 + $0xa8] ss:$16 sps:$4 sm:$0xff]  }
 0x1cc   : > { %4173 = vmatprep.subr.bf16.mxu1 %v7520_v51  ;;  %v7548_v51 = vld [vmem:[%s8718_s1 + $0x2a8] ss:$16 sps:$4 sm:$0xff]  }
 0x1cd   : > { %v7563_v15 = vld [vmem:[%s8718_s1 + $0x48] ss:$16 sps:$4 sm:$0xff]  }
 0x1ce   : > { %4121 = vmatpush2.bf16.msra.mxu0 %v7515_v61  ;;  %v9158_v61 = vcombine.low %v535_v21, %v543_v22  ;;  %v7571_v21 = vld [vmem:[%s8718_s1 + $0x2c] ss:$16 sps:$4 sm:$0xff]  }
 0x1cf   : > { %4174 = vmatpush2.bf16.msra.mxu1 %v7518_v62  ;;  %4122 = vmatprep.subr.bf16.mxu0 %v7523_v1  ;;  %v7553_v1 = vld [vmem:[%s8718_s1 + $0x8c] ss:$16 sps:$4 sm:$0xff]  }
 0x1d0   : > { %4175 = vmatprep.subr.bf16.mxu1 %v7526_v2  ;;  %v7556_v2 = vld [vmem:[%s8718_s1 + $0x28c] ss:$16 sps:$4 sm:$0xff]  }
 0x1d2   : > { %4123 = vmatpush2.bf16.msra.mxu0 %v7521_v3  ;;  %v7551_v3 = vld [vmem:[%s8718_s1 + $0x88] ss:$16 sps:$4 sm:$0xff]  }
 0x1d3   : > { %4176 = vmatpush2.bf16.msra.mxu1 %v7524_v4  ;;  %4124 = vmatprep.subr.bf16.mxu0 %v7529_v5  ;;  %v7554_v4 = vld [vmem:[%s8718_s1 + $0x288] ss:$16 sps:$4 sm:$0xff]   ;;  %v7559_v5 = vld [vmem:[%s8718_s1 + $0x6c] ss:$16 sps:$4 sm:$0xff]  }
 0x1d4   : > { %4177 = vmatprep.subr.bf16.mxu1 %v7532_v6  ;;  %v7562_v6 = vld [vmem:[%s8718_s1 + $0x26c] ss:$16 sps:$4 sm:$0xff]  }
 0x1d6   : > { %4125 = vmatpush2.bf16.msra.mxu0 %v7527_v7  ;;  %v7557_v7 = vld [vmem:[%s8718_s1 + $0x68] ss:$16 sps:$4 sm:$0xff]  }
 0x1d7   : > { %4178 = vmatpush2.bf16.msra.mxu1 %v7530_v8  ;;  %4200 = vmatprep.subr.bf16.mxu0 %v7535_v11  ;;  %v7560_v8 = vld [vmem:[%s8718_s1 + $0x268] ss:$16 sps:$4 sm:$0xff]   ;;  %v7565_v11 = vld [vmem:[%s8718_s1 + $0x4c] ss:$16 sps:$4 sm:$0xff]  }
 0x1d8   : > { %4253 = vmatprep.subr.bf16.mxu1 %v7538_v12 }
 0x1d9   : > { %v3810_v28 = vpop.f32.mrf.mxu0  ;;  %4127 = vmatmul.mubr.bf16.vlgmr.msra.gmra.mxu0 %v9128_v19 }
 0x1da   : > { %v3863_v24 = vpop.f32.mrf.mxu1  ;;  %4180 = vmatmul.mubr.bf16.vlgmr.msra.gmra.mxu1 %v9132_v20  ;;  %4201 = vmatpush1.bf16.msra.mxu0 %v7533_v13 }
 0x1db   : > { %v9144_v25 = vadd.f32 %v3863_v24, %v3810_v28  ;;  %4254 = vmatpush1.bf16.msra.mxu1 %v7536_v14  ;;  %v9147_v39 = vpop.f32.mrf.mxu0  ;;  %4202 = vmatprep.subr.bf16.mxu0 %v7541_v55  ;;  %v7568_v14 = vld [vmem:[%s8718_s1 + $0x24c] ss:$16 sps:$4 sm:$0xff]   ;;  %v7569_v24 = vld [vmem:[%s8718_s1 + $0x28] ss:$16 sps:$4 sm:$0xff]  }
 0x1dc   : > { %v9149_v40 = vpop.f32.mrf.mxu1  ;;  %4255 = vmatprep.subr.bf16.mxu1 %v7544_v59  ;;  %4136 = vmatprep.mubr.bf16.mxu0 %v9136_v60  ;;  %v7574_v55 = vld [vmem:[%s8718_s1 + $0x22c] ss:$16 sps:$4 sm:$0xff]  }
 0x1dd   : > { %4189 = vmatprep.mubr.bf16.mxu1 %v9138_v27  ;;  %v3814_v46 = vpop.f32.mrf.mxu0 }
 0x1de   : > { %v3867_v47 = vpop.f32.mrf.mxu1  ;;  %4203 = vmatpush1.bf16.msra.mxu0 %v7539_v31  ;;  %v7572_v31 = vld [vmem:[%s8718_s1 + $0x228] ss:$16 sps:$4 sm:$0xff]  }
 0x1df   : > { %v9160_v62 = vadd.f32 %v3867_v47, %v3814_v46  ;;  %4256 = vmatpush1.bf16.msra.mxu1 %v7542_v32  ;;  %4204 = vmatprep.subr.bf16.mxu0 %v7547_v26  ;;  %v9175_v12 = vpop.f32.mrf.mxu0  ;;  %v7580_v47 = vld [vmem:[%s8718_s1 + $0x20c] ss:$16 sps:$4 sm:$0xff]  }
 0x1e0   : > { %4257 = vmatprep.subr.bf16.mxu1 %v7550_v45  ;;  %v9177_v13 = vpop.f32.mrf.mxu1  ;;  %v7577_v45 = vld [vmem:[%s8718_s1 + $0xc] ss:$16 sps:$4 sm:$0xff]  }
 0x1e1   : > { %4137 = vmatmul.mubr.bf16.gmra.mxu0 %v9154_v48  ;;  %v3820_v16 = vpop.f32.mrf.mxu0 }
 0x1e2   : > { %4190 = vmatmul.mubr.bf16.gmra.mxu1 %v9158_v61  ;;  %4205 = vmatpush1.bf16.msra.mxu0 %v7545_v49  ;;  %v7575_v49 = vld [vmem:[%s8718_s1 + $0x8] ss:$16 sps:$4 sm:$0xff]  }
 0x1e3   : > { %4258 = vmatpush1.bf16.msra.mxu1 %v7548_v51  ;;  %4206 = vmatprep.subr.bf16.mxu0 %v7553_v1  ;;  %v9186_v59 = vpop.f32.mrf.mxu0  ;;  %v7578_v51 = vld [vmem:[%s8718_s1 + $0x208] ss:$16 sps:$4 sm:$0xff]   ;;  %v7583_v1 = vld [vmem:[%s8718_s1 + $0x1ec] ss:$16 sps:$4 sm:$0xff]  }
 0x1e4   : > { %4259 = vmatprep.subr.bf16.mxu1 %v7556_v2  ;;  %4232 = vmatprep.mubr.bf16.mxu0 %v8793_v54  ;;  %v7566_v54 = vld [vmem:[%s8718_s1 + $0x248] ss:$16 sps:$4 sm:$0xff]   ;;  %v7586_v2 = vld [vmem:[%s8718_s1 + $0x3ec] ss:$16 sps:$4 sm:$0xff]  }
 0x1e5   : > { %4285 = vmatprep.mubr.bf16.mxu1 %v8796_v56  ;;  %v3873_v56 = vpop.f32.mrf.mxu1  ;;  %v3824_v32 = vpop.f32.mrf.mxu0 }
 0x1e6   : > { %4207 = vmatpush1.bf16.msra.mxu0 %v7551_v3  ;;  %v9183_v22 = vadd.f32 %v3873_v56, %v3820_v16  ;;  %v7581_v3 = vld [vmem:[%s8718_s1 + $0x1e8] ss:$16 sps:$4 sm:$0xff]   ;;  %v7601_v16 = vld [vmem:[%s8718_s1 + $0x18c] ss:$16 sps:$4 sm:$0xff]  }
 0x1e7   : > { %4260 = vmatpush1.bf16.msra.mxu1 %v7554_v4  ;;  %4208 = vmatprep.subr.bf16.mxu0 %v7559_v5  ;;  %v9188_v28 = vpop.f32.mrf.mxu1  ;;  %v7584_v4 = vld [vmem:[%s8718_s1 + $0x3e8] ss:$16 sps:$4 sm:$0xff]   ;;  %v7589_v5 = vld [vmem:[%s8718_s1 + $0x1cc] ss:$16 sps:$4 sm:$0xff]  }
 0x1e8   : > { %4261 = vmatprep.subr.bf16.mxu1 %v7562_v6  ;;  %v7592_v6 = vld [vmem:[%s8718_s1 + $0x3cc] ss:$16 sps:$4 sm:$0xff]  }
 0x1e9   : > { %v3877_v26 = vpop.f32.mrf.mxu1  ;;  %v7604_v56 = vld [vmem:[%s8718_s1 + $0x38c] ss:$16 sps:$4 sm:$0xff]  }
 0x1ea   : > { %4209 = vmatpush1.bf16.msra.mxu0 %v7557_v7  ;;  %v9193_v46 = vadd.f32 %v3877_v26, %v3824_v32  ;;  %v7587_v7 = vld [vmem:[%s8718_s1 + $0x1c8] ss:$16 sps:$4 sm:$0xff]  }
 0x1eb   : > { %4262 = vmatpush1.bf16.msra.mxu1 %v7560_v8  ;;  %4210 = vmatprep.subr.bf16.mxu0 %v7565_v11  ;;  %v7590_v8 = vld [vmem:[%s8718_s1 + $0x3c8] ss:$16 sps:$4 sm:$0xff]   ;;  %v7595_v11 = vld [vmem:[%s8718_s1 + $0x1ac] ss:$16 sps:$4 sm:$0xff]  }
 0x1ec   : > { %4263 = vmatprep.subr.bf16.mxu1 %v7568_v14  ;;  %v7598_v14 = vld [vmem:[%s8718_s1 + $0x3ac] ss:$16 sps:$4 sm:$0xff]   ;;  %v7605_v32 = vld [vmem:[%s8718_s1 + $0x168] ss:$16 sps:$4 sm:$0xff]  }
 0x1ed   : > { %v7608_v26 = vld [vmem:[%s8718_s1 + $0x368] ss:$16 sps:$4 sm:$0xff]  }
 0x1ee   : > { %4211 = vmatpush1.bf16.msra.mxu0 %v7563_v15  ;;  %v7593_v15 = vld [vmem:[%s8718_s1 + $0x1a8] ss:$16 sps:$4 sm:$0xff]  }
 0x1ef   : > { %4264 = vmatpush1.bf16.msra.mxu1 %v7566_v54  ;;  %4212 = vmatprep.subr.bf16.mxu0 %v7571_v21  ;;  %v7596_v54 = vld [vmem:[%s8718_s1 + $0x3a8] ss:$16 sps:$4 sm:$0xff]  }
 0x1f0   : > { %4265 = vmatprep.subr.bf16.mxu1 %v7574_v55  ;;  %v7599_v21 = vld [vmem:[%s8718_s1 + $0x188] ss:$16 sps:$4 sm:$0xff]  }
 0x1f1   : > { %v7602_v55 = vld [vmem:[%s8718_s1 + $0x388] ss:$16 sps:$4 sm:$0xff]  }
 0x1f2   : > { %4213 = vmatpush1.bf16.msra.mxu0 %v7569_v24  ;;  %v7607_v24 = vld [vmem:[%s8718_s1 + $0x16c] ss:$16 sps:$4 sm:$0xff]  }
 0x1f3   : > { %4266 = vmatpush1.bf16.msra.mxu1 %v7572_v31  ;;  %4214 = vmatprep.subr.bf16.mxu0 %v7577_v45  ;;  %v7610_v31 = vld [vmem:[%s8718_s1 + $0x36c] ss:$16 sps:$4 sm:$0xff]  }
 0x1f4   : > { %4267 = vmatprep.subr.bf16.mxu1 %v7580_v47  ;;  %v7613_v45 = vld [vmem:[%s8718_s1 + $0x14c] ss:$16 sps:$4 sm:$0xff]  }
 0x1f5   : > { %v7616_v47 = vld [vmem:[%s8718_s1 + $0x34c] ss:$16 sps:$4 sm:$0xff]  }
 0x1f6   : > { %4215 = vmatpush1.bf16.msra.mxu0 %v7575_v49  ;;  %v7611_v49 = vld [vmem:[%s8718_s1 + $0x148] ss:$16 sps:$4 sm:$0xff]  }
 0x1f7   : > { %4268 = vmatpush1.bf16.msra.mxu1 %v7578_v51  ;;  %4216 = vmatprep.subr.bf16.mxu0 %v7583_v1  ;;  %v7614_v51 = vld [vmem:[%s8718_s1 + $0x348] ss:$16 sps:$4 sm:$0xff]   ;;  %v7619_v1 = vld [vmem:[%s8718_s1 + $0x12c] ss:$16 sps:$4 sm:$0xff]  }
 0x1f8   : > { %4269 = vmatprep.subr.bf16.mxu1 %v7586_v2  ;;  %v7622_v2 = vld [vmem:[%s8718_s1 + $0x32c] ss:$16 sps:$4 sm:$0xff]  }
 0x1fa   : > { %4217 = vmatpush2.bf16.msra.mxu0 %v7581_v3  ;;  %v7617_v3 = vld [vmem:[%s8718_s1 + $0x128] ss:$16 sps:$4 sm:$0xff]  }
 0x1fb   : > { %4270 = vmatpush2.bf16.msra.mxu1 %v7584_v4  ;;  %4218 = vmatprep.subr.bf16.mxu0 %v7589_v5  ;;  %v7620_v4 = vld [vmem:[%s8718_s1 + $0x328] ss:$16 sps:$4 sm:$0xff]   ;;  %v7625_v5 = vld [vmem:[%s8718_s1 + $0x10c] ss:$16 sps:$4 sm:$0xff]  }
 0x1fc   : > { %4271 = vmatprep.subr.bf16.mxu1 %v7592_v6  ;;  %v7628_v6 = vld [vmem:[%s8718_s1 + $0x30c] ss:$16 sps:$4 sm:$0xff]  }
 0x1fe   : > { %4219 = vmatpush2.bf16.msra.mxu0 %v7587_v7  ;;  %v7623_v7 = vld [vmem:[%s8718_s1 + $0x108] ss:$16 sps:$4 sm:$0xff]  }
 0x1ff   : > { %4272 = vmatpush2.bf16.msra.mxu1 %v7590_v8  ;;  %4220 = vmatprep.subr.bf16.mxu0 %v7595_v11  ;;  %v7626_v8 = vld [vmem:[%s8718_s1 + $0x308] ss:$16 sps:$4 sm:$0xff]   ;;  %v7631_v11 = vld [vmem:[%s8718_s1 + $0x4ec] ss:$16 sps:$4 sm:$0xff]  }
 0x200   : > { %4273 = vmatprep.subr.bf16.mxu1 %v7598_v14  ;;  %v7634_v14 = vld [vmem:[%s8718_s1 + $0x6ec] ss:$16 sps:$4 sm:$0xff]  }
 0x202   : > { %4221 = vmatpush2.bf16.msra.mxu0 %v7593_v15  ;;  %v7629_v15 = vld [vmem:[%s8718_s1 + $0x4e8] ss:$16 sps:$4 sm:$0xff]  }
 0x203   : > { %4274 = vmatpush2.bf16.msra.mxu1 %v7596_v54  ;;  %4222 = vmatprep.subr.bf16.mxu0 %v7601_v16  ;;  %v7632_v54 = vld [vmem:[%s8718_s1 + $0x6e8] ss:$16 sps:$4 sm:$0xff]   ;;  %v9234_v16 = vpop.f32.mrf.mxu0 }
 0x204   : > { %4275 = vmatprep.subr.bf16.mxu1 %v7604_v56  ;;  %v9236_v56 = vpop.f32.mrf.mxu1 }
 0x206   : > { %4223 = vmatpush2.bf16.msra.mxu0 %v7599_v21  ;;  %v7637_v21 = vld [vmem:[%s8718_s1 + $0x4cc] ss:$16 sps:$4 sm:$0xff]  }
 0x207   : > { %4276 = vmatpush2.bf16.msra.mxu1 %v7602_v55  ;;  %4224 = vmatprep.subr.bf16.mxu0 %v7607_v24  ;;  %v7640_v55 = vld [vmem:[%s8718_s1 + $0x6cc] ss:$16 sps:$4 sm:$0xff]   ;;  %v7635_v24 = vld [vmem:[%s8718_s1 + $0x4c8] ss:$16 sps:$4 sm:$0xff]  }
 0x208   : > { %4277 = vmatprep.subr.bf16.mxu1 %v7610_v31  ;;  %v7638_v31 = vld [vmem:[%s8718_s1 + $0x6c8] ss:$16 sps:$4 sm:$0xff]  }
 0x20a   : > { %4225 = vmatpush2.bf16.msra.mxu0 %v7605_v32 }
 0x20b   : > { %4278 = vmatpush2.bf16.msra.mxu1 %v7608_v26  ;;  %4226 = vmatprep.subr.bf16.mxu0 %v7613_v45 }
 0x20c   : > { %4279 = vmatprep.subr.bf16.mxu1 %v7616_v47 }
 0x20e   : > { %4227 = vmatpush2.bf16.msra.mxu0 %v7611_v49 }
 0x20f   : > { %4280 = vmatpush2.bf16.msra.mxu1 %v7614_v51  ;;  %4228 = vmatprep.subr.bf16.mxu0 %v7619_v1  ;;  %v7643_v51 = vld [vmem:[%s8718_s1 + $0x4ac] ss:$16 sps:$4 sm:$0xff]  }
 0x210   : > { %4281 = vmatprep.subr.bf16.mxu1 %v7622_v2  ;;  %v7646_v1 = vld [vmem:[%s8718_s1 + $0x6ac] ss:$16 sps:$4 sm:$0xff]  }
 0x212   : > { %4229 = vmatpush2.bf16.msra.mxu0 %v7617_v3  ;;  %v7641_v3 = vld [vmem:[%s8718_s1 + $0x4a8] ss:$16 sps:$4 sm:$0xff]  }
 0x213   : > { %4282 = vmatpush2.bf16.msra.mxu1 %v7620_v4  ;;  %4230 = vmatprep.subr.bf16.mxu0 %v7625_v5  ;;  %v7649_v4 = vld [vmem:[%s8718_s1 + $0x48c] ss:$16 sps:$4 sm:$0xff]  }
 0x214   : > { %4283 = vmatprep.subr.bf16.mxu1 %v7628_v6  ;;  %v7652_v5 = vld [vmem:[%s8718_s1 + $0x68c] ss:$16 sps:$4 sm:$0xff]  }
 0x216   : > { %4231 = vmatpush2.bf16.msra.mxu0 %v7623_v7 }
 0x217   : > { %4284 = vmatpush2.bf16.msra.mxu1 %v7626_v8  ;;  %4306 = vmatprep.subr.bf16.mxu0 %v7631_v11 }
 0x218   : > { %4359 = vmatprep.subr.bf16.mxu1 %v7634_v14 }
 0x219   : > { %v3916_v32 = vpop.f32.mrf.mxu0  ;;  %4233 = vmatmul.mubr.bf16.vlgmr.msra.gmra.mxu0 %v8816_v9  ;;  %v7644_v9 = vld [vmem:[%s8718_s1 + $0x6a8] ss:$16 sps:$4 sm:$0xff]  }
 0x21a   : > { %v3969_v26 = vpop.f32.mrf.mxu1  ;;  %4286 = vmatmul.mubr.bf16.vlgmr.msra.gmra.mxu1 %v8818_v10  ;;  %v3917_v45 = vadd.f32 %v3916_v32, %v9144_v25  ;;  %4307 = vmatpush1.bf16.msra.mxu0 %v7629_v15  ;;  %v7653_v32 = vld [vmem:[%s8718_s1 + $0x468] ss:$16 sps:$4 sm:$0xff]  }
 0x21b   : > { %4360 = vmatpush1.bf16.msra.mxu1 %v7632_v54  ;;  %v9245_v47 = vpop.f32.mrf.mxu0  ;;  %4308 = vmatprep.subr.bf16.mxu0 %v7637_v21  ;;  %v7655_v54 = vld [vmem:[%s8718_s1 + $0x46c] ss:$16 sps:$4 sm:$0xff]  }
 0x21c   : > { %v9247_v49 = vpop.f32.mrf.mxu1  ;;  %4361 = vmatprep.subr.bf16.mxu1 %v7640_v55  ;;  %v9251_v2 = vadd.f32 %v3969_v26, %v3917_v45  ;;  %4242 = vmatprep.mubr.bf16.mxu0 %v8841_v34  ;;  %v7647_v34 = vld [vmem:[%s8718_s1 + $0x488] ss:$16 sps:$4 sm:$0xff]   ;;  %v7658_v21 = vld [vmem:[%s8718_s1 + $0x66c] ss:$16 sps:$4 sm:$0xff]  }
 0x21d   : > { %4295 = vmatprep.mubr.bf16.mxu1 %v8843_v35  ;;  %v3920_v10 = vpop.f32.mrf.mxu0  ;;  %v7650_v35 = vld [vmem:[%s8718_s1 + $0x688] ss:$16 sps:$4 sm:$0xff]   ;;  %v7661_v26 = vld [vmem:[%s8718_s1 + $0x44c] ss:$16 sps:$4 sm:$0xff]  }
 0x21e   : > { %v3973_v25 = vpop.f32.mrf.mxu1  ;;  %v3921_v6 = vadd.f32 %v3920_v10, %v9160_v62  ;;  %4309 = vmatpush1.bf16.msra.mxu0 %v7635_v24  ;;  %v7664_v45 = vld [vmem:[%s8718_s1 + $0x64c] ss:$16 sps:$4 sm:$0xff]   ;;  %v7668_v10 = vld [vmem:[%s8718_s1 + $0x628] ss:$16 sps:$4 sm:$0xff]  }
 0x21f   : > { %4362 = vmatpush1.bf16.msra.mxu1 %v7638_v31  ;;  %v9260_v7 = vpop.f32.mrf.mxu0  ;;  %4310 = vmatprep.subr.bf16.mxu0 %v7643_v51 }
 0x220   : > { %v9262_v8 = vpop.f32.mrf.mxu1  ;;  %4363 = vmatprep.subr.bf16.mxu1 %v7646_v1  ;;  %v9264_v11 = vadd.f32 %v3973_v25, %v3921_v6  ;;  %v7673_v25 = vld [vmem:[%s8718_s1 + $0x40c] ss:$16 sps:$4 sm:$0xff]   ;;  %v7674_v6 = vld [vmem:[%s8718_s1 + $0x608] ss:$16 sps:$4 sm:$0xff]  }
 0x221   : > { %v3926_v14 = vpop.f32.mrf.mxu0  ;;  %4243 = vmatmul.mubr.bf16.gmra.mxu0 %v8845_v36  ;;  %v7656_v36 = vld [vmem:[%s8718_s1 + $0x668] ss:$16 sps:$4 sm:$0xff]  }
 0x222   : > { %v3979_v15 = vpop.f32.mrf.mxu1  ;;  %4296 = vmatmul.mubr.bf16.gmra.mxu1 %v8848_v38  ;;  %v3927_v62 = vadd.f32 %v3926_v14, %v9183_v22  ;;  %4311 = vmatpush1.bf16.msra.mxu0 %v7641_v3  ;;  %v7659_v3 = vld [vmem:[%s8718_s1 + $0x448] ss:$16 sps:$4 sm:$0xff]  }
 0x223   : > { %4364 = vmatpush1.bf16.msra.mxu1 %v7644_v9  ;;  %v9273_v55 = vpop.f32.mrf.mxu0  ;;  %4312 = vmatprep.subr.bf16.mxu0 %v7649_v4  ;;  %v7670_v9 = vld [vmem:[%s8718_s1 + $0x62c] ss:$16 sps:$4 sm:$0xff]   ;;  %v7677_v14 = vld [vmem:[%s8718_s1 + $0x5e8] ss:$16 sps:$4 sm:$0xff]  }
 0x224   : > { %v9275_v24 = vpop.f32.mrf.mxu1  ;;  %4365 = vmatprep.subr.bf16.mxu1 %v7652_v5  ;;  %v9277_v31 = vadd.f32 %v3979_v15, %v3927_v62  ;;  %4338 = vmatprep.mubr.bf16.mxu0 %v8870_v50  ;;  %v7662_v50 = vld [vmem:[%s8718_s1 + $0x648] ss:$16 sps:$4 sm:$0xff]   ;;  %v7676_v4 = vld [vmem:[%s8718_s1 + $0x60c] ss:$16 sps:$4 sm:$0xff]  }
 0x225   : > { %4391 = vmatprep.mubr.bf16.mxu1 %v8876_v52  ;;  %v3930_v38 = vpop.f32.mrf.mxu0  ;;  %v7667_v52 = vld [vmem:[%s8718_s1 + $0x42c] ss:$16 sps:$4 sm:$0xff]   ;;  %v7671_v5 = vld [vmem:[%s8718_s1 + $0x408] ss:$16 sps:$4 sm:$0xff]  }
 0x226   : > { %v3983_v22 = vpop.f32.mrf.mxu1  ;;  %v3931_v51 = vadd.f32 %v3930_v38, %v9193_v46  ;;  %4313 = vmatpush1.bf16.msra.mxu0 %v7647_v34  ;;  %v7665_v46 = vld [vmem:[%s8718_s1 + $0x428] ss:$16 sps:$4 sm:$0xff]   ;;  %v7679_v34 = vld [vmem:[%s8718_s1 + $0x5ec] ss:$16 sps:$4 sm:$0xff]  }
 0x227   : > { %4366 = vmatpush1.bf16.msra.mxu1 %v7650_v35  ;;  %4314 = vmatprep.subr.bf16.mxu0 %v7655_v54  ;;  %v7682_v35 = vld [vmem:[%s8718_s1 + $0x7ec] ss:$16 sps:$4 sm:$0xff]   ;;  %v7680_v15 = vld [vmem:[%s8718_s1 + $0x7e8] ss:$16 sps:$4 sm:$0xff]  }
 0x228   : > { %4367 = vmatprep.subr.bf16.mxu1 %v7658_v21  ;;  %v9286_v1 = vadd.f32 %v3983_v22, %v3931_v51  ;;  %v7685_v54 = vld [vmem:[%s8718_s1 + $0x5cc] ss:$16 sps:$4 sm:$0xff]   ;;  %v7683_v62 = vld [vmem:[%s8718_s1 + $0x5c8] ss:$16 sps:$4 sm:$0xff]  }
 0x229   : > { %v7688_v21 = vld [vmem:[%s8718_s1 + $0x7cc] ss:$16 sps:$4 sm:$0xff]   ;;  %v7689_v22 = vld [vmem:[%s8718_s1 + $0x5a8] ss:$16 sps:$4 sm:$0xff]  }
 0x22a   : > { %4315 = vmatpush1.bf16.msra.mxu0 %v7653_v32  ;;  %v7686_v32 = vld [vmem:[%s8718_s1 + $0x7c8] ss:$16 sps:$4 sm:$0xff]   ;;  %v7694_v38 = vld [vmem:[%s8718_s1 + $0x7ac] ss:$16 sps:$4 sm:$0xff]  }
 0x22b   : > { %4368 = vmatpush1.bf16.msra.mxu1 %v7656_v36  ;;  %4316 = vmatprep.subr.bf16.mxu0 %v7661_v26  ;;  %v7691_v36 = vld [vmem:[%s8718_s1 + $0x5ac] ss:$16 sps:$4 sm:$0xff]   ;;  %v7692_v26 = vld [vmem:[%s8718_s1 + $0x7a8] ss:$16 sps:$4 sm:$0xff]  }
 0x22c   : > { %4369 = vmatprep.subr.bf16.mxu1 %v7664_v45  ;;  %v7697_v45 = vld [vmem:[%s8718_s1 + $0x58c] ss:$16 sps:$4 sm:$0xff]  }
 0x22d   : > { %v7700_v51 = vld [vmem:[%s8718_s1 + $0x78c] ss:$16 sps:$4 sm:$0xff]  }
 0x22e   : > { %4317 = vmatpush1.bf16.msra.mxu0 %v7659_v3  ;;  %v7695_v3 = vld [vmem:[%s8718_s1 + $0x588] ss:$16 sps:$4 sm:$0xff]  }
 0x22f   : > { %4370 = vmatpush1.bf16.msra.mxu1 %v7662_v50  ;;  %4318 = vmatprep.subr.bf16.mxu0 %v7667_v52  ;;  %v7698_v50 = vld [vmem:[%s8718_s1 + $0x788] ss:$16 sps:$4 sm:$0xff]   ;;  %v7703_v52 = vld [vmem:[%s8718_s1 + $0x56c] ss:$16 sps:$4 sm:$0xff]  }
 0x230   : > { %4371 = vmatprep.subr.bf16.mxu1 %v7670_v9  ;;  %v7706_v9 = vld [vmem:[%s8718_s1 + $0x76c] ss:$16 sps:$4 sm:$0xff]  }
 0x232   : > { %4319 = vmatpush1.bf16.msra.mxu0 %v7665_v46  ;;  %v7701_v46 = vld [vmem:[%s8718_s1 + $0x568] ss:$16 sps:$4 sm:$0xff]  }
 0x233   : > { %4372 = vmatpush1.bf16.msra.mxu1 %v7668_v10  ;;  %4320 = vmatprep.subr.bf16.mxu0 %v7673_v25  ;;  %v7704_v10 = vld [vmem:[%s8718_s1 + $0x768] ss:$16 sps:$4 sm:$0xff]   ;;  %v7709_v25 = vld [vmem:[%s8718_s1 + $0x54c] ss:$16 sps:$4 sm:$0xff]  }
 0x234   : > { %4373 = vmatprep.subr.bf16.mxu1 %v7676_v4  ;;  %v7712_v4 = vld [vmem:[%s8718_s1 + $0x74c] ss:$16 sps:$4 sm:$0xff]  }
 0x236   : > { %4321 = vmatpush1.bf16.msra.mxu0 %v7671_v5  ;;  %v7707_v5 = vld [vmem:[%s8718_s1 + $0x548] ss:$16 sps:$4 sm:$0xff]  }
 0x237   : > { %4374 = vmatpush1.bf16.msra.mxu1 %v7674_v6  ;;  %4322 = vmatprep.subr.bf16.mxu0 %v7679_v34  ;;  %v7710_v6 = vld [vmem:[%s8718_s1 + $0x748] ss:$16 sps:$4 sm:$0xff]   ;;  %v7715_v34 = vld [vmem:[%s8718_s1 + $0x52c] ss:$16 sps:$4 sm:$0xff]  }
 0x238   : > { %4375 = vmatprep.subr.bf16.mxu1 %v7682_v35  ;;  %v7718_v35 = vld [vmem:[%s8718_s1 + $0x72c] ss:$16 sps:$4 sm:$0xff]  }
 0x23a   : > { %4323 = vmatpush2.bf16.msra.mxu0 %v7677_v14  ;;  %v7713_v14 = vld [vmem:[%s8718_s1 + $0x528] ss:$16 sps:$4 sm:$0xff]  }
 0x23b   : > { %4376 = vmatpush2.bf16.msra.mxu1 %v7680_v15  ;;  %4324 = vmatprep.subr.bf16.mxu0 %v7685_v54  ;;  %v7716_v15 = vld [vmem:[%s8718_s1 + $0x728] ss:$16 sps:$4 sm:$0xff]   ;;  %v7721_v54 = vld [vmem:[%s8718_s1 + $0x50c] ss:$16 sps:$4 sm:$0xff]  }
 0x23c   : > { %4377 = vmatprep.subr.bf16.mxu1 %v7688_v21  ;;  %v7724_v21 = vld [vmem:[%s8718_s1 + $0x70c] ss:$16 sps:$4 sm:$0xff]  }
 0x23e   : > { %4325 = vmatpush2.bf16.msra.mxu0 %v7683_v62  ;;  %v7719_v62 = vld [vmem:[%s8718_s1 + $0x508] ss:$16 sps:$4 sm:$0xff]  }
 0x23f   : > { %4378 = vmatpush2.bf16.msra.mxu1 %v7686_v32  ;;  %4326 = vmatprep.subr.bf16.mxu0 %v7691_v36  ;;  %v7722_v32 = vld [vmem:[%s8718_s1 + $0x708] ss:$16 sps:$4 sm:$0xff]   ;;  %v7727_v36 = vld [vmem:[%s8718_s1 + $0x8ec] ss:$16 sps:$4 sm:$0xff]  }
 0x240   : > { %4379 = vmatprep.subr.bf16.mxu1 %v7694_v38  ;;  %v7730_v38 = vld [vmem:[%s8718_s1 + $0xaec] ss:$16 sps:$4 sm:$0xff]  }
 0x242   : > { %4327 = vmatpush2.bf16.msra.mxu0 %v7689_v22  ;;  %v7725_v22 = vld [vmem:[%s8718_s1 + $0x8e8] ss:$16 sps:$4 sm:$0xff]  }
 0x243   : > { %4380 = vmatpush2.bf16.msra.mxu1 %v7692_v26  ;;  %4328 = vmatprep.subr.bf16.mxu0 %v7697_v45  ;;  %v7728_v26 = vld [vmem:[%s8718_s1 + $0xae8] ss:$16 sps:$4 sm:$0xff]   ;;  %v7733_v45 = vld [vmem:[%s8718_s1 + $0x8cc] ss:$16 sps:$4 sm:$0xff]  }
 0x244   : > { %4381 = vmatprep.subr.bf16.mxu1 %v7700_v51  ;;  %v7736_v51 = vld [vmem:[%s8718_s1 + $0xacc] ss:$16 sps:$4 sm:$0xff]  }
 0x246   : > { %4329 = vmatpush2.bf16.msra.mxu0 %v7695_v3  ;;  %v9336_v3 = vpop.f32.mrf.mxu0 }
 0x247   : > { %4382 = vmatpush2.bf16.msra.mxu1 %v7698_v50  ;;  %4330 = vmatprep.subr.bf16.mxu0 %v7703_v52  ;;  %v9338_v50 = vpop.f32.mrf.mxu1  ;;  %v7731_v52 = vld [vmem:[%s8718_s1 + $0x8c8] ss:$16 sps:$4 sm:$0xff]  }
 0x248   : > { %4383 = vmatprep.subr.bf16.mxu1 %v7706_v9  ;;  %v7734_v9 = vld [vmem:[%s8718_s1 + $0xac8] ss:$16 sps:$4 sm:$0xff]  }
 0x24a   : > { %4331 = vmatpush2.bf16.msra.mxu0 %v7701_v46 }
 0x24b   : > { %4384 = vmatpush2.bf16.msra.mxu1 %v7704_v10  ;;  %4332 = vmatprep.subr.bf16.mxu0 %v7709_v25  ;;  %v7739_v25 = vld [vmem:[%s8718_s1 + $0x8ac] ss:$16 sps:$4 sm:$0xff]  }
 0x24c   : > { %4385 = vmatprep.subr.bf16.mxu1 %v7712_v4  ;;  %v7742_v4 = vld [vmem:[%s8718_s1 + $0xaac] ss:$16 sps:$4 sm:$0xff]  }
 0x24e   : > { %4333 = vmatpush2.bf16.msra.mxu0 %v7707_v5 }
 0x24f   : > { %4386 = vmatpush2.bf16.msra.mxu1 %v7710_v6  ;;  %4334 = vmatprep.subr.bf16.mxu0 %v7715_v34 }
 0x250   : > { %4387 = vmatprep.subr.bf16.mxu1 %v7718_v35 }
 0x252   : > { %4335 = vmatpush2.bf16.msra.mxu0 %v7713_v14 }
 0x253   : > { %4388 = vmatpush2.bf16.msra.mxu1 %v7716_v15  ;;  %4336 = vmatprep.subr.bf16.mxu0 %v7721_v54  ;;  %v7748_v54 = vld [vmem:[%s8718_s1 + $0xa8c] ss:$16 sps:$4 sm:$0xff]  }
 0x254   : > { %4389 = vmatprep.subr.bf16.mxu1 %v7724_v21 }
 0x256   : > { %4337 = vmatpush2.bf16.msra.mxu0 %v7719_v62 }
 0x257   : > { %4390 = vmatpush2.bf16.msra.mxu1 %v7722_v32  ;;  %4412 = vmatprep.subr.bf16.mxu0 %v7727_v36 }
 0x258   : > { %4465 = vmatprep.subr.bf16.mxu1 %v7730_v38 }
 0x259   : > { %v4022_v46 = vpop.f32.mrf.mxu0  ;;  %4339 = vmatmul.mubr.bf16.vlgmr.msra.gmra.mxu0 %v8920_v33  ;;  %v7737_v33 = vld [vmem:[%s8718_s1 + $0x8a8] ss:$16 sps:$4 sm:$0xff]  }
 0x25a   : > { %v4075_v10 = vpop.f32.mrf.mxu1  ;;  %4392 = vmatmul.mubr.bf16.vlgmr.msra.gmra.mxu1 %v8924_v37  ;;  %v4023_v5 = vadd.f32 %v4022_v46, %v9251_v2  ;;  %4413 = vmatpush1.bf16.msra.mxu0 %v7725_v22  ;;  %v7740_v37 = vld [vmem:[%s8718_s1 + $0xaa8] ss:$16 sps:$4 sm:$0xff]   ;;  %v7745_v2 = vld [vmem:[%s8718_s1 + $0x88c] ss:$16 sps:$4 sm:$0xff]  }
 0x25b   : > { %4466 = vmatpush1.bf16.msra.mxu1 %v7728_v26  ;;  %v9347_v6 = vpop.f32.mrf.mxu0  ;;  %4414 = vmatprep.subr.bf16.mxu0 %v7733_v45  ;;  %v7751_v26 = vld [vmem:[%s8718_s1 + $0x86c] ss:$16 sps:$4 sm:$0xff]   ;;  %v7749_v46 = vld [vmem:[%s8718_s1 + $0x868] ss:$16 sps:$4 sm:$0xff]  }
 0x25c   : > { %v9349_v34 = vpop.f32.mrf.mxu1  ;;  %4467 = vmatprep.subr.bf16.mxu1 %v7736_v51  ;;  %v9351_v35 = vadd.f32 %v4075_v10, %v4023_v5  ;;  %4348 = vmatprep.mubr.bf16.mxu0 %v8928_v43  ;;  %v7754_v45 = vld [vmem:[%s8718_s1 + $0xa6c] ss:$16 sps:$4 sm:$0xff]   ;;  %v7752_v10 = vld [vmem:[%s8718_s1 + $0xa68] ss:$16 sps:$4 sm:$0xff]  }
 0x25d   : > { %4401 = vmatprep.mubr.bf16.mxu1 %v8930_v44  ;;  %v4026_v14 = vpop.f32.mrf.mxu0  ;;  %v7743_v44 = vld [vmem:[%s8718_s1 + $0x888] ss:$16 sps:$4 sm:$0xff]   ;;  %v7763_v5 = vld [vmem:[%s8718_s1 + $0x82c] ss:$16 sps:$4 sm:$0xff]  }
 0x25e   : > { %v4079_v15 = vpop.f32.mrf.mxu1  ;;  %v4027_v21 = vadd.f32 %v4026_v14, %v9264_v11  ;;  %4415 = vmatpush1.bf16.msra.mxu0 %v7731_v52  ;;  %v7746_v11 = vld [vmem:[%s8718_s1 + $0xa88] ss:$16 sps:$4 sm:$0xff]  }
 0x25f   : > { %4468 = vmatpush1.bf16.msra.mxu1 %v7734_v9  ;;  %v9360_v62 = vpop.f32.mrf.mxu0  ;;  %4416 = vmatprep.subr.bf16.mxu0 %v7739_v25  ;;  %v7757_v25 = vld [vmem:[%s8718_s1 + $0x84c] ss:$16 sps:$4 sm:$0xff]   ;;  %v7764_v14 = vld [vmem:[%s8718_s1 + $0xa28] ss:$16 sps:$4 sm:$0xff]  }
 0x260   : > { %v9362_v32 = vpop.f32.mrf.mxu1  ;;  %4469 = vmatprep.subr.bf16.mxu1 %v7742_v4  ;;  %v9364_v43 = vadd.f32 %v4079_v15, %v4027_v21  ;;  %v7769_v15 = vld [vmem:[%s8718_s1 + $0x80c] ss:$16 sps:$4 sm:$0xff]   ;;  %v7770_v21 = vld [vmem:[%s8718_s1 + $0xa08] ss:$16 sps:$4 sm:$0xff]  }
 0x261   : > { %v4032_v36 = vpop.f32.mrf.mxu0  ;;  %4349 = vmatmul.mubr.bf16.gmra.mxu0 %v8946_v57 }
 0x262   : > { %v4085_v38 = vpop.f32.mrf.mxu1  ;;  %4402 = vmatmul.mubr.bf16.gmra.mxu1 %v8948_v58  ;;  %v4033_v22 = vadd.f32 %v4032_v36, %v9277_v31  ;;  %4417 = vmatpush1.bf16.msra.mxu0 %v7737_v33  ;;  %v7766_v33 = vld [vmem:[%s8718_s1 + $0xa2c] ss:$16 sps:$4 sm:$0xff]  }
 0x263   : > { %4470 = vmatpush1.bf16.msra.mxu1 %v7740_v37  ;;  %v9373_v51 = vpop.f32.mrf.mxu0  ;;  %4418 = vmatprep.subr.bf16.mxu0 %v7745_v2  ;;  %v7761_v37 = vld [vmem:[%s8718_s1 + $0x828] ss:$16 sps:$4 sm:$0xff]   ;;  %v7772_v2 = vld [vmem:[%s8718_s1 + $0xa0c] ss:$16 sps:$4 sm:$0xff]  }
 0x264   : > { %v9375_v52 = vpop.f32.mrf.mxu1  ;;  %4471 = vmatprep.subr.bf16.mxu1 %v7748_v54  ;;  %v9377_v57 = vadd.f32 %v4085_v38, %v4033_v22  ;;  %4444 = vmatprep.mubr.bf16.mxu0 %v8958_v63  ;;  %v7760_v63 = vld [vmem:[%s8718_s1 + $0xa4c] ss:$16 sps:$4 sm:$0xff]   ;;  %v7767_v54 = vld [vmem:[%s8718_s1 + $0x808] ss:$16 sps:$4 sm:$0xff]  }
 0x265   : > { %4497 = vmatprep.mubr.bf16.mxu1 %v8962_v0  ;;  %v4036_v58 = vpop.f32.mrf.mxu0  ;;  %v7755_v0 = vld [vmem:[%s8718_s1 + $0x848] ss:$16 sps:$4 sm:$0xff]   ;;  %v7778_v36 = vld [vmem:[%s8718_s1 + $0xbec] ss:$16 sps:$4 sm:$0xff]  }
 0x266   : > { %v4089_v31 = vpop.f32.mrf.mxu1  ;;  %v4037_v9 = vadd.f32 %v4036_v58, %v9286_v1  ;;  %4419 = vmatpush1.bf16.msra.mxu0 %v7743_v44  ;;  %v7758_v1 = vld [vmem:[%s8718_s1 + $0xa48] ss:$16 sps:$4 sm:$0xff]   ;;  %v7775_v44 = vld [vmem:[%s8718_s1 + $0x9ec] ss:$16 sps:$4 sm:$0xff]  }
 0x267   : > { %4472 = vmatpush1.bf16.msra.mxu1 %v7746_v11  ;;  %4420 = vmatprep.subr.bf16.mxu0 %v7751_v26  ;;  %v7773_v38 = vld [vmem:[%s8718_s1 + $0x9e8] ss:$16 sps:$4 sm:$0xff]   ;;  %v7781_v22 = vld [vmem:[%s8718_s1 + $0x9cc] ss:$16 sps:$4 sm:$0xff]  }
 0x268   : > { %4473 = vmatprep.subr.bf16.mxu1 %v7754_v45  ;;  %v9386_v4 = vadd.f32 %v4089_v31, %v4037_v9  ;;  %v7776_v11 = vld [vmem:[%s8718_s1 + $0xbe8] ss:$16 sps:$4 sm:$0xff]   ;;  %v7784_v26 = vld [vmem:[%s8718_s1 + $0xbcc] ss:$16 sps:$4 sm:$0xff]  }
 0x269   : > { %v7779_v45 = vld [vmem:[%s8718_s1 + $0x9c8] ss:$16 sps:$4 sm:$0xff]   ;;  %v7787_v31 = vld [vmem:[%s8718_s1 + $0x9ac] ss:$16 sps:$4 sm:$0xff]  }
 0x26a   : > { %4421 = vmatpush1.bf16.msra.mxu0 %v7749_v46  ;;  %v7782_v58 = vld [vmem:[%s8718_s1 + $0xbc8] ss:$16 sps:$4 sm:$0xff]   ;;  %v7790_v9 = vld [vmem:[%s8718_s1 + $0xbac] ss:$16 sps:$4 sm:$0xff]  }
 0x26b   : > { %4474 = vmatpush1.bf16.msra.mxu1 %v7752_v10  ;;  %4422 = vmatprep.subr.bf16.mxu0 %v7757_v25  ;;  %v7785_v46 = vld [vmem:[%s8718_s1 + $0x9a8] ss:$16 sps:$4 sm:$0xff]   ;;  %v7793_v25 = vld [vmem:[%s8718_s1 + $0x98c] ss:$16 sps:$4 sm:$0xff]  }
 0x26c   : > { %4475 = vmatprep.subr.bf16.mxu1 %v7760_v63  ;;  %v7788_v10 = vld [vmem:[%s8718_s1 + $0xba8] ss:$16 sps:$4 sm:$0xff]   ;;  %v7796_v63 = vld [vmem:[%s8718_s1 + $0xb8c] ss:$16 sps:$4 sm:$0xff]  }
 0x26e   : > { %4423 = vmatpush1.bf16.msra.mxu0 %v7755_v0  ;;  %v7791_v0 = vld [vmem:[%s8718_s1 + $0x988] ss:$16 sps:$4 sm:$0xff]  }
 0x26f   : > { %4476 = vmatpush1.bf16.msra.mxu1 %v7758_v1  ;;  %4424 = vmatprep.subr.bf16.mxu0 %v7763_v5  ;;  %v7794_v1 = vld [vmem:[%s8718_s1 + $0xb88] ss:$16 sps:$4 sm:$0xff]   ;;  %v7799_v5 = vld [vmem:[%s8718_s1 + $0x96c] ss:$16 sps:$4 sm:$0xff]  }
 0x270   : > { %4477 = vmatprep.subr.bf16.mxu1 %v7766_v33  ;;  %v7802_v33 = vld [vmem:[%s8718_s1 + $0xb6c] ss:$16 sps:$4 sm:$0xff]  }
 0x272   : > { %4425 = vmatpush1.bf16.msra.mxu0 %v7761_v37  ;;  %v7797_v37 = vld [vmem:[%s8718_s1 + $0x968] ss:$16 sps:$4 sm:$0xff]  }
 0x273   : > { %4478 = vmatpush1.bf16.msra.mxu1 %v7764_v14  ;;  %4426 = vmatprep.subr.bf16.mxu0 %v7769_v15  ;;  %v7800_v14 = vld [vmem:[%s8718_s1 + $0xb68] ss:$16 sps:$4 sm:$0xff]   ;;  %v7805_v15 = vld [vmem:[%s8718_s1 + $0x94c] ss:$16 sps:$4 sm:$0xff]  }
 0x274   : > { %4479 = vmatprep.subr.bf16.mxu1 %v7772_v2  ;;  %v7808_v2 = vld [vmem:[%s8718_s1 + $0xb4c] ss:$16 sps:$4 sm:$0xff]  }
 0x276   : > { %4427 = vmatpush1.bf16.msra.mxu0 %v7767_v54  ;;  %v7803_v54 = vld [vmem:[%s8718_s1 + $0x948] ss:$16 sps:$4 sm:$0xff]  }
 0x277   : > { %4480 = vmatpush1.bf16.msra.mxu1 %v7770_v21  ;;  %4428 = vmatprep.subr.bf16.mxu0 %v7775_v44  ;;  %v7806_v21 = vld [vmem:[%s8718_s1 + $0xb48] ss:$16 sps:$4 sm:$0xff]   ;;  %v7811_v44 = vld [vmem:[%s8718_s1 + $0x92c] ss:$16 sps:$4 sm:$0xff]  }
 0x278   : > { %4481 = vmatprep.subr.bf16.mxu1 %v7778_v36  ;;  %v7814_v36 = vld [vmem:[%s8718_s1 + $0xb2c] ss:$16 sps:$4 sm:$0xff]  }
 0x27a   : > { %4429 = vmatpush2.bf16.msra.mxu0 %v7773_v38  ;;  %v7809_v38 = vld [vmem:[%s8718_s1 + $0x928] ss:$16 sps:$4 sm:$0xff]  }
 0x27b   : > { %4482 = vmatpush2.bf16.msra.mxu1 %v7776_v11  ;;  %4430 = vmatprep.subr.bf16.mxu0 %v7781_v22  ;;  %v7812_v11 = vld [vmem:[%s8718_s1 + $0xb28] ss:$16 sps:$4 sm:$0xff]   ;;  %v4626_v22 = vlaneseq }
 0x27c   : > { %4483 = vmatprep.subr.bf16.mxu1 %v7784_v26  ;;  %v7817_v26 = vld [vmem:[%s8718_s1 + $0x90c] ss:$16 sps:$4 sm:$0xff]  }
 0x27e   : > { %4431 = vmatpush2.bf16.msra.mxu0 %v7779_v45  ;;  %v7820_v45 = vld [vmem:[%s8718_s1 + $0xb0c] ss:$16 sps:$4 sm:$0xff]  }
 0x27f   : > { %4484 = vmatpush2.bf16.msra.mxu1 %v7782_v58  ;;  %4432 = vmatprep.subr.bf16.mxu0 %v7787_v31  ;;  %v7815_v58 = vld [vmem:[%s8718_s1 + $0x908] ss:$16 sps:$4 sm:$0xff]  }
 0x280   : > { %4485 = vmatprep.subr.bf16.mxu1 %v7790_v9  ;;  %v7818_v31 = vld [vmem:[%s8718_s1 + $0xb08] ss:$16 sps:$4 sm:$0xff]   ;;  %v9430_v9 = vshrl.u32 %v4626_v22, 7 }
 0x282   : > { %4433 = vmatpush2.bf16.msra.mxu0 %v7785_v46  ;;  %v7823_v46 = vld [vmem:[%s8718_s1 + $0xcec] ss:$16 sps:$4 sm:$0xff]  }
 0x283   : > { %4486 = vmatpush2.bf16.msra.mxu1 %v7788_v10  ;;  %4434 = vmatprep.subr.bf16.mxu0 %v7793_v25  ;;  %v7826_v10 = vld [vmem:[%s8718_s1 + $0xeec] ss:$16 sps:$4 sm:$0xff]   ;;  %v3870_v25 = vadd.f32 %v9177_v13, %v9175_v12  ;;  %v9447_v12 = vpop.f32.mrf.mxu1  ;;  %v9450_v13 = vld [vmem:[%s8724_s24] sm:$0xf] }
 0x284   : > { %4487 = vmatprep.subr.bf16.mxu1 %v7796_v63  ;;  %v3876_v63 = vadd.f32 %v9188_v28, %v9186_v59  ;;  %v7829_v59 = vld [vmem:[%s8718_s1 + $0xccc] ss:$16 sps:$4 sm:$0xff]  }
 0x285   : > { %v7832_v28 = vld [vmem:[%s8718_s1 + $0xecc] ss:$16 sps:$4 sm:$0xff]  }
 0x286   : > { %4435 = vmatpush2.bf16.msra.mxu0 %v7791_v0  ;;  %v3923_v0 = vadd.f32 %v9260_v7, %v3870_v25  ;;  %v3880_v7 = vadd.f32 %v9236_v56, %v9234_v16  ;;  %v7827_v16 = vld [vmem:[%s8718_s1 + $0xcc8] ss:$16 sps:$4 sm:$0xff]   ;;  %v7844_v25 = vld [vmem:[%s8718_s1 + $0xe8c] ss:$16 sps:$4 sm:$0xff]  }
 0x287   : > { %4488 = vmatpush2.bf16.msra.mxu1 %v7794_v1  ;;  %4436 = vmatprep.subr.bf16.mxu0 %v7799_v5  ;;  %v9440_v1 = vsub.s32 0, %v9430_v9  ;;  %v7821_v5 = vld [vmem:[%s8718_s1 + $0xce8] ss:$16 sps:$4 sm:$0xff]  }
 0x288   : > { %4489 = vmatprep.subr.bf16.mxu1 %v7802_v33  ;;  %v7824_v33 = vld [vmem:[%s8718_s1 + $0xee8] ss:$16 sps:$4 sm:$0xff]  }
 0x289   : > { %v7830_v56 = vld [vmem:[%s8718_s1 + $0xec8] ss:$16 sps:$4 sm:$0xff]  }
 0x28a   : > { %4437 = vmatpush2.bf16.msra.mxu0 %v7797_v37  ;;  %v3866_v37 = vadd.f32 %v9149_v40, %v9147_v39 }
 0x28b   : > { %4490 = vmatpush2.bf16.msra.mxu1 %v7800_v14  ;;  %4438 = vmatprep.subr.bf16.mxu0 %v7805_v15  ;;  %v3929_v14 = vadd.f32 %v9273_v55, %v3876_v63  ;;  %v4038_v15 = vpop.f32.mrf.mxu0  ;;  %v3976_v55 = vadd.f32 %v9262_v8, %v3923_v0  ;;  %v7835_v8 = vld [vmem:[%s8718_s1 + $0xcac] ss:$16 sps:$4 sm:$0xff]  }
 0x28c   : > { %4491 = vmatprep.subr.bf16.mxu1 %v7808_v2  ;;  %v3919_v2 = vadd.f32 %v9245_v47, %v3866_v37 }
 0x28d   : > { %v3982_v47 = vadd.f32 %v9275_v24, %v3929_v14 }
 0x28e   : > { %4439 = vmatpush2.bf16.msra.mxu0 %v7803_v54  ;;  %v3972_v24 = vadd.f32 %v9247_v49, %v3919_v2  ;;  %v7850_v2 = vld [vmem:[%s8718_s1 + $0xe6c] ss:$16 sps:$4 sm:$0xff]  }
 0x28f   : > { %4492 = vmatpush2.bf16.msra.mxu1 %v7806_v21  ;;  %4440 = vmatprep.subr.bf16.mxu0 %v7811_v44  ;;  %v9463_v21 = vrot.slane %v9450_v13, %v9440_v1  ;;  %v9470_v44 = vld [vmem:[%s8726_s11] sm:$0xf] }
 0x290   : > { %4493 = vmatprep.subr.bf16.mxu1 %v7814_v36 }
 0x292   : > { %4441 = vmatpush2.bf16.msra.mxu0 %v7809_v38  ;;  %v4029_v38 = vadd.f32 %v9360_v62, %v3976_v55 }
 0x293   : > { %4494 = vmatpush2.bf16.msra.mxu1 %v7812_v11  ;;  %4442 = vmatprep.subr.bf16.mxu0 %v7817_v26 }
 0x294   : > { %4495 = vmatprep.subr.bf16.mxu1 %v7820_v45  ;;  %v4082_v63 = vadd.f32 %v9362_v32, %v4029_v38  ;;  %v7839_v32 = vld [vmem:[%s8718_s1 + $0xc88] ss:$16 sps:$4 sm:$0xff]  }
 0x295   : > { %v7848_v38 = vld [vmem:[%s8718_s1 + $0xe68] ss:$16 sps:$4 sm:$0xff]  }
 0x296   : > { %4443 = vmatpush2.bf16.msra.mxu0 %v7815_v58  ;;  %v9484_v58 = vrot.slane %v9470_v44, %v9440_v1 }
 0x297   : > { %4496 = vmatpush2.bf16.msra.mxu1 %v7818_v31  ;;  %4518 = vmatprep.subr.bf16.mxu0 %v7823_v46 }
 0x298   : > { %4571 = vmatprep.subr.bf16.mxu1 %v7826_v10  ;;  %v7841_v10 = vld [vmem:[%s8718_s1 + $0xc8c] ss:$16 sps:$4 sm:$0xff]  }
 0x299   : > { %v4128_v39 = vpop.f32.mrf.mxu0  ;;  %4445 = vmatmul.mubr.bf16.vlgmr.msra.gmra.mxu0 %v9024_v17  ;;  %v3933_v17 = vadd.f32 %v9336_v3, %v3880_v7  ;;  %v4035_v3 = vadd.f32 %v9373_v51, %v3982_v47  ;;  %v4025_v51 = vadd.f32 %v9347_v6, %v3972_v24  ;;  %v7847_v7 = vld [vmem:[%s8718_s1 + $0xc6c] ss:$16 sps:$4 sm:$0xff]  }
 0x29a   : > { %v4181_v40 = vpop.f32.mrf.mxu1  ;;  %4498 = vmatmul.mubr.bf16.vlgmr.msra.gmra.mxu1 %v9028_v18  ;;  %v4129_v54 = vadd.f32 %v4128_v39, %v9351_v35  ;;  %4519 = vmatpush1.bf16.msra.mxu0 %v7821_v5  ;;  %v7838_v35 = vld [vmem:[%s8718_s1 + $0xeac] ss:$16 sps:$4 sm:$0xff]  }
 0x29b   : > { %4572 = vmatpush1.bf16.msra.mxu1 %v7824_v33  ;;  %v4130_v18 = vpop.f32.mrf.mxu0  ;;  %4520 = vmatprep.subr.bf16.mxu0 %v7829_v59  ;;  %v3986_v49 = vadd.f32 %v9338_v50, %v3933_v17  ;;  %v7842_v59 = vld [vmem:[%s8718_s1 + $0xe88] ss:$16 sps:$4 sm:$0xff]   ;;  %v7856_v24 = vld [vmem:[%s8718_s1 + $0xe4c] ss:$16 sps:$4 sm:$0xff]  }
 0x29c   : > { %v9472_v36 = vpop.f32.mrf.mxu1  ;;  %4573 = vmatprep.subr.bf16.mxu1 %v7832_v28  ;;  %v4182_v11 = vadd.f32 %v4181_v40, %v4129_v54  ;;  %4454 = vmatprep.mubr.bf16.mxu0 %v9032_v23  ;;  %v7833_v23 = vld [vmem:[%s8718_s1 + $0xca8] ss:$16 sps:$4 sm:$0xff]  }
 0x29d   : > { %4507 = vmatprep.mubr.bf16.mxu1 %v9034_v53  ;;  %v4132_v22 = vpop.f32.mrf.mxu0  ;;  %v7836_v53 = vld [vmem:[%s8718_s1 + $0xea8] ss:$16 sps:$4 sm:$0xff]   ;;  %v4039_v5 = vadd.f32 %v4038_v15, %v3986_v49 }
 0x29e   : > { %v4185_v26 = vpop.f32.mrf.mxu1  ;;  %v4646_v45 = vmul.f32 %v9463_v21, %v4182_v11  ;;  %v4133_v62 = vadd.f32 %v4132_v22, %v9364_v43  ;;  %4521 = vmatpush1.bf16.msra.mxu0 %v7827_v16  ;;  %v4088_v43 = vadd.f32 %v9375_v52, %v4035_v3  ;;  %v4078_v52 = vadd.f32 %v9349_v34, %v4025_v51  ;;  %v7851_v49 = vld [vmem:[%s8718_s1 + $0xc48] ss:$16 sps:$4 sm:$0xff]  }
 0x29f   : > { %4574 = vmatpush1.bf16.msra.mxu1 %v7830_v56  ;;  %v4134_v31 = vpop.f32.mrf.mxu0  ;;  %4522 = vmatprep.subr.bf16.mxu0 %v7835_v8  ;;  %v4092_v34 = vadd.f32 %v9447_v12, %v4039_v5  ;;  %v7854_v51 = vld [vmem:[%s8718_s1 + $0xe48] ss:$16 sps:$4 sm:$0xff]  }
 0x2a0   : > { %v4187_v46 = vpop.f32.mrf.mxu1  ;;  %4575 = vmatprep.subr.bf16.mxu1 %v7838_v35  ;;  %v4186_v0 = vadd.f32 %v4185_v26, %v4133_v62  ;;  %v4684_v6 = vadd.f32 %v9484_v58, %v4646_v45  ;;  %v4135_v14 = vadd.f32 %v4134_v31, %v4082_v63  ;;  %v7845_v35 = vld [vmem:[%s8718_s1 + $0xc68] ss:$16 sps:$4 sm:$0xff]  }
 0x2a1   : > { %v4138_v33 = vpop.f32.mrf.mxu0  ;;  %4455 = vmatmul.mubr.bf16.gmra.mxu0 %v9050_v29 }
 0x2a2   : > { %v4191_v50 = vpop.f32.mrf.mxu1  ;;  %4508 = vmatmul.mubr.bf16.gmra.mxu1 %v9052_v30  ;;  %v4650_v37 = vmul.f32 %v9463_v21, %v4186_v0  ;;  %4523 = vmatpush1.bf16.msra.mxu0 %v7833_v23  ;;  %v4139_v15 = vadd.f32 %v4138_v33, %v9377_v57  ;;  %v9506_v30 = vsub.s32 1, %v9430_v9  ;;  %v4131_v57 = vadd.f32 %v4130_v18, %v4078_v52  ;;  %v7853_v18 = vld [vmem:[%s8718_s1 + $0xc4c] ss:$16 sps:$4 sm:$0xff]  }
 0x2a3   : > { %4576 = vmatpush1.bf16.msra.mxu1 %v7836_v53  ;;  %v4140_v28 = vpop.f32.mrf.mxu0  ;;  %4524 = vmatprep.subr.bf16.mxu0 %v7841_v10  ;;  %v4700_v56 = vmax.f32 %v4684_v6, 0.0  ;;  %v4188_v17 = vadd.f32 %v4187_v46, %v4135_v14  ;;  %v7859_v10 = vld [vmem:[%s8718_s1 + $0xc2c] ss:$16 sps:$4 sm:$0xff]   ;;  %v7857_v6 = vld [vmem:[%s8718_s1 + $0xc28] ss:$16 sps:$4 sm:$0xff]  }
 0x2a4   : > { %v4193_v29 = vpop.f32.mrf.mxu1  ;;  %4577 = vmatprep.subr.bf16.mxu1 %v7844_v25  ;;  %v4688_v39 = vadd.f32 %v9484_v58, %v4650_v37  ;;  %v4141_v40 = vadd.f32 %v4140_v28, %v4088_v43  ;;  %4550 = vmatprep.mubr.bf16.mxu0 %v9062_v41  ;;  %v4192_v55 = vadd.f32 %v4191_v50, %v4139_v15  ;;  %v7862_v25 = vld [vmem:[%s8718_s1 + $0xe2c] ss:$16 sps:$4 sm:$0xff]  }
 0x2a5   : > { %4603 = vmatprep.mubr.bf16.mxu1 %v9066_v42  ;;  %v4142_v54 = vpop.f32.mrf.mxu0  ;;  %v4633_v3 = vrot.slane %v9450_v13, %v9506_v30  ;;  %v4184_v26 = vadd.f32 %v9472_v36, %v4131_v57  ;;  %v4671_v36 = vrot.slane %v9470_v44, %v9506_v30  ;;  %v7868_v52 = vld [vmem:[%s8718_s1 + $0xe0c] ss:$16 sps:$4 sm:$0xff]  }
 0x2a6   : > { %v4195_v16 = vpop.f32.mrf.mxu1  ;;  %v4704_v47 = vmax.f32 %v4688_v39, 0.0  ;;  %v4143_v8 = vadd.f32 %v4142_v54, %v9386_v4  ;;  %4525 = vmatpush1.bf16.msra.mxu0 %v7839_v32  ;;  %v4654_v41 = vmul.f32 %v9463_v21, %v4192_v55  ;;  %v4194_v42 = vadd.f32 %v4193_v29, %v4141_v40  ;;  %v7871_v39 = vld [vmem:[%s8718_s1 + $0xdec] ss:$16 sps:$4 sm:$0xff]  }
 0x2a7   : > { %4578 = vmatpush1.bf16.msra.mxu1 %v7842_v59  ;;  %v4144_v11 = vpop.f32.mrf.mxu0  ;;  %4526 = vmatprep.subr.bf16.mxu0 %v7847_v7  ;;  %v4651_v23 = vmul.f32 %v4633_v3, %v4188_v17  ;;  %v4647_v43 = vmul.f32 %v4633_v3, %v4184_v26  ;;  %v7865_v59 = vld [vmem:[%s8718_s1 + $0xc0c] ss:$16 sps:$4 sm:$0xff]   ;;  %v7863_v7 = vld [vmem:[%s8718_s1 + $0xc08] ss:$16 sps:$4 sm:$0xff]  }
 0x2a8   : > { %v4197_v12 = vpop.f32.mrf.mxu1  ;;  %4579 = vmatprep.subr.bf16.mxu1 %v7850_v2  ;;  %v4716_v22 = vadd.f32 %v4704_v47, %v4700_v56  ;;  %v4145_v4 = vadd.f32 %v4144_v11, %v4092_v34  ;;  %v4196_v45 = vadd.f32 %v4195_v16, %v4143_v8  ;;  %v4692_v31 = vadd.f32 %v9484_v58, %v4654_v41  ;;  %v7866_v2 = vld [vmem:[%s8718_s1 + $0xe08] ss:$16 sps:$4 sm:$0xff]   ;;  %v7874_v54 = vld [vmem:[%s8718_s1 + $0xfec] ss:$16 sps:$4 sm:$0xff]  }
 0x2a9   : > { %v4655_v46 = vmul.f32 %v4633_v3, %v4194_v42  ;;  %v4689_v37 = vadd.f32 %v4671_v36, %v4651_v23  ;;  %v7869_v17 = vld [vmem:[%s8718_s1 + $0xde8] ss:$16 sps:$4 sm:$0xff]   ;;  %v7877_v42 = vld [vmem:[%s8718_s1 + $0xdcc] ss:$16 sps:$4 sm:$0xff]  }
 0x2aa   : > { %v4717_v62 = vrot.slane %v4716_v22, 4  ;;  %v4198_v53 = vadd.f32 %v4197_v12, %v4145_v4  ;;  %4527 = vmatpush1.bf16.msra.mxu0 %v7845_v35  ;;  %v4658_v13 = vmul.f32 %v9463_v21, %v4196_v45  ;;  %v7860_v21 = vld [vmem:[%s8718_s1 + $0xe28] ss:$16 sps:$4 sm:$0xff]   ;;  %v4708_v14 = vmax.f32 %v4692_v31, 0.0  ;;  %v7880_v11 = vld [vmem:[%s8718_s1 + $0xfcc] ss:$16 sps:$4 sm:$0xff]  }
 0x2ab   : > { %4580 = vmatpush1.bf16.msra.mxu1 %v7848_v38  ;;  %4528 = vmatprep.subr.bf16.mxu0 %v7853_v18  ;;  %v4693_v32 = vadd.f32 %v4671_v36, %v4655_v46  ;;  %v4705_v34 = vmax.f32 %v4689_v37, 0.0  ;;  %v7872_v8 = vld [vmem:[%s8718_s1 + $0xfe8] ss:$16 sps:$4 sm:$0xff]  }
 0x2ac   : > { %4581 = vmatprep.subr.bf16.mxu1 %v7856_v24  ;;  %v4718_v63 = vadd.f32 %v4717_v62, %v4716_v22  ;;  %v4659_v0 = vmul.f32 %v4633_v3, %v4198_v53  ;;  %v4696_v5 = vadd.f32 %v9484_v58, %v4658_v13  ;;  %v4685_v58 = vadd.f32 %v4671_v36, %v4647_v43  ;;  %v7875_v24 = vld [vmem:[%s8718_s1 + $0xdc8] ss:$16 sps:$4 sm:$0xff]   ;;  %v7883_v22 = vld [vmem:[%s8718_s1 + $0xdac] ss:$16 sps:$4 sm:$0xff]  }
 0x2ad   : > { %v4709_v57 = vmax.f32 %v4693_v32, 0.0  ;;  %v7878_v3 = vld [vmem:[%s8718_s1 + $0xfc8] ss:$16 sps:$4 sm:$0xff]   ;;  %v7886_v62 = vld [vmem:[%s8718_s1 + $0xfac] ss:$16 sps:$4 sm:$0xff]  }
 0x2ae   : > { %v4719_v33 = vrot.slane %v4718_v63, 2  ;;  %v4697_v50 = vadd.f32 %v4671_v36, %v4659_v0  ;;  %4529 = vmatpush1.bf16.msra.mxu0 %v7851_v49  ;;  %v4712_v44 = vmax.f32 %v4696_v5, 0.0  ;;  %v4701_v16 = vmax.f32 %v4685_v58, 0.0  ;;  %v7881_v49 = vld [vmem:[%s8718_s1 + $0xda8] ss:$16 sps:$4 sm:$0xff]  }
 0x2af   : > { %4582 = vmatpush1.bf16.msra.mxu1 %v7854_v51  ;;  %4530 = vmatprep.subr.bf16.mxu0 %v7859_v10  ;;  %v7884_v51 = vld [vmem:[%s8718_s1 + $0xfa8] ss:$16 sps:$4 sm:$0xff]   ;;  %v7889_v10 = vld [vmem:[%s8718_s1 + $0xd8c] ss:$16 sps:$4 sm:$0xff]  }
 0x2b0   : > { %4583 = vmatprep.subr.bf16.mxu1 %v7862_v25  ;;  %v4720_v15 = vadd.f32 %v4719_v33, %v4718_v63  ;;  %v4744_v28 = vadd.f32 %v4712_v44, %v4708_v14  ;;  %v4713_v29 = vmax.f32 %v4697_v50, 0.0  ;;  %v4723_v38 = vadd.f32 %v4705_v34, %v4701_v16  ;;  %v7892_v25 = vld [vmem:[%s8718_s1 + $0xf8c] ss:$16 sps:$4 sm:$0xff]   ;;  %v7887_v0 = vld [vmem:[%s8718_s1 + $0xd88] ss:$16 sps:$4 sm:$0xff]  }
 0x2b1   : > { %v7890_v43 = vld [vmem:[%s8718_s1 + $0xf88] ss:$16 sps:$4 sm:$0xff]  }
 0x2b2   : > { %4531 = vmatpush1.bf16.msra.mxu0 %v7857_v6  ;;  %v4721_v40 = vrot.slane %v4720_v15, 1  ;;  %v4745_v55 = vrot.slane %v4744_v28, 4  ;;  %v4751_v47 = vadd.f32 %v4713_v29, %v4709_v57  ;;  %v4724_v26 = vrot.slane %v4723_v38, 4  ;;  %v7895_v6 = vld [vmem:[%s8718_s1 + $0xd6c] ss:$16 sps:$4 sm:$0xff]  }
 0x2b3   : > { %4584 = vmatpush1.bf16.msra.mxu1 %v7860_v21  ;;  %4532 = vmatprep.subr.bf16.mxu0 %v7865_v59  ;;  %v7898_v21 = vld [vmem:[%s8718_s1 + $0xf6c] ss:$16 sps:$4 sm:$0xff]   ;;  %v7893_v32 = vld [vmem:[%s8718_s1 + $0xd68] ss:$16 sps:$4 sm:$0xff]  }
 0x2b4   : > { %4585 = vmatprep.subr.bf16.mxu1 %v7868_v52  ;;  %v4746_v56 = vadd.f32 %v4745_v55, %v4744_v28  ;;  %v4722_v35 = vadd.f32 %v4721_v40, %v4720_v15  ;;  %v4752_v18 = vrot.slane %v4751_v47, 4  ;;  %v4725_v46 = vadd.f32 %v4724_v26, %v4723_v38  ;;  %v7896_v44 = vld [vmem:[%s8718_s1 + $0xf68] ss:$16 sps:$4 sm:$0xff]   ;;  %v7901_v52 = vld [vmem:[%s8718_s1 + $0xd4c] ss:$16 sps:$4 sm:$0xff]  }
 0x2b5   : > { %v7904_v15 = vld [vmem:[%s8718_s1 + $0xf4c] ss:$16 sps:$4 sm:$0xff]   ;;  %v7899_v28 = vld [vmem:[%s8718_s1 + $0xd48] ss:$16 sps:$4 sm:$0xff]   ;;  %v7929_v26 = vld [vmem:[%s8732_s21 + $0x60] ss:$16 sps:$4 sm:$0xff]  }
 0x2b6   : > { %4533 = vmatpush1.bf16.msra.mxu0 %v7863_v7  ;;  %v4747_v41 = vrot.slane %v4746_v56, 2  ;;  %v4773_v4 = vmul.f32 0.0625, %v4722_v35  ;;  %v4753_v53 = vadd.f32 %v4752_v18, %v4751_v47  ;;  %v4726_v33 = vrot.slane %v4725_v46, 2  ;;  %v7902_v29 = vld [vmem:[%s8718_s1 + $0xf48] ss:$16 sps:$4 sm:$0xff]  }
 0x2b7   : > { %4586 = vmatpush1.bf16.msra.mxu1 %v7866_v2  ;;  %4534 = vmatprep.subr.bf16.mxu0 %v7871_v39  ;;  %v7907_v7 = vld [vmem:[%s8718_s1 + $0xd2c] ss:$16 sps:$4 sm:$0xff]   ;;  %v7905_v34 = vld [vmem:[%s8718_s1 + $0xd28] ss:$16 sps:$4 sm:$0xff]   ;;  %v7920_v18 = vld [vmem:[%s8732_s21 + $0xc0] ss:$16 sps:$4 sm:$0xff]  }
 0x2b8   : > { %4587 = vmatprep.subr.bf16.mxu1 %v7874_v54  ;;  %v4748_v12 = vadd.f32 %v4747_v41, %v4746_v56  ;;  %v4782_v31 = vpack.c.bf16 %v4773_v4, %v4773_v4  ;;  %v4754_v63 = vrot.slane %v4753_v53, 2  ;;  %v4727_v59 = vadd.f32 %v4726_v33, %v4725_v46  ;;  %v7910_v2 = vld [vmem:[%s8718_s1 + $0xf2c] ss:$16 sps:$4 sm:$0xff]   ;;  %v7908_v57 = vld [vmem:[%s8718_s1 + $0xf28] ss:$16 sps:$4 sm:$0xff]  }
 0x2b9   : > { %v7913_v55 = vld [vmem:[%s8718_s1 + $0xd0c] ss:$16 sps:$4 sm:$0xff]   ;;  %v7911_v47 = vld [vmem:[%s8718_s1 + $0xd08] ss:$16 sps:$4 sm:$0xff]   ;;  %v7917_v41 = vld [vmem:[%s8732_s21 + $0xe0] ss:$16 sps:$4 sm:$0xff]  }
 0x2ba   : > { %4535 = vmatpush2.bf16.msra.mxu0 %v7869_v17  ;;  %v4749_v45 = vrot.slane %v4748_v12, 1  ;;  %v4926_v5 = vunpack.c.l.b16 %v4782_v31  ;;  %v4755_v37 = vadd.f32 %v4754_v63, %v4753_v53  ;;  %v4728_v39 = vrot.slane %v4727_v59, 1  ;;  %v7916_v54 = vld [vmem:[%s8718_s1 + $0xf0c] ss:$16 sps:$4 sm:$0xff]   ;;  %v7914_v17 = vld [vmem:[%s8718_s1 + $0xf08] ss:$16 sps:$4 sm:$0xff]  }
 0x2bb   : > { %4588 = vmatpush2.bf16.msra.mxu1 %v7872_v8  ;;  %4536 = vmatprep.subr.bf16.mxu0 %v7877_v42  ;;  %v7919_v8 = vld [vmem:[%s8732_s21 + $0xe4] ss:$16 sps:$4 sm:$0xff]   ;;  %v8022_v63 = vld [vmem:[%s8732_s21 + $0x280] ss:$16 sps:$4 sm:$0xff]  }
 0x2bc   : > { %4589 = vmatprep.subr.bf16.mxu1 %v7880_v11  ;;  %v4750_v23 = vadd.f32 %v4749_v45, %v4748_v12  ;;  %v4756_v58 = vrot.slane %v4755_v37, 1  ;;  %v4729_v16 = vadd.f32 %v4728_v39, %v4727_v59  ;;  %v7922_v42 = vld [vmem:[%s8732_s21 + $0xc4] ss:$16 sps:$4 sm:$0xff]   ;;  %v7956_v59 = vld [vmem:[%s8732_s21 + $0x140] ss:$16 sps:$4 sm:$0xff]  }
 0x2bd   : > { %v7934_v45 = vld [vmem:[%s8732_s21 + $0x44] ss:$16 sps:$4 sm:$0xff]   ;;  %v7970_v39 = vld [vmem:[%s8732_s21 + $0xcc] ss:$16 sps:$4 sm:$0xff]  }
 0x2be   : > { %4537 = vmatpush2.bf16.msra.mxu0 %v7875_v24  ;;  %v4777_v13 = vmul.f32 0.0625, %v4750_v23  ;;  %v4757_v40 = vadd.f32 %v4756_v58, %v4755_v37  ;;  %v4774_v35 = vmul.f32 0.0625, %v4729_v16  ;;  %v7925_v24 = vld [vmem:[%s8732_s21 + $0xa4] ss:$16 sps:$4 sm:$0xff]   ;;  %v7971_v16 = vld [vmem:[%s8732_s21 + $0xa8] ss:$16 sps:$4 sm:$0xff]  }
 0x2bf   : > { %4590 = vmatpush2.bf16.msra.mxu1 %v7878_v3  ;;  %4538 = vmatprep.subr.bf16.mxu0 %v7883_v22  ;;  %v7937_v23 = vld [vmem:[%s8732_s21 + $0x24] ss:$16 sps:$4 sm:$0xff]  }
 0x2c0   : > { %4591 = vmatprep.subr.bf16.mxu1 %v7886_v62  ;;  %v4786_v36 = vpack.c.bf16 %v4777_v13, %v4777_v13  ;;  %v4778_v56 = vmul.f32 0.0625, %v4757_v40  ;;  %v4783_v11 = vpack.c.bf16 %v4774_v35, %v4774_v35  ;;  %v8013_v62 = vld [vmem:[%s8732_s21 + $0x2e0] ss:$16 sps:$4 sm:$0xff]   ;;  %v8018_v53 = vld [vmem:[%s8732_s21 + $0x2c4] ss:$16 sps:$4 sm:$0xff]  }
 0x2c1   : > { %v8021_v31 = vld [vmem:[%s8732_s21 + $0x2a4] ss:$16 sps:$4 sm:$0xff]   ;;  %v8019_v13 = vld [vmem:[%s8732_s21 + $0x2a0] ss:$16 sps:$4 sm:$0xff]   ;;  %v7979_v35 = vld [vmem:[%s8732_s21 + $0x6c] ss:$16 sps:$4 sm:$0xff]  }
 0x2c2   : > { %4539 = vmatpush2.bf16.msra.mxu0 %v7881_v49  ;;  %v4930_v50 = vunpack.c.l.b16 %v4786_v36  ;;  %v4787_v38 = vpack.c.bf16 %v4778_v56, %v4778_v56  ;;  %v4927_v3 = vunpack.c.l.b16 %v4783_v11  ;;  %v8016_v49 = vld [vmem:[%s8732_s21 + $0x2c0] ss:$16 sps:$4 sm:$0xff]   ;;  %v7940_v46 = vld [vmem:[%s8732_s21 + $0x4] ss:$16 sps:$4 sm:$0xff]   ;;  %v7976_v56 = vld [vmem:[%s8732_s21 + $0x8c] ss:$16 sps:$4 sm:$0xff]  }
 0x2c3   : > { %4592 = vmatpush2.bf16.msra.mxu1 %v7884_v51  ;;  %4540 = vmatprep.subr.bf16.mxu0 %v7889_v10  ;;  %v7935_v51 = vld [vmem:[%s8732_s21 + $0x20] ss:$16 sps:$4 sm:$0xff]   ;;  %v7943_v36 = vld [vmem:[%s8732_s21 + $0x1e4] ss:$16 sps:$4 sm:$0xff]   ;;  %v7982_v11 = vld [vmem:[%s8732_s21 + $0x4c] ss:$16 sps:$4 sm:$0xff]  }
 0x2c4   : > { %4593 = vmatprep.subr.bf16.mxu1 %v7892_v25  ;;  %v9555_v14 = vsel %vm4934_vm0, %v4930_v50, %v4926_v5  ;;  %v4931_v12 = vunpack.c.l.b16 %v4787_v38  ;;  %v7938_v10 = vld [vmem:[%s8732_s21] ss:$16 sps:$4 sm:$0xff]   ;;  %v8024_v25 = vld [vmem:[%s8732_s21 + $0x284] ss:$16 sps:$4 sm:$0xff]  }
 0x2c5   : > { %v7944_v5 = vld [vmem:[%s8732_s21 + $0x1c0] ss:$16 sps:$4 sm:$0xff]   ;;  %v7949_v33 = vld [vmem:[%s8732_s21 + $0x1a4] ss:$16 sps:$4 sm:$0xff]  }
 0x2c6   : > { %4541 = vmatpush2.bf16.msra.mxu0 %v7887_v0  ;;  %v4936_v22 = vsel %vm4934_vm0, %v4931_v12, %v4927_v3  ;;  %v7941_v0 = vld [vmem:[%s8732_s21 + $0x1e0] ss:$16 sps:$4 sm:$0xff]   ;;  %v7955_v37 = vld [vmem:[%s8732_s21 + $0x164] ss:$16 sps:$4 sm:$0xff]   ;;  %v7985_v3 = vld [vmem:[%s8732_s21 + $0x2c] ss:$16 sps:$4 sm:$0xff]  }
 0x2c7   : > { %4594 = vmatpush2.bf16.msra.mxu1 %v7890_v43  ;;  %4542 = vmatprep.subr.bf16.mxu0 %v7895_v6  ;;  %v9583_v4 = vpack.c.b16 %v4936_v22, %v4936_v22  ;;  %v7946_v43 = vld [vmem:[%s8732_s21 + $0x1c4] ss:$16 sps:$4 sm:$0xff]   ;;  %v7947_v50 = vld [vmem:[%s8732_s21 + $0x1a0] ss:$16 sps:$4 sm:$0xff]  }
 0x2c8   : > { %4595 = vmatprep.subr.bf16.mxu1 %v7898_v21  ;;  %v7952_v6 = vld [vmem:[%s8732_s21 + $0x184] ss:$16 sps:$4 sm:$0xff]   ;;  %v7950_v21 = vld [vmem:[%s8732_s21 + $0x180] ss:$16 sps:$4 sm:$0xff]  }
 0x2c9   : > { %v7964_v58 = vld [vmem:[%s8732_s21 + $0x104] ss:$16 sps:$4 sm:$0xff]  }
 0x2ca   : > { %4543 = vmatpush2.bf16.msra.mxu0 %v7893_v32  ;;  %v7953_v32 = vld [vmem:[%s8732_s21 + $0x160] ss:$16 sps:$4 sm:$0xff]   ;;  %v8027_v40 = vld [vmem:[%s8732_s21 + $0x264] ss:$16 sps:$4 sm:$0xff]  }
 0x2cb   : > { %4596 = vmatpush2.bf16.msra.mxu1 %v7896_v44  ;;  %4544 = vmatprep.subr.bf16.mxu0 %v7901_v52  ;;  %v7958_v44 = vld [vmem:[%s8732_s21 + $0x144] ss:$16 sps:$4 sm:$0xff]  }
 0x2cc   : > { %4597 = vmatprep.subr.bf16.mxu1 %v7904_v15  ;;  %v7961_v52 = vld [vmem:[%s8732_s21 + $0x124] ss:$16 sps:$4 sm:$0xff]   ;;  %v7959_v15 = vld [vmem:[%s8732_s21 + $0x120] ss:$16 sps:$4 sm:$0xff]  }
 0x2cd   : > { %v8036_v38 = vld [vmem:[%s8732_s21 + $0x204] ss:$16 sps:$4 sm:$0xff]  }
 0x2ce   : > { %4545 = vmatpush2.bf16.msra.mxu0 %v7899_v28  ;;  %v7962_v28 = vld [vmem:[%s8732_s21 + $0x100] ss:$16 sps:$4 sm:$0xff]   ;;  %v8039_v12 = vld [vmem:[%s8732_s21 + $0x3e4] ss:$16 sps:$4 sm:$0xff]  }
 0x2cf   : > { %4598 = vmatpush2.bf16.msra.mxu1 %v7902_v29  ;;  %4546 = vmatprep.subr.bf16.mxu0 %v7907_v7  ;;  %v7967_v29 = vld [vmem:[%s8732_s21 + $0xec] ss:$16 sps:$4 sm:$0xff]   ;;  %v7965_v7 = vld [vmem:[%s8732_s21 + $0xe8] ss:$16 sps:$4 sm:$0xff]   ;;  %v8042_v22 = vld [vmem:[%s8732_s21 + $0x3c4] ss:$16 sps:$4 sm:$0xff]  }
 0x2d0   : > { %4599 = vmatprep.subr.bf16.mxu1 %v7910_v2  ;;  %v9625_v2 = vpack.c.b16 %v9555_v14, %v9555_v14  ;;  %v8030_v14 = vld [vmem:[%s8732_s21 + $0x244] ss:$16 sps:$4 sm:$0xff]  }
 0x2d2   : > { %4547 = vmatpush2.bf16.msra.mxu0 %v7905_v34  ;;  %v8025_v34 = vld [vmem:[%s8732_s21 + $0x260] ss:$16 sps:$4 sm:$0xff]  }
 0x2d3   : > { %4600 = vmatpush2.bf16.msra.mxu1 %v7908_v57  ;;  %4548 = vmatprep.subr.bf16.mxu0 %v7913_v55  ;;  %v7968_v57 = vld [vmem:[%s8732_s21 + $0xc8] ss:$16 sps:$4 sm:$0xff]   ;;  %v7973_v55 = vld [vmem:[%s8732_s21 + $0xac] ss:$16 sps:$4 sm:$0xff]  }
 0x2d4   : > { %4601 = vmatprep.subr.bf16.mxu1 %v7916_v54  ;;  %v8028_v54 = vld [vmem:[%s8732_s21 + $0x240] ss:$16 sps:$4 sm:$0xff]  }
 0x2d6   : > { %4549 = vmatpush2.bf16.msra.mxu0 %v7911_v47  ;;  %v8033_v47 = vld [vmem:[%s8732_s21 + $0x224] ss:$16 sps:$4 sm:$0xff]  }
 0x2d7   : > { %4602 = vmatpush2.bf16.msra.mxu1 %v7914_v17  ;;  %5587 = vmatprep.subr.bf16.mxu0 %v7919_v8  ;;  %v8031_v17 = vld [vmem:[%s8732_s21 + $0x220] ss:$16 sps:$4 sm:$0xff]   ;;  %v7974_v8 = vld [vmem:[%s8732_s21 + $0x88] ss:$16 sps:$4 sm:$0xff]  }
 0x2d9   : > { %4551 = vmatmul.mubr.bf16.vlgmr.msra.gmra.mxu0 %v9128_v19  ;;  %v7923_v19 = vld [vmem:[%s8732_s21 + $0xa0] ss:$16 sps:$4 sm:$0xff]  }
 0x2da   : > { %4604 = vmatmul.mubr.bf16.vlgmr.msra.gmra.mxu1 %v9132_v20  ;;  %5588 = vmatpush1.bf16.msra.mxu0 %v7917_v41  ;;  %v7928_v20 = vld [vmem:[%s8732_s21 + $0x84] ss:$16 sps:$4 sm:$0xff]   ;;  %v8034_v41 = vld [vmem:[%s8732_s21 + $0x200] ss:$16 sps:$4 sm:$0xff]  }
 0x2db   : > { %4560 = vmatprep.mubr.bf16.mxu0 %v9136_v60  ;;  %5589 = vmatprep.subr.bf16.mxu0 %v7922_v42  ;;  %v7926_v60 = vld [vmem:[%s8732_s21 + $0x80] ss:$16 sps:$4 sm:$0xff]   ;;  %v7977_v42 = vld [vmem:[%s8732_s21 + $0x68] ss:$16 sps:$4 sm:$0xff]  }
 0x2dc   : > { %4613 = vmatprep.mubr.bf16.mxu1 %v9138_v27  ;;  %v7931_v27 = vld [vmem:[%s8732_s21 + $0x64] ss:$16 sps:$4 sm:$0xff]  }
 0x2de   : > { %5590 = vmatpush1.bf16.msra.mxu0 %v7920_v18  ;;  %v8037_v18 = vld [vmem:[%s8732_s21 + $0x3e0] ss:$16 sps:$4 sm:$0xff]  }
 0x2df   : > { %5591 = vmatprep.subr.bf16.mxu0 %v7925_v24  ;;  %v7980_v24 = vld [vmem:[%s8732_s21 + $0x48] ss:$16 sps:$4 sm:$0xff]  }
 0x2e1   : > { %4561 = vmatmul.mubr.bf16.gmra.mxu0 %v9154_v48  ;;  %v7932_v48 = vld [vmem:[%s8732_s21 + $0x40] ss:$16 sps:$4 sm:$0xff]  }
 0x2e2   : > { %4614 = vmatmul.mubr.bf16.gmra.mxu1 %v9158_v61  ;;  %5592 = vmatpush1.bf16.msra.mxu0 %v7923_v19  ;;  %v8015_v61 = vld [vmem:[%s8732_s21 + $0x2e4] ss:$16 sps:$4 sm:$0xff]   ;;  %v8040_v19 = vld [vmem:[%s8732_s21 + $0x3c0] ss:$16 sps:$4 sm:$0xff]  }
 0x2e3   : > { %5619 = vmatprep.mubr.bf16.mxu0 %v9583_v4  ;;  %5593 = vmatprep.subr.bf16.mxu0 %v7928_v20  ;;  %v7983_v20 = vld [vmem:[%s8732_s21 + $0x28] ss:$16 sps:$4 sm:$0xff]  }
 0x2e4   : > { %5628 = vmatprep.subr.bf16.mxu1 %v8015_v61  ;;  %v7989_v61 = vld [vmem:[%s8732_s21 + $0x1e8] ss:$16 sps:$4 sm:$0xff]  }
 0x2e5   : > { %5629 = vmatpush1.bf16.msra.mxu1 %v8013_v62  ;;  %v8046_v62 = vld [vmem:[%s8732_s21 + $0x380] ss:$16 sps:$4 sm:$0xff]  }
 0x2e6   : > { %5594 = vmatpush1.bf16.msra.mxu0 %v7926_v60  ;;  %5630 = vmatprep.subr.bf16.mxu1 %v8018_v53  ;;  %v8045_v60 = vld [vmem:[%s8732_s21 + $0x3a4] ss:$16 sps:$4 sm:$0xff]  }
 0x2e7   : > { %5595 = vmatprep.subr.bf16.mxu0 %v7931_v27  ;;  %v8043_v27 = vld [vmem:[%s8732_s21 + $0x3a0] ss:$16 sps:$4 sm:$0xff]   ;;  %v8051_v53 = vld [vmem:[%s8732_s21 + $0x364] ss:$16 sps:$4 sm:$0xff]  }
 0x2e9   : > { %5631 = vmatpush1.bf16.msra.mxu1 %v8016_v49  ;;  %v8049_v49 = vld [vmem:[%s8732_s21 + $0x360] ss:$16 sps:$4 sm:$0xff]  }
 0x2ea   : > { %5596 = vmatpush1.bf16.msra.mxu0 %v7929_v26  ;;  %5632 = vmatprep.subr.bf16.mxu1 %v8021_v31  ;;  %v7986_v26 = vld [vmem:[%s8732_s21 + $0x8] ss:$16 sps:$4 sm:$0xff]   ;;  %v7997_v31 = vld [vmem:[%s8732_s21 + $0x1ac] ss:$16 sps:$4 sm:$0xff]  }
 0x2eb   : > { %5597 = vmatprep.subr.bf16.mxu0 %v7934_v45  ;;  %v7991_v45 = vld [vmem:[%s8732_s21 + $0x1ec] ss:$16 sps:$4 sm:$0xff]  }
 0x2ed   : > { %5633 = vmatpush1.bf16.msra.mxu1 %v8019_v13  ;;  %v8052_v13 = vld [vmem:[%s8732_s21 + $0x340] ss:$16 sps:$4 sm:$0xff]  }
 0x2ee   : > { %5598 = vmatpush1.bf16.msra.mxu0 %v7932_v48  ;;  %5634 = vmatprep.subr.bf16.mxu1 %v8024_v25  ;;  %v8048_v48 = vld [vmem:[%s8732_s21 + $0x384] ss:$16 sps:$4 sm:$0xff]   ;;  %v8000_v25 = vld [vmem:[%s8732_s21 + $0x18c] ss:$16 sps:$4 sm:$0xff]  }
 0x2ef   : > { %5599 = vmatprep.subr.bf16.mxu0 %v7937_v23  ;;  %v7994_v23 = vld [vmem:[%s8732_s21 + $0x1cc] ss:$16 sps:$4 sm:$0xff]  }
 0x2f1   : > { %5635 = vmatpush1.bf16.msra.mxu1 %v8022_v63  ;;  %v9671_v63 = vpop.f32.mrf.mxu0 }
 0x2f2   : > { %5600 = vmatpush1.bf16.msra.mxu0 %v7935_v51  ;;  %5636 = vmatprep.subr.bf16.mxu1 %v8027_v40  ;;  %v7992_v51 = vld [vmem:[%s8732_s21 + $0x1c8] ss:$16 sps:$4 sm:$0xff]   ;;  %v8012_v40 = vld [vmem:[%s8732_s21 + $0x10c] ss:$16 sps:$4 sm:$0xff]  }
 0x2f3   : > { %5601 = vmatprep.subr.bf16.mxu0 %v7940_v46  ;;  %v8054_v46 = vld [vmem:[%s8732_s21 + $0x344] ss:$16 sps:$4 sm:$0xff]  }
 0x2f5   : > { %5637 = vmatpush1.bf16.msra.mxu1 %v8025_v34 }
 0x2f6   : > { %5602 = vmatpush1.bf16.msra.mxu0 %v7938_v10  ;;  %5638 = vmatprep.subr.bf16.mxu1 %v8030_v14  ;;  %v7995_v10 = vld [vmem:[%s8732_s21 + $0x1a8] ss:$16 sps:$4 sm:$0xff]  }
 0x2f7   : > { %5603 = vmatprep.subr.bf16.mxu0 %v7943_v36  ;;  %v8057_v36 = vld [vmem:[%s8732_s21 + $0x324] ss:$16 sps:$4 sm:$0xff]  }
 0x2f9   : > { %5639 = vmatpush1.bf16.msra.mxu1 %v8028_v54 }
 0x2fa   : > { %5604 = vmatpush2.bf16.msra.mxu0 %v7941_v0  ;;  %5640 = vmatprep.subr.bf16.mxu1 %v8033_v47  ;;  %v8055_v0 = vld [vmem:[%s8732_s21 + $0x320] ss:$16 sps:$4 sm:$0xff]  }
 0x2fb   : > { %5605 = vmatprep.subr.bf16.mxu0 %v7946_v43  ;;  %v7998_v43 = vld [vmem:[%s8732_s21 + $0x188] ss:$16 sps:$4 sm:$0xff]  }
 0x2fd   : > { %5641 = vmatpush1.bf16.msra.mxu1 %v8031_v17 }
 0x2fe   : > { %5606 = vmatpush2.bf16.msra.mxu0 %v7944_v5  ;;  %5642 = vmatprep.subr.bf16.mxu1 %v8036_v38  ;;  %v8060_v5 = vld [vmem:[%s8732_s21 + $0x304] ss:$16 sps:$4 sm:$0xff]  }
 0x2ff   : > { %5607 = vmatprep.subr.bf16.mxu0 %v7949_v33  ;;  %v8003_v33 = vld [vmem:[%s8732_s21 + $0x16c] ss:$16 sps:$4 sm:$0xff]  }
 0x301   : > { %5643 = vmatpush1.bf16.msra.mxu1 %v8034_v41 }
 0x302   : > { %5608 = vmatpush2.bf16.msra.mxu0 %v7947_v50  ;;  %5644 = vmatprep.subr.bf16.mxu1 %v8039_v12  ;;  %v8058_v50 = vld [vmem:[%s8732_s21 + $0x300] ss:$16 sps:$4 sm:$0xff]  }
 0x303   : > { %5609 = vmatprep.subr.bf16.mxu0 %v7952_v6  ;;  %v4287_v6 = vpop.f32.mrf.mxu1 }
 0x305   : > { %5645 = vmatpush2.bf16.msra.mxu1 %v8037_v18 }
 0x306   : > { %5610 = vmatpush2.bf16.msra.mxu0 %v7950_v21  ;;  %5646 = vmatprep.subr.bf16.mxu1 %v8042_v22  ;;  %v4236_v21 = vpop.f32.mrf.mxu0 }
 0x307   : > { %5611 = vmatprep.subr.bf16.mxu0 %v7955_v37  ;;  %v8001_v37 = vld [vmem:[%s8732_s21 + $0x168] ss:$16 sps:$4 sm:$0xff]  }
 0x309   : > { %5647 = vmatpush2.bf16.msra.mxu1 %v8040_v19 }
 0x30a   : > { %5612 = vmatpush2.bf16.msra.mxu0 %v7953_v32  ;;  %5648 = vmatprep.subr.bf16.mxu1 %v8045_v60  ;;  %v8006_v32 = vld [vmem:[%s8732_s21 + $0x14c] ss:$16 sps:$4 sm:$0xff]  }
 0x30b   : > { %5613 = vmatprep.subr.bf16.mxu0 %v7958_v44  ;;  %v8063_v44 = vld [vmem:[%s8732_s21 + $0x2ec] ss:$16 sps:$4 sm:$0xff]  }
 0x30d   : > { %5649 = vmatpush2.bf16.msra.mxu1 %v8043_v27 }
 0x30e   : > { %5614 = vmatpush2.bf16.msra.mxu0 %v7956_v59  ;;  %5650 = vmatprep.subr.bf16.mxu1 %v8048_v48  ;;  %v4289_v59 = vpop.f32.mrf.mxu1 }
 0x30f   : > { %5615 = vmatprep.subr.bf16.mxu0 %v7961_v52  ;;  %v4238_v52 = vpop.f32.mrf.mxu0 }
 0x311   : > { %5651 = vmatpush2.bf16.msra.mxu1 %v8046_v62 }
 0x312   : > { %5616 = vmatpush2.bf16.msra.mxu0 %v7959_v15  ;;  %5652 = vmatprep.subr.bf16.mxu1 %v8051_v53  ;;  %v8004_v15 = vld [vmem:[%s8732_s21 + $0x148] ss:$16 sps:$4 sm:$0xff]  }
 0x313   : > { %5617 = vmatprep.subr.bf16.mxu0 %v7964_v58  ;;  %v8009_v58 = vld [vmem:[%s8732_s21 + $0x12c] ss:$16 sps:$4 sm:$0xff]  }
 0x315   : > { %5653 = vmatpush2.bf16.msra.mxu1 %v8049_v49 }
 0x316   : > { %5618 = vmatpush2.bf16.msra.mxu0 %v7962_v28  ;;  %5654 = vmatprep.subr.bf16.mxu1 %v8054_v46  ;;  %v4291_v28 = vpop.f32.mrf.mxu1  ;;  %v4290_v46 = vadd.f32 %v4289_v59, %v4236_v21 }
 0x317   : > { %5669 = vmatprep.subr.bf16.mxu0 %v7967_v29  ;;  %v4240_v29 = vpop.f32.mrf.mxu0 }
 0x318   : > { %v4293_v34 = vpop.f32.mrf.mxu1 }
 0x319   : > { %5620 = vmatmul.mubr.bf16.vlgmr.msra.gmra.mxu0 %v9625_v2  ;;  %5655 = vmatpush2.bf16.msra.mxu1 %v8052_v13 }
 0x31a   : > { %5670 = vmatpush1.bf16.msra.mxu0 %v7965_v7  ;;  %5701 = vmatprep.mubr.bf16.mxu0 %v9583_v4  ;;  %v7988_v4 = vld [vmem:[%s8732_s21 + $0xc] ss:$16 sps:$4 sm:$0xff]   ;;  %v8007_v7 = vld [vmem:[%s8732_s21 + $0x128] ss:$16 sps:$4 sm:$0xff]  }
 0x31b   : > { %5671 = vmatprep.subr.bf16.mxu0 %v7970_v39  ;;  %5656 = vmatprep.subr.bf16.mxu1 %v8057_v36  ;;  %v4244_v39 = vpop.f32.mrf.mxu0  ;;  %v4292_v36 = vadd.f32 %v4291_v28, %v4238_v52 }
 0x31d   : > { %5657 = vmatpush2.bf16.msra.mxu1 %v8055_v0  ;;  %v4246_v14 = vpop.f32.mrf.mxu0 }
 0x31e   : > { %5672 = vmatpush1.bf16.msra.mxu0 %v7968_v57  ;;  %5658 = vmatprep.subr.bf16.mxu1 %v8060_v5  ;;  %v8010_v57 = vld [vmem:[%s8732_s21 + $0x108] ss:$16 sps:$4 sm:$0xff]  }
 0x31f   : > { %5673 = vmatprep.subr.bf16.mxu0 %v7973_v55  ;;  %v4297_v55 = vpop.f32.mrf.mxu1 }
 0x321   : > { %5659 = vmatpush2.bf16.msra.mxu1 %v8058_v50  ;;  %v4299_v54 = vpop.f32.mrf.mxu1 }
 0x322   : > { %5674 = vmatpush1.bf16.msra.mxu0 %v7971_v16  ;;  %5710 = vmatprep.subr.bf16.mxu1 %v8063_v44  ;;  %v4248_v16 = vpop.f32.mrf.mxu0 }
 0x323   : > { %5675 = vmatprep.subr.bf16.mxu0 %v7976_v56  ;;  %v4301_v56 = vpop.f32.mrf.mxu1 }
 0x324   : > { %v9687_v47 = vpop.f32.mrf.mxu0 }
 0x326   : > { %5676 = vmatpush1.bf16.msra.mxu0 %v7974_v8  ;;  %v4340_v17 = vpop.f32.mrf.mxu0  ;;  %v9689_v8 = vpop.f32.mrf.mxu1 }
 0x327   : > { %5677 = vmatprep.subr.bf16.mxu0 %v7979_v35 }
 0x328   : > { %v4393_v35 = vpop.f32.mrf.mxu1  ;;  %v4342_v38 = vpop.f32.mrf.mxu0 }
 0x329   : > { %v4343_v0 = vadd.f32 %v4342_v38, %v4290_v46 }
 0x32a   : > { %5678 = vmatpush1.bf16.msra.mxu0 %v7977_v42  ;;  %v4395_v41 = vpop.f32.mrf.mxu1  ;;  %v4344_v42 = vpop.f32.mrf.mxu0 }
 0x32b   : > { %5679 = vmatprep.subr.bf16.mxu0 %v7982_v11  ;;  %v4396_v44 = vadd.f32 %v4395_v41, %v4343_v0 }
 0x32c   : > { %v4397_v11 = vpop.f32.mrf.mxu1  ;;  %v4346_v12 = vpop.f32.mrf.mxu0 }
 0x32e   : > { %5680 = vmatpush1.bf16.msra.mxu0 %v7980_v24  ;;  %v4399_v18 = vpop.f32.mrf.mxu1  ;;  %v4350_v24 = vpop.f32.mrf.mxu0 }
 0x32f   : > { %5681 = vmatprep.subr.bf16.mxu0 %v7985_v3 }
 0x330   : > { %v4403_v3 = vpop.f32.mrf.mxu1  ;;  %v4352_v22 = vpop.f32.mrf.mxu0 }
 0x332   : > { %5682 = vmatpush1.bf16.msra.mxu0 %v7983_v20  ;;  %v4405_v19 = vpop.f32.mrf.mxu1  ;;  %v4354_v20 = vpop.f32.mrf.mxu0 }
 0x333   : > { %5683 = vmatprep.subr.bf16.mxu0 %v7988_v4 }
 0x334   : > { %v4407_v4 = vpop.f32.mrf.mxu1 }
 0x336   : > { %5684 = vmatpush1.bf16.msra.mxu0 %v7986_v26  ;;  %v9691_v60 = vpop.f32.mrf.mxu1 }
 0x337   : > { %5685 = vmatprep.subr.bf16.mxu0 %v7991_v45 }
 0x33a   : > { %5686 = vmatpush2.bf16.msra.mxu0 %v7989_v61 }
 0x33b   : > { %5687 = vmatprep.subr.bf16.mxu0 %v7994_v23 }
 0x33e   : > { %5688 = vmatpush2.bf16.msra.mxu0 %v7992_v51 }
 0x33f   : > { %5689 = vmatprep.subr.bf16.mxu0 %v7997_v31  ;;  %v4288_v31 = vadd.f32 %v4287_v6, %v9671_v63  ;;  %v9699_v63 = vsub.s32 2, %v9430_v9  ;;  %v4302_v6 = vadd.f32 %v4301_v56, %v4248_v16  ;;  %v4304_v56 = vadd.f32 %v9689_v8, %v9687_v47 }
 0x341   : > { %v4341_v13 = vadd.f32 %v4340_v17, %v4288_v31 }
 0x342   : > { %5690 = vmatpush2.bf16.msra.mxu0 %v7995_v10 }
 0x343   : > { %5691 = vmatprep.subr.bf16.mxu0 %v8000_v25  ;;  %v4394_v5 = vadd.f32 %v4393_v35, %v4341_v13 }
 0x346   : > { %5692 = vmatpush2.bf16.msra.mxu0 %v7998_v43  ;;  %v4294_v43 = vadd.f32 %v4293_v34, %v4240_v29  ;;  %v9704_v29 = vsub.s32 3, %v9430_v9 }
 0x347   : > { %5693 = vmatprep.subr.bf16.mxu0 %v8003_v33  ;;  %v4345_v33 = vadd.f32 %v4344_v42, %v4292_v36  ;;  %v8109_v42 = vld [vmem:[%s8724_s24] sm:$0xf] }
 0x348   : > { %v4347_v50 = vadd.f32 %v4346_v12, %v4294_v43  ;;  %v9708_v16 = vrot.slane %v8109_v42, %v9699_v63  ;;  %v8110_v12 = vld [vmem:[%s8726_s11] sm:$0xf] }
 0x34a   : > { %5694 = vmatpush2.bf16.msra.mxu0 %v8001_v37  ;;  %v4400_v21 = vadd.f32 %v4399_v18, %v4347_v50  ;;  %v9714_v18 = vrot.slane %v8110_v12, %v9699_v63 }
 0x34b   : > { %5695 = vmatprep.subr.bf16.mxu0 %v8006_v32 }
 0x34e   : > { %5696 = vmatpush2.bf16.msra.mxu0 %v8004_v15 }
 0x34f   : > { %5697 = vmatprep.subr.bf16.mxu0 %v8009_v58  ;;  %v4298_v58 = vadd.f32 %v4297_v55, %v4244_v39  ;;  %v4355_v55 = vadd.f32 %v4354_v20, %v4302_v6  ;;  %v9717_v20 = vrot.slane %v8109_v42, %v9704_v29 }
 0x351   : > { %v4351_v59 = vadd.f32 %v4350_v24, %v4298_v58 }
 0x352   : > { %5698 = vmatpush2.bf16.msra.mxu0 %v8007_v7  ;;  %v4300_v7 = vadd.f32 %v4299_v54, %v4246_v14 }
 0x353   : > { %5699 = vmatprep.subr.bf16.mxu0 %v8012_v40  ;;  %v4398_v40 = vadd.f32 %v4397_v11, %v4345_v33  ;;  %v4404_v11 = vadd.f32 %v4403_v3, %v4351_v59 }
 0x354   : > { %v4353_v34 = vadd.f32 %v4352_v22, %v4300_v7 }
 0x356   : > { %5700 = vmatpush2.bf16.msra.mxu0 %v8010_v57 }
 0x359   : > { %5702 = vmatmul.mubr.bf16.vlgmr.msra.gmra.mxu0 %v9625_v2  ;;  %v4356_v2 = vpop.f32.mrf.mxu0 }
 0x35a   : > { %v4499_v26 = vpop.f32.mrf.mxu1 }
 0x35b   : > { %v4446_v27 = vpop.f32.mrf.mxu0 }
 0x35c   : > { %v4501_v48 = vpop.f32.mrf.mxu1  ;;  %v4447_v15 = vadd.f32 %v4446_v27, %v4394_v5  ;;  %v4406_v27 = vadd.f32 %v4405_v19, %v4353_v34  ;;  %v4679_v19 = vrot.slane %v8110_v12, %v9704_v29 }
 0x35d   : > { %v4448_v45 = vpop.f32.mrf.mxu0 }
 0x35e   : > { %v4503_v61 = vpop.f32.mrf.mxu1  ;;  %v4449_v57 = vadd.f32 %v4448_v45, %v4396_v44  ;;  %v4500_v17 = vadd.f32 %v4499_v26, %v4447_v15 }
 0x35f   : > { %v4450_v62 = vpop.f32.mrf.mxu0 }
 0x360   : > { %v4505_v53 = vpop.f32.mrf.mxu1  ;;  %v4451_v39 = vadd.f32 %v4450_v62, %v4398_v40  ;;  %v4502_v38 = vadd.f32 %v4501_v48, %v4449_v57  ;;  %v4357_v62 = vadd.f32 %v4356_v2, %v4304_v56 }
 0x361   : > { %v4452_v23 = vpop.f32.mrf.mxu0 }
 0x362   : > { %v9693_v51 = vpop.f32.mrf.mxu1  ;;  %v4453_v14 = vadd.f32 %v4452_v23, %v4400_v21  ;;  %v4504_v26 = vadd.f32 %v4503_v61, %v4451_v39  ;;  %v4408_v23 = vadd.f32 %v4407_v4, %v4355_v55  ;;  %v4410_v4 = vadd.f32 %v9691_v60, %v4357_v62 }
 0x363   : > { %v4456_v49 = vpop.f32.mrf.mxu0 }
 0x364   : > { %v9696_v25 = vpop.f32.mrf.mxu1  ;;  %v4506_v31 = vadd.f32 %v4505_v53, %v4453_v14  ;;  %v4457_v46 = vadd.f32 %v4456_v49, %v4404_v11 }
 0x365   : > { %v4458_v10 = vpop.f32.mrf.mxu0 }
 0x366   : > { %v4513_v32 = vpop.f32.mrf.mxu1  ;;  %v4459_v8 = vadd.f32 %v4458_v10, %v4406_v27  ;;  %v4510_v2 = vadd.f32 %v9693_v51, %v4457_v46 }
 0x367   : > { %v4460_v37 = vpop.f32.mrf.mxu0 }
 0x368   : > { %v9701_v28 = vpop.f32.mrf.mxu1  ;;  %v4461_v43 = vadd.f32 %v4460_v37, %v4408_v23  ;;  %v4512_v15 = vadd.f32 %v9696_v25, %v4459_v8 }
 0x369   : > { %v4462_v52 = vpop.f32.mrf.mxu0 }
 0x36a   : > { %v4463_v7 = vadd.f32 %v4462_v52, %v4410_v4  ;;  %v4514_v40 = vadd.f32 %v4513_v32, %v4461_v43 }
 0x36c   : > { %v4516_v52 = vadd.f32 %v9701_v28, %v4463_v7 }
 0x399   : > { %v4552_v54 = vpop.f32.mrf.mxu0 }
 0x39a   : > { %v4605_v35 = vpop.f32.mrf.mxu1  ;;  %v4553_v41 = vadd.f32 %v4552_v54, %v4500_v17 }
 0x39b   : > { %v4554_v24 = vpop.f32.mrf.mxu0 }
 0x39c   : > { %v4607_v22 = vpop.f32.mrf.mxu1  ;;  %v4606_v45 = vadd.f32 %v4605_v35, %v4553_v41  ;;  %v4555_v48 = vadd.f32 %v4554_v24, %v4502_v38 }
 0x39d   : > { %v4556_v13 = vpop.f32.mrf.mxu0 }
 0x39e   : > { %v4609_v47 = vpop.f32.mrf.mxu1  ;;  %v4648_v3 = vmul.f32 %v9708_v16, %v4606_v45  ;;  %v4608_v36 = vadd.f32 %v4607_v22, %v4555_v48  ;;  %v4557_v0 = vadd.f32 %v4556_v13, %v4504_v26 }
 0x39f   : > { %v4558_v5 = vpop.f32.mrf.mxu0 }
 0x3a0   : > { %v4611_v33 = vpop.f32.mrf.mxu1  ;;  %v4649_v50 = vmul.f32 %v9717_v20, %v4608_v36  ;;  %v4610_v61 = vadd.f32 %v4609_v47, %v4557_v0  ;;  %v4559_v44 = vadd.f32 %v4558_v5, %v4506_v31  ;;  %v4686_v53 = vadd.f32 %v9714_v18, %v4648_v3 }
 0x3a1   : > { %v4562_v49 = vpop.f32.mrf.mxu0 }
 0x3a2   : > { %v4615_v10 = vpop.f32.mrf.mxu1  ;;  %v4652_v37 = vmul.f32 %v9708_v16, %v4610_v61  ;;  %v4612_v58 = vadd.f32 %v4611_v33, %v4559_v44  ;;  %v4563_v57 = vadd.f32 %v4562_v49, %v4510_v2  ;;  %v4687_v59 = vadd.f32 %v4679_v19, %v4649_v50 }
 0x3a3   : > { %v4564_v6 = vpop.f32.mrf.mxu0  ;;  %v4702_v17 = vmax.f32 %v4686_v53, 0.0 }
 0x3a4   : > { %v4617_v21 = vpop.f32.mrf.mxu1  ;;  %v4690_v34 = vadd.f32 %v9714_v18, %v4652_v37  ;;  %v4653_v60 = vmul.f32 %v9717_v20, %v4612_v58  ;;  %v4565_v51 = vadd.f32 %v4564_v6, %v4512_v15  ;;  %v4616_v39 = vadd.f32 %v4615_v10, %v4563_v57 }
 0x3a5   : > { %v4566_v55 = vpop.f32.mrf.mxu0  ;;  %v4703_v42 = vmax.f32 %v4687_v59, 0.0 }
 0x3a6   : > { %v4706_v14 = vmax.f32 %v4690_v34, 0.0  ;;  %v4691_v54 = vadd.f32 %v4679_v19, %v4653_v60  ;;  %v4618_v25 = vadd.f32 %v4617_v21, %v4565_v51  ;;  %v4567_v35 = vadd.f32 %v4566_v55, %v4514_v40  ;;  %v4619_v38 = vpop.f32.mrf.mxu1 }
 0x3a7   : > { %v4656_v32 = vmul.f32 %v9708_v16, %v4616_v39  ;;  %v4568_v41 = vpop.f32.mrf.mxu0 }
 0x3a8   : > { %v4730_v56 = vadd.f32 %v4706_v14, %v4702_v17  ;;  %v4707_v11 = vmax.f32 %v4691_v54, 0.0  ;;  %v4620_v12 = vadd.f32 %v4619_v38, %v4567_v35  ;;  %v4657_v24 = vmul.f32 %v9717_v20, %v4618_v25  ;;  %v4621_v62 = vpop.f32.mrf.mxu1 }
 0x3a9   : > { %v4569_v22 = vadd.f32 %v4568_v41, %v4516_v52  ;;  %v4694_v45 = vadd.f32 %v9714_v18, %v4656_v32 }
 0x3aa   : > { %v4731_v27 = vrot.slane %v4730_v56, 4  ;;  %v4737_v26 = vadd.f32 %v4707_v11, %v4703_v42  ;;  %v4660_v48 = vmul.f32 %v9708_v16, %v4620_v12  ;;  %v4695_v13 = vadd.f32 %v4679_v19, %v4657_v24  ;;  %v8066_v12 = vld [vmem:[%s8732_s21 + $0x2cc] ss:$16 sps:$4 sm:$0xff]   ;;  %v8064_v24 = vld [vmem:[%s8732_s21 + $0x2c8] ss:$16 sps:$4 sm:$0xff]  }
 0x3ab   : > { %v4622_v23 = vadd.f32 %v4621_v62, %v4569_v22  ;;  %v4710_v36 = vmax.f32 %v4694_v45, 0.0  ;;  %v8069_v22 = vld [vmem:[%s8732_s21 + $0x2ac] ss:$16 sps:$4 sm:$0xff]   ;;  %v8070_v45 = vld [vmem:[%s8732_s21 + $0x288] ss:$16 sps:$4 sm:$0xff]  }
 0x3ac   : > { %v4732_v31 = vadd.f32 %v4731_v27, %v4730_v56  ;;  %v4738_v28 = vrot.slane %v4737_v26, 4  ;;  %v4698_v46 = vadd.f32 %v9714_v18, %v4660_v48  ;;  %v4711_v61 = vmax.f32 %v4695_v13, 0.0  ;;  %v8061_v56 = vld [vmem:[%s8732_s21 + $0x2e8] ss:$16 sps:$4 sm:$0xff]   ;;  %v8075_v48 = vld [vmem:[%s8732_s21 + $0x26c] ss:$16 sps:$4 sm:$0xff]  }
 0x3ad   : > { %v4661_v47 = vmul.f32 %v9717_v20, %v4622_v23  ;;  %v8067_v27 = vld [vmem:[%s8732_s21 + $0x2a8] ss:$16 sps:$4 sm:$0xff]  }
 0x3ae   : > { %v4733_v8 = vrot.slane %v4732_v31, 2  ;;  %v4739_v3 = vadd.f32 %v4738_v28, %v4737_v26  ;;  %v4714_v0 = vmax.f32 %v4698_v46, 0.0  ;;  %v8072_v26 = vld [vmem:[%s8732_s21 + $0x28c] ss:$16 sps:$4 sm:$0xff]   ;;  %v8073_v62 = vld [vmem:[%s8732_s21 + $0x268] ss:$16 sps:$4 sm:$0xff]  }
 0x3af   : > { %v4699_v43 = vadd.f32 %v4679_v19, %v4661_v47  ;;  %v8076_v46 = vld [vmem:[%s8732_s21 + $0x248] ss:$16 sps:$4 sm:$0xff]   ;;  %v8081_v47 = vld [vmem:[%s8732_s21 + $0x22c] ss:$16 sps:$4 sm:$0xff]  }
 0x3b0   : > { %v4734_v5 = vadd.f32 %v4733_v8, %v4732_v31  ;;  %v4740_v33 = vrot.slane %v4739_v3, 2  ;;  %v4758_v50 = vadd.f32 %v4714_v0, %v4710_v36  ;;  %v8078_v31 = vld [vmem:[%s8732_s21 + $0x24c] ss:$16 sps:$4 sm:$0xff]   ;;  %v8082_v0 = vld [vmem:[%s8732_s21 + $0x208] ss:$16 sps:$4 sm:$0xff]  }
 0x3b1   : > { %v4715_v44 = vmax.f32 %v4699_v43, 0.0  ;;  %v8084_v36 = vld [vmem:[%s8732_s21 + $0x20c] ss:$16 sps:$4 sm:$0xff]  }
 0x3b2   : > { %v4741_v16 = vadd.f32 %v4740_v33, %v4739_v3  ;;  %v4759_v4 = vrot.slane %v4758_v50, 4  ;;  %v4735_v53 = vrot.slane %v4734_v5, 1  ;;  %v8079_v3 = vld [vmem:[%s8732_s21 + $0x228] ss:$16 sps:$4 sm:$0xff]   ;;  %v8087_v43 = vld [vmem:[%s8732_s21 + $0x3ec] ss:$16 sps:$4 sm:$0xff]  }
 0x3b3   : > { %v4765_v2 = vadd.f32 %v4715_v44, %v4711_v61  ;;  %v8090_v33 = vld [vmem:[%s8732_s21 + $0x3cc] ss:$16 sps:$4 sm:$0xff]   ;;  %v8091_v44 = vld [vmem:[%s8732_s21 + $0x3a8] ss:$16 sps:$4 sm:$0xff]  }
 0x3b4   : > { %v4760_v49 = vadd.f32 %v4759_v4, %v4758_v50  ;;  %v4742_v18 = vrot.slane %v4741_v16, 1  ;;  %v4736_v20 = vadd.f32 %v4735_v53, %v4734_v5  ;;  %v8085_v5 = vld [vmem:[%s8732_s21 + $0x3e8] ss:$16 sps:$4 sm:$0xff]   ;;  %v8093_v61 = vld [vmem:[%s8732_s21 + $0x3ac] ss:$16 sps:$4 sm:$0xff]  }
 0x3b5   : > { %v4766_v10 = vrot.slane %v4765_v2, 4  ;;  %v8088_v50 = vld [vmem:[%s8732_s21 + $0x3c8] ss:$16 sps:$4 sm:$0xff]  }
 0x3b6   : > { %v4761_v15 = vrot.slane %v4760_v49, 2  ;;  %v4743_v40 = vadd.f32 %v4742_v18, %v4741_v16  ;;  %v4775_v6 = vmul.f32 0.0625, %v4736_v20  ;;  %v8096_v16 = vld [vmem:[%s8732_s21 + $0x38c] ss:$16 sps:$4 sm:$0xff]   ;;  %v8094_v4 = vld [vmem:[%s8732_s21 + $0x388] ss:$16 sps:$4 sm:$0xff]  }
 0x3b7   : > { %v4767_v37 = vadd.f32 %v4766_v10, %v4765_v2  ;;  %v8099_v2 = vld [vmem:[%s8732_s21 + $0x36c] ss:$16 sps:$4 sm:$0xff]   ;;  %v8097_v53 = vld [vmem:[%s8732_s21 + $0x368] ss:$16 sps:$4 sm:$0xff]  }
 0x3b8   : > { %v4762_v58 = vadd.f32 %v4761_v15, %v4760_v49  ;;  %v4776_v34 = vmul.f32 0.0625, %v4743_v40  ;;  %v4784_v17 = vpack.c.bf16 %v4775_v6, %v4775_v6  ;;  %v8102_v49 = vld [vmem:[%s8732_s21 + $0x34c] ss:$16 sps:$4 sm:$0xff]   ;;  %v8100_v10 = vld [vmem:[%s8732_s21 + $0x348] ss:$16 sps:$4 sm:$0xff]  }
 0x3b9   : > { %v4768_v7 = vrot.slane %v4767_v37, 2  ;;  %v8105_v18 = vld [vmem:[%s8732_s21 + $0x32c] ss:$16 sps:$4 sm:$0xff]   ;;  %v8103_v15 = vld [vmem:[%s8732_s21 + $0x328] ss:$16 sps:$4 sm:$0xff]  }
 0x3ba   : > { %v4763_v57 = vrot.slane %v4762_v58, 1  ;;  %v4785_v14 = vpack.c.bf16 %v4776_v34, %v4776_v34  ;;  %v4928_v35 = vunpack.c.l.b16 %v4784_v17  ;;  %v8106_v20 = vld [vmem:[%s8732_s21 + $0x308] ss:$16 sps:$4 sm:$0xff]   ;;  %v8424_v17 = vmov 1983009808  }
 0x3bb   : > { %v4769_v19 = vadd.f32 %v4768_v7, %v4767_v37  ;;  %v8108_v37 = vld [vmem:[%s8732_s21 + $0x30c] ss:$16 sps:$4 sm:$0xff]  }
 0x3bc   : > { %v4764_v21 = vadd.f32 %v4763_v57, %v4762_v58  ;;  %v4929_v38 = vunpack.c.l.b16 %v4785_v14 }
 0x3bd   : > { %v4770_v59 = vrot.slane %v4769_v19, 1 }
 0x3be   : > { %v4779_v60 = vmul.f32 0.0625, %v4764_v21 }
 0x3bf   : > { %v4771_v51 = vadd.f32 %v4770_v59, %v4769_v19 }
 0x3c0   : > { %v4788_v39 = vpack.c.bf16 %v4779_v60, %v4779_v60 }
 0x3c1   : > { %v4780_v55 = vmul.f32 0.0625, %v4771_v51 }
 0x3c2   : > { %v4932_v54 = vunpack.c.l.b16 %v4788_v39  ;;  %v5758_v39 = vunpack.c.l.s4 %v8424_v17 }
 0x3c3   : > { %v4789_v25 = vpack.c.bf16 %v4780_v55, %v4780_v55 }
 0x3c4   : > { %v4937_v32 = vsel %vm4934_vm0, %v4932_v54, %v4928_v35  ;;  %v5759_v55 = vunpack.c.0.s8 %v5758_v39 }
 0x3c5   : > { %v4933_v52 = vunpack.c.l.b16 %v4789_v25  ;;  %v9739_v11 = vpack.c.b16 %v4937_v32, %v4937_v32 }
 0x3c6   : > { %v9774_v25 = vsub.s32 %v5759_v55, %v9430_v9 }
 0x3c7   : > { %v4938_v41 = vsel %vm4934_vm0, %v4933_v52, %v4929_v38 }
 0x3c8   : > { %v4942_v42 = vpack.c.b16 %v4938_v41, %v4938_v41 }
 0x3ca   : > { %5660 = vmatprep.mubr.bf16.mxu1 %v4942_v42 }
 0x3cb   : > { %5661 = vmatmul.mubr.bf16.vlgmr.msra.gmra.mxu1 %v9739_v11 }
 0x3cc   : > { %5711 = vmatpush1.bf16.msra.mxu1 %v8061_v56  ;;  %5742 = vmatprep.mubr.bf16.mxu1 %v4942_v42 }
 0x3cd   : > { %5712 = vmatprep.subr.bf16.mxu1 %v8066_v12 }
 0x3d0   : > { %5713 = vmatpush1.bf16.msra.mxu1 %v8064_v24 }
 0x3d1   : > { %5714 = vmatprep.subr.bf16.mxu1 %v8069_v22 }
 0x3d4   : > { %5715 = vmatpush1.bf16.msra.mxu1 %v8067_v27 }
 0x3d5   : > { %5716 = vmatprep.subr.bf16.mxu1 %v8072_v26 }
 0x3d8   : > { %5717 = vmatpush1.bf16.msra.mxu1 %v8070_v45 }
 0x3d9   : > { %v5621_v23 = vpop.f32.mrf.mxu0  ;;  %5718 = vmatprep.subr.bf16.mxu1 %v8075_v48 }
 0x3db   : > { %v5623_v28 = vpop.f32.mrf.mxu0 }
 0x3dc   : > { %5719 = vmatpush1.bf16.msra.mxu1 %v8073_v62 }
 0x3dd   : > { %v5625_v13 = vpop.f32.mrf.mxu0  ;;  %5720 = vmatprep.subr.bf16.mxu1 %v8078_v31 }
 0x3df   : > { %v5626_v8 = vpop.f32.mrf.mxu0 }
 0x3e0   : > { %5721 = vmatpush1.bf16.msra.mxu1 %v8076_v46 }
 0x3e1   : > { %5722 = vmatprep.subr.bf16.mxu1 %v8081_v47 }
 0x3e4   : > { %5723 = vmatpush1.bf16.msra.mxu1 %v8079_v3 }
 0x3e5   : > { %5724 = vmatprep.subr.bf16.mxu1 %v8084_v36 }
 0x3e8   : > { %5725 = vmatpush1.bf16.msra.mxu1 %v8082_v0 }
 0x3e9   : > { %5726 = vmatprep.subr.bf16.mxu1 %v8087_v43 }
 0x3ec   : > { %5727 = vmatpush2.bf16.msra.mxu1 %v8085_v5 }
 0x3ed   : > { %5728 = vmatprep.subr.bf16.mxu1 %v8090_v33 }
 0x3f0   : > { %5729 = vmatpush2.bf16.msra.mxu1 %v8088_v50 }
 0x3f1   : > { %5730 = vmatprep.subr.bf16.mxu1 %v8093_v61 }
 0x3f4   : > { %5731 = vmatpush2.bf16.msra.mxu1 %v8091_v44 }
 0x3f5   : > { %5732 = vmatprep.subr.bf16.mxu1 %v8096_v16 }
 0x3f8   : > { %5733 = vmatpush2.bf16.msra.mxu1 %v8094_v4 }
 0x3f9   : > { %5734 = vmatprep.subr.bf16.mxu1 %v8099_v2 }
 0x3fc   : > { %5735 = vmatpush2.bf16.msra.mxu1 %v8097_v53 }
 0x3fd   : > { %5736 = vmatprep.subr.bf16.mxu1 %v8102_v49 }
 0x400   : > { %5737 = vmatpush2.bf16.msra.mxu1 %v8100_v10 }
 0x401   : > { %5738 = vmatprep.subr.bf16.mxu1 %v8105_v18 }
 0x404   : > { %5739 = vmatpush2.bf16.msra.mxu1 %v8103_v15 }
 0x405   : > { %5740 = vmatprep.subr.bf16.mxu1 %v8108_v37 }
 0x408   : > { %5741 = vmatpush2.bf16.msra.mxu1 %v8106_v20 }
 0x40b   : > { %5743 = vmatmul.mubr.bf16.vlgmr.msra.gmra.mxu1 %v9739_v11  ;;  %v4781_v11 = vld [vmem:[#allocation2] sm:$0xff] }
 0x419   : > { %v5703_v58 = vpop.f32.mrf.mxu0 }
 0x41b   : > { %v5705_v7 = vpop.f32.mrf.mxu0 }
 0x41d   : > { %v5707_v40 = vpop.f32.mrf.mxu0 }
 0x41f   : > { %v5708_v57 = vpop.f32.mrf.mxu0 }
 0x48b   : > { %v5662_v19 = vpop.f32.mrf.mxu1 }
 0x48c   : > { %v5663_v21 = vadd.f32 %v5662_v19, %v5621_v23 }
 0x48d   : > { %v5664_v6 = vpop.f32.mrf.mxu1 }
 0x48e   : > { %v5665_v59 = vadd.f32 %v5664_v6, %v5623_v28 }
 0x48f   : > { %v5666_v34 = vpop.f32.mrf.mxu1 }
 0x490   : > { %v5755_v60 = vcombine.low %v5663_v21, %v5665_v59 }
 0x491   : > { %v5667_v51 = vpop.f32.mrf.mxu1 }
 0x492   : > { %v5763_v42 = vrot.slane %v5755_v60, %v9774_v25 }
 0x4cb   : > { %v5744_v14 = vpop.f32.mrf.mxu1 }
 0x4cc   : > { %v5745_v35 = vadd.f32 %v5744_v14, %v5703_v58 }
 0x4cd   : > { %v5746_v54 = vpop.f32.mrf.mxu1 }
 0x4ce   : > { %v5747_v38 = vadd.f32 %v5746_v54, %v5705_v7 }
 0x4cf   : > { %v5748_v52 = vpop.f32.mrf.mxu1 }
 0x4d0   : > { %v5756_v32 = vcombine.low %v5745_v35, %v5747_v38 }
 0x4d1   : > { %v5749_v41 = vpop.f32.mrf.mxu1 }
 0x4d2   : > { %v5770_v56 = vrot.slane %v5756_v32, %v9774_v25 }
 0x4d4   : > { %v5771_v12 = vcombine.low %v5763_v42, %v5770_v56  ;;  %5778 = sbr.rel (%p6959_p5) target bundleno = 1512 (0x5e8), region = 96 }
 0x4d6   : > { %v5773_v24 = vadd.f32 %v5771_v12, %v4781_v11 }
 0x4d8   : > { %5774 = vst [vmem:[#allocation2] sm:$0xff] %v5773_v24 }
 0x4d9   : > { %v5886_v9 = vld [vmem:[%s10073_s12 + $0xf8] sm:$0xff]  ;;  %v5885_v45 = vld [vmem:[%s10074_s25 + $0xf0] sm:$0xff]  ;;  %v5884_v31 = vld [vmem:[%s10074_s25 + $0xe8] sm:$0xff]  ;;  %vm6094_vm1 = vcmask 123904  }
 0x4da   : > { %v5918_v22 = vld [vmem:[%s10074_s25 + $0x1f8] sm:$0xff]  ;;  %6971 = vmatprep.subr.mxu0 %v5886_v9  ;;  %v5917_v48 = vld [vmem:[%s10074_s25 + $0x1f0] sm:$0xff]  ;;  %v5916_v28 = vld [vmem:[%s10074_s25 + $0x1e8] sm:$0xff] }
 0x4db   : > { %v5870_v27 = vld [vmem:[%s10074_s25 + $0x78] sm:$0xff]  ;;  %7006 = vmatprep.subr.mxu1 %v5918_v22  ;;  %v5869_v62 = vld [vmem:[%s10074_s25 + $0x70] sm:$0xff]  ;;  %v5868_v46 = vld [vmem:[%s10074_s25 + $0x68] sm:$0xff] }
 0x4dc   : > { %v5902_v26 = vld [vmem:[%s10074_s25 + $0x178] sm:$0xff]  ;;  %6972 = vmatpush3.msra.mxu0 %v5870_v27  ;;  %v5901_v23 = vld [vmem:[%s10074_s25 + $0x170] sm:$0xff]  ;;  %v5900_v13 = vld [vmem:[%s10074_s25 + $0x168] sm:$0xff] }
 0x4dd   : > { %7007 = vmatpush3.msra.mxu1 %v5902_v26  ;;  %6973 = vmatprep.subr.mxu0 %v5885_v45  ;;  %v5883_v47 = vld [vmem:[%s10074_s25 + $0xe0] sm:$0xff]  ;;  %v5882_v0 = vld [vmem:[%s10074_s25 + $0xd8] sm:$0xff]  ;;  %v5881_v50 = vld [vmem:[%s10074_s25 + $0xd0] sm:$0xff] }
 0x4de   : > { %7008 = vmatprep.subr.mxu1 %v5917_v48  ;;  %6974 = vmatpush3.msra.mxu0 %v5869_v62  ;;  %v5915_v8 = vld [vmem:[%s10074_s25 + $0x1e0] sm:$0xff]  ;;  %v5914_v43 = vld [vmem:[%s10074_s25 + $0x1d8] sm:$0xff]  ;;  %v5913_v61 = vld [vmem:[%s10074_s25 + $0x1d0] sm:$0xff] }
 0x4df   : > { %7009 = vmatpush3.msra.mxu1 %v5901_v23  ;;  %6975 = vmatprep.subr.mxu0 %v5884_v31  ;;  %v5867_v3 = vld [vmem:[%s10074_s25 + $0x60] sm:$0xff]  ;;  %v5866_v5 = vld [vmem:[%s10074_s25 + $0x58] sm:$0xff]  ;;  %v5865_v44 = vld [vmem:[%s10074_s25 + $0x50] sm:$0xff] }
 0x4e0   : > { %7010 = vmatprep.subr.mxu1 %v5916_v28  ;;  %v5899_v36 = vld [vmem:[%s10074_s25 + $0x160] sm:$0xff]  ;;  %6976 = vmatpush3.msra.mxu0 %v5868_v46  ;;  %v5898_v33 = vld [vmem:[%s10074_s25 + $0x158] sm:$0xff]  ;;  %v5897_v16 = vld [vmem:[%s10074_s25 + $0x150] sm:$0xff] }
 0x4e1   : > { %7011 = vmatpush3.msra.mxu1 %v5900_v13  ;;  %6977 = vmatprep.subr.mxu0 %v5883_v47  ;;  %v5880_v4 = vld [vmem:[%s10074_s25 + $0xc8] sm:$0xff]  ;;  %v5879_v10 = vld [vmem:[%s10074_s25 + $0xc0] sm:$0xff]  ;;  %v5878_v20 = vld [vmem:[%s10074_s25 + $0xb8] sm:$0xff] }
 0x4e2   : > { %7012 = vmatprep.subr.mxu1 %v5915_v8  ;;  %6978 = vmatpush3.msra.mxu0 %v5867_v3  ;;  %v5912_v2 = vld [vmem:[%s10074_s25 + $0x1c8] sm:$0xff]  ;;  %v5911_v18 = vld [vmem:[%s10074_s25 + $0x1c0] sm:$0xff]  ;;  %v5910_v58 = vld [vmem:[%s10074_s25 + $0x1b8] sm:$0xff] }
 0x4e3   : > { %7013 = vmatpush3.msra.mxu1 %v5899_v36  ;;  %6979 = vmatprep.subr.mxu0 %v5882_v0  ;;  %v5864_v53 = vld [vmem:[%s10074_s25 + $0x48] sm:$0xff]  ;;  %v5863_v15 = vld [vmem:[%s10074_s25 + $0x40] sm:$0xff]  ;;  %v5862_v7 = vld [vmem:[%s10074_s25 + $0x38] sm:$0xff] }
 0x4e4   : > { %7014 = vmatprep.subr.mxu1 %v5914_v43  ;;  %6980 = vmatpush3.msra.mxu0 %v5866_v5  ;;  %v5896_v49 = vld [vmem:[%s10074_s25 + $0x148] sm:$0xff]  ;;  %v5895_v37 = vld [vmem:[%s10074_s25 + $0x140] sm:$0xff]  ;;  %v5894_v40 = vld [vmem:[%s10074_s25 + $0x138] sm:$0xff] }
 0x4e5   : > { %7015 = vmatpush3.msra.mxu1 %v5898_v33  ;;  %6981 = vmatprep.subr.mxu0 %v5881_v50  ;;  %v5877_v57 = vld [vmem:[%s10074_s25 + $0xb0] sm:$0xff]  ;;  %v5876_v59 = vld [vmem:[%s10074_s25 + $0xa8] sm:$0xff]  ;;  %v5875_v17 = vld [vmem:[%s10074_s25 + $0xa0] sm:$0xff] }
 0x4e6   : > { %7016 = vmatprep.subr.mxu1 %v5913_v61  ;;  %6982 = vmatpush3.msra.mxu0 %v5865_v44  ;;  %v5909_v19 = vld [vmem:[%s10074_s25 + $0x1b0] sm:$0xff]  ;;  %v5908_v34 = vld [vmem:[%s10074_s25 + $0x1a8] sm:$0xff]  ;;  %v5907_v39 = vld [vmem:[%s10074_s25 + $0x1a0] sm:$0xff] }
 0x4e7   : > { %7017 = vmatpush3.msra.mxu1 %v5897_v16  ;;  %6983 = vmatprep.subr.mxu0 %v5880_v4  ;;  %v5861_v6 = vld [vmem:[%s10074_s25 + $0x30] sm:$0xff]  ;;  %v5860_v60 = vld [vmem:[%s10074_s25 + $0x28] sm:$0xff]  ;;  %v5859_v55 = vld [vmem:[%s10074_s25 + $0x20] sm:$0xff] }
 0x4e8   : > { %7018 = vmatprep.subr.mxu1 %v5912_v2  ;;  %6984 = vmatpush3.msra.mxu0 %v5864_v53  ;;  %v5893_v21 = vld [vmem:[%s10074_s25 + $0x130] sm:$0xff]  ;;  %v5892_v51 = vld [vmem:[%s10074_s25 + $0x128] sm:$0xff]  ;;  %v5891_v14 = vld [vmem:[%s10074_s25 + $0x120] sm:$0xff] }
 0x4e9   : > { %7019 = vmatpush3.msra.mxu1 %v5896_v49  ;;  %6985 = vmatprep.subr.mxu0 %v5879_v10  ;;  %v5780_v54 = vld [vmem:[#allocation12] sm:$0xf]  ;;  %v5817_v35 = vld [vmem:[#allocation14] sm:$0xf]  ;;  %v5873_v22 = vld [vmem:[%s10074_s25 + $0x90] sm:$0xff] }
 0x4ea   : > { %7020 = vmatprep.subr.mxu1 %v5911_v18  ;;  %6986 = vmatpush3.msra.mxu0 %v5863_v15  ;;  %v5874_v38 = vld [vmem:[%s10074_s25 + $0x98] sm:$0xff]  ;;  %v5785_v32 = vrot.slane %v5780_v54, %v9440_v1  ;;  %v5789_v41 = vrot.slane %v5780_v54, %v9506_v30  ;;  %v5793_v42 = vrot.slane %v5780_v54, %v9699_v63  ;;  %v5905_v27 = vld [vmem:[%s10074_s25 + $0x190] sm:$0xff]  ;;  %v5856_v46 = vld [vmem:[%s10074_s25 + $0x8] sm:$0xff] }
 0x4eb   : > { %7021 = vmatpush3.msra.mxu1 %v5895_v37  ;;  %6987 = vmatprep.subr.mxu0 %v5878_v20  ;;  %v5906_v52 = vld [vmem:[%s10074_s25 + $0x198] sm:$0xff]  ;;  %v5797_v12 = vrot.slane %v5780_v54, %v9704_v29  ;;  %v5822_v24 = vrot.slane %v5817_v35, %v9440_v1  ;;  %v5826_v9 = vrot.slane %v5817_v35, %v9506_v30  ;;  %v5857_v1 = vld [vmem:[%s10074_s25 + $0x10] sm:$0xff]  ;;  %v5888_v13 = vld [vmem:[%s10074_s25 + $0x108] sm:$0xff] }
 0x4ec   : > { %7022 = vmatprep.subr.mxu1 %v5910_v58  ;;  %6988 = vmatpush3.msra.mxu0 %v5862_v7  ;;  %v5858_v56 = vld [vmem:[%s10074_s25 + $0x18] sm:$0xff]  ;;  %v5798_v26 = vcombine.low %v5785_v32, %v5789_v41  ;;  %v5830_v45 = vrot.slane %v5817_v35, %v9699_v63  ;;  %v5834_v48 = vrot.slane %v5817_v35, %v9704_v29  ;;  %v5889_v30 = vld [vmem:[%s10074_s25 + $0x110] sm:$0xff]  ;;  %v5872_v63 = vld [vmem:[%s10074_s25 + $0x88] sm:$0xff] }
 0x4ed   : > { %7023 = vmatpush3.msra.mxu1 %v5894_v40  ;;  %6989 = vmatprep.subr.mxu0 %v5877_v57  ;;  %v5890_v11 = vld [vmem:[%s10074_s25 + $0x118] sm:$0xff]  ;;  %v5799_v62 = vcombine.low %v5793_v42, %v5797_v12  ;;  %v5835_v23 = vcombine.low %v5822_v24, %v5826_v9  ;;  %v5904_v29 = vld [vmem:[%s10074_s25 + $0x188] sm:$0xff]  ;;  %v5871_v3 = vld [vmem:[%s10074_s25 + $0x80] sm:$0xff] }
 0x4ee   : > { %7024 = vmatprep.subr.mxu1 %v5909_v19  ;;  %6990 = vmatpush3.msra.mxu0 %v5861_v6  ;;  %v5806_v31 = vrot.slane %v5798_v26, %v9774_v25  ;;  %v5836_v28 = vcombine.low %v5830_v45, %v5834_v48  ;;  %v5903_v36 = vld [vmem:[%s10074_s25 + $0x180] sm:$0xff] }
 0x4ef   : > { %7025 = vmatpush3.msra.mxu1 %v5893_v21  ;;  %6991 = vmatprep.subr.mxu0 %v5876_v59  ;;  %v5813_v47 = vrot.slane %v5799_v62, %v9774_v25  ;;  %v5843_v8 = vrot.slane %v5835_v23, %v9774_v25  ;;  %v5779_v0 = vld [vmem:[#allocation2] sm:$0xff] }
 0x4f0   : > { %7026 = vmatprep.subr.mxu1 %v5908_v34  ;;  %6992 = vmatpush3.msra.mxu0 %v5860_v60  ;;  %v5850_v43 = vrot.slane %v5836_v28, %v9774_v25  ;;  %v5855_v5 = vld [vmem:[%s10074_s25] sm:$0xff] }
 0x4f1   : > { %7027 = vmatpush3.msra.mxu1 %v5892_v51  ;;  %6993 = vmatprep.subr.mxu0 %v5875_v17  ;;  %v5814_v33 = vcombine.low %v5806_v31, %v5813_v47  ;;  %v5887_v50 = vld [vmem:[%s10074_s25 + $0x100] sm:$0xff] }
 0x4f2   : > { %7028 = vmatprep.subr.mxu1 %v5907_v39  ;;  %6994 = vmatpush3.msra.mxu0 %v5859_v55  ;;  %v5851_v61 = vcombine.low %v5843_v8, %v5850_v43  ;;  %v6960_v20 = vld [vmem:[#allocation15] ss:$0 sm:$0xff] }
 0x4f3   : > { %7029 = vmatpush3.msra.mxu1 %v5891_v14  ;;  %6995 = vmatprep.subr.mxu0 %v5874_v38  ;;  %v5816_v44 = vmul.f32 %v5814_v33, %v5779_v0 }
 0x4f4   : > { %7030 = vmatprep.subr.mxu1 %v5906_v52  ;;  %6996 = vmatpush3.msra.mxu0 %v5858_v56 }
 0x4f5   : > { %7031 = vmatpush3.msra.mxu1 %v5890_v11  ;;  %6997 = vmatprep.subr.mxu0 %v5873_v22  ;;  %v5853_v16 = vadd.f32 %v5851_v61, %v5816_v44 }
 0x4f6   : > { %7032 = vmatprep.subr.mxu1 %v5905_v27  ;;  %6998 = vmatpush3.msra.mxu0 %v5857_v1 }
 0x4f7   : > { %7033 = vmatpush3.msra.mxu1 %v5889_v30  ;;  %6999 = vmatprep.subr.mxu0 %v5872_v63  ;;  %v5854_v4 = vmax.f32 %v5853_v16, 0.0 }
 0x4f8   : > { %7034 = vmatprep.subr.mxu1 %v5904_v29  ;;  %7000 = vmatpush3.msra.mxu0 %v5856_v46 }
 0x4f9   : > { %7035 = vmatpush3.msra.mxu1 %v5888_v13  ;;  %7001 = vmatprep.subr.mxu0 %v5871_v3  ;;  %v5934_v2 = vrot.slane %v5854_v4, %v9774_v25  ;;  %v5927_v53 = vcombine.high %v5854_v4, %v5854_v4 }
 0x4fa   : > { %7036 = vmatprep.subr.mxu1 %v5903_v36  ;;  %7002 = vmatpush3.msra.mxu0 %v5855_v5 }
 0x4fb   : > { %7037 = vmatpush3.msra.mxu1 %v5887_v50  ;;  %v5942_v49 = vcombine.high %v5934_v2, %v5934_v2  ;;  %v5941_v10 = vrot.slane %v5927_v53, %v9774_v25 }
 0x4fd   : > { %6012 = vmatprep.mubr.f32.mxu0 %v5942_v49  ;;  %v5943_v18 = vcombine.high %v5941_v10, %v5941_v10 }
 0x4fe   : > { %6013 = vmatmul.mubr.f32.vlgmr.msra.gmra.mxu0 %v5934_v2 }
 0x4ff   : > { %6082 = vmatprep.mubr.f32.mxu1 %v5943_v18 }
 0x500   : > { %6083 = vmatmul.mubr.f32.vlgmr.msra.gmra.mxu1 %v5941_v10 }
 0x5be   : > { %v7003_v15 = vpop.f32.mrf.mxu0 }
 0x5c0   : > { %v7038_v37 = vpop.f32.mrf.mxu1  ;;  %v7004_v58 = vpop.f32.mrf.mxu0 }
 0x5c1   : > { %v7005_v7 = vadd.f32 %v7004_v58, %v7003_v15 }
 0x5c2   : > { %v7039_v40 = vpop.f32.mrf.mxu1 }
 0x5c3   : > { %v6015_v57 = vadd.f32 %v7005_v7, %v6960_v20  ;;  %v7040_v19 = vadd.f32 %v7039_v40, %v7038_v37 }
 0x5c5   : > { %v6085_v6 = vadd.f32 %v7040_v19, %v6015_v57 }
 0x5c7   : > { %v6961_v21 = vmul.f32 -1.442695, %v6085_v6 }
 0x5c9   : > { %8111 = vpow2.f32 %v6961_v21 }
 0x5d6   : > { %v8112_v59 = vpop.eup %8111 }
 0x5d7   : > { %v6091_v34 = vadd.f32 1.0, %v8112_v59 }
 0x5d9   : > { %8113 = vrcp.f32 %v6091_v34 }
 0x5e6   : > { %v8114_v25 = vpop.eup %8113 }
 0x5e7   : > { %6095 = vst.msk [vmem:[#allocation17] sm:$0x3] %vm6094_vm1, %v8114_v25 }
 0x5e8 PF: > { %p7104_p1 = scmp.eq.s32.totalorder %s8495_s13, 3  ;;  %s8425_s11 = smov [#allocation17]  }
 0x5e9   : > { %s6103_s19 = sshll.u32 %s8425_s11, 4  ;;  %s6104_s19 = int_to_ptr.vmem [resolvable:$true] %s6103_s19 }
 0x5ea   : > { %s8331_s21 = scalar_lea.vmem %s6104_s19, 32  ;;  %p8338_p6 = scmp.lt.s32.totalorder %s6104_s19, %s6104_s19 }
 0x5eb   : > { %p8332_p11 = scmp.ne.s32.totalorder %s6104_s19, %s8331_s21  ;;  %p8339_p4 = scmp.lt.s32.totalorder %s8331_s21, %s8331_s21 }
 0x5ed   : > { %p8333_p3 = pnand %p8332_p11, %p7104_p1  ;;  %p8340_p8 = por %p8339_p4, %p8338_p6 }
 0x5ef   : > { %p8334_p7 = pneg %p8333_p3 }
 0x5f1   : > { %p8341_p12 = pnand %p8340_p8, %p8334_p7 }
 0x5f3   : > { %8344 = shalt.err (!%p8341_p12)
}
 0x5f4   : > { %s10075_s12 = sld [smem:[#allocation31_spill]] }
 0x5fa   : > { %7066 = dma.vmem_to_hbm [thread:$0]  (%p7104_p1), %s6104_s19, 32, %s10075_s12, [#allocation5]  }
 0x5fb   : > { %8392 = dma.done.wait (%p7104_p1), [#allocation5], 32  }
 0x5fc   : > { %8394 = vsyncadd (%p7104_p1), [#allocation5], 4294967264 }
 0x5fd PF: > { %s10076_s12 = sld [smem:[#allocation26_spill]]  ;;  %s10079_s30 = smov %s8401_s10 }
 0x5fe   : > { %s10077_s16 = sld [smem:[#allocation24_spill]] }
 0x5ff   : > { %s10078_s11 = sld [smem:[#allocation27_spill]] }
 0x603   : > { %p26_p9 = scmp.ge.s32.totalorder %s10076_s12, 6  }
 0x604   : > { %s10080_s10 = smov %s10077_s16 }
 0x605   :  { %28 = sbr.rel (!%p26_p9) target bundleno = 14 (0xe), region = 153 }
 0x60a   :  { %6116 = vsyncpa [#allocation4], 1 }
 0x60b   :  { %6118 = vsyncpa [#allocation4 + $0x1], 1 }
 0x60c   :  { %6119 = vsyncpa [#allocation7], 1 }
 0x60d   :  { %6121 = vsyncpa [#allocation7 + $0x1], 1 }
 0x60e   :  { %6122 = vsyncpa [#allocation10], 1 }
 0x60f   :  { %6124 = vsyncpa [#allocation10 + $0x1], 1 }
 0x610   :  { %6125 = vsyncpa [#allocation13], 1 }
 0x611   :  { %6126 = vsyncpa [#allocation16], 1 }
 0x612   :  { %6127 = vsyncpa [#allocation5], 1 }
 0x613   :  { %6129 = vsyncpa [#allocation5 + $0x1], 1 }

</bundles_post_ra>
